<compile_context>
chip_gen: v7x
topology: tpu7x:2x2x1
jax: 0.10.0
libtpu: 0.0.40
codegen_flags: <defaults>
</compile_context>

<pallas_src>
import jax
import jax.numpy as jnp
from jax.experimental import pallas as pl
from jax.experimental.pallas import tpu as pltpu

HIDDEN = 768          # BERT hidden size
EMBED_DIM = 128       # embedding_dim of the fc layer (lane-aligned)
MAX_BLOCK_B = 1024    # VMEM-driven batch-tile cap (~7 MiB working set at 1024)


def _text_encoder_kernel(cls_ref, wp_ref, bp_ref, wf_ref, bf_ref, out_ref):
    """Fused BERT-pooler + fc for one batch tile.

    cls_ref : [TB, 768]  bf16  CLS-token hidden states (pre-gathered, contiguous)
    wp_ref  : [768, 768] bf16  pooler dense weight (transposed for x @ W)
    bp_ref  : [1, 768]   f32   pooler dense bias
    wf_ref  : [768, E]   bf16  fc weight (transposed for x @ W)
    bf_ref  : [1, E]     f32   fc bias
    out_ref : [TB, E]    f32 (or bf16 if requested)
    """
    cls = cls_ref[...]
    if cls.dtype != wp_ref.dtype:          # only if caller opted out of bf16 activations
        cls = cls.astype(wp_ref.dtype)
    # BERT pooler: tanh(dense(CLS)); bf16 x bf16 on the MXU, f32 accumulation;
    # bias add + tanh stay f32 (EUP handles tanh; v5e has no bf16 VPU/EUP path).
    pooled = jnp.tanh(
        jnp.dot(cls, wp_ref[...], preferred_element_type=jnp.float32) + bp_ref[...]
    )
    # fc: Linear(768 -> embedding_dim)
    out = (
        jnp.dot(pooled.astype(wf_ref.dtype), wf_ref[...],
                preferred_element_type=jnp.float32)
        + bf_ref[...]
    )
    out_ref[...] = out.astype(out_ref.dtype)


def _pick_block_b(B):
    """VMEM-driven batch tile; guarantees >=2 grid steps for large B (v7x megacore)."""
    if B <= MAX_BLOCK_B:
        # Split into two tiles when the batch is large enough that sharding across
        # v7x's two TensorCores pays for the duplicated (1.4 MiB) weight DMA.
        if B >= 256 and B % 2 == 0 and (B // 2) % 8 == 0:
            return B // 2
        return B                      # single full-extent tile (always legal)
    for cand in (1024, 512, 256, 128, 64, 32, 16, 8):
        if B % cand == 0:
            return cand
    return B                          # irregular large batch: one full-extent tile


def _build_specs(block_b, E, single_buffer_weights):
    """BlockSpecs; weights/biases use constant index_maps (VMEM-resident across tiles)
    and, when supported, a single buffer (they never change across the batch grid)."""
    w_kwargs = dict(pipeline_mode=pl.Buffered(1)) if single_buffer_weights else {}
    in_specs = [
        pl.BlockSpec((block_b, HIDDEN), lambda i: (i, 0)),                  # CLS tile
        pl.BlockSpec((HIDDEN, HIDDEN), lambda i: (0, 0), **w_kwargs),       # wp
        pl.BlockSpec((1, HIDDEN), lambda i: (0, 0), **w_kwargs),            # bp
        pl.BlockSpec((HIDDEN, E), lambda i: (0, 0), **w_kwargs),            # wf
        pl.BlockSpec((1, E), lambda i: (0, 0), **w_kwargs),                 # bf
    ]
    out_specs = pl.BlockSpec((block_b, E), lambda i: (i, 0))
    return in_specs, out_specs


def text_encoder_forward(last_hidden_state, wp, bp, wf, bf, *, block_b=None,
                         out_dtype=jnp.float32, activation_dtype=jnp.bfloat16):
    """last_hidden_state: [B, S, 768] (or a pre-sliced [B, 768] CLS tensor).
    Returns [B, E] in out_dtype."""
    cls = last_hidden_state[:, 0, :] if last_hidden_state.ndim == 3 else last_hidden_state
    B, H = cls.shape
    assert H == HIDDEN
    E = wf.shape[1]

    # Ship activations bf16: the kernel is memory-bound at large B, so halving the
    # per-row CLS read is the dominant lever; matmul takes bf16 natively anyway.
    if activation_dtype is not None and cls.dtype != activation_dtype:
        cls = cls.astype(activation_dtype)

    if block_b is None:
        block_b = _pick_block_b(B)
    assert B % block_b == 0
    grid = (B // block_b,)

    # Advisory cost for XLA scheduling: weights read once (VMEM-resident across the
    # batch grid), activations read/written once.
    bytes_accessed = int(
        wp.size * wp.dtype.itemsize + wf.size * wf.dtype.itemsize
        + bp.size * bp.dtype.itemsize + bf.size * bf.dtype.itemsize
        + cls.size * cls.dtype.itemsize
        + B * E * jnp.dtype(out_dtype).itemsize
    )
    cost = pl.CostEstimate(
        flops=2 * B * HIDDEN * (HIDDEN + E),
        transcendentals=B * HIDDEN,
        bytes_accessed=bytes_accessed,
    )

    def _call(single_buffer_weights):
        in_specs, out_specs = _build_specs(block_b, E, single_buffer_weights)
        return pl.pallas_call(
            _text_encoder_kernel,
            out_shape=jax.ShapeDtypeStruct((B, E), out_dtype),
            grid=grid,
            in_specs=in_specs,
            out_specs=out_specs,
            compiler_params=pltpu.CompilerParams(
                dimension_semantics=("parallel",),   # batch tiles shard across TCs (v7x)
            ),
            cost_estimate=cost,
        )(cls, wp, bp, wf, bf)

    try:
        return _call(single_buffer_weights=True)
    except Exception:
        # Fallback: this JAX build rejected pipeline_mode=pl.Buffered(1); default
        # double-buffering only costs ~1.4 MiB extra VMEM and is always legal.
        return _call(single_buffer_weights=False)


def init_params(key, embedding_dim=EMBED_DIM):
    """Deterministic synthetic parameters (pooler dense + fc Linear).

    f32 master weights (for the accuracy reference) plus bf16 copies stored already
    transposed for x @ W (halves weight DMA; MXU takes bf16 natively).  Biases f32.
    """
    k1, k2, k3, k4 = jax.random.split(key, 4)
    wp_f32 = jax.random.normal(k1, (HIDDEN, HIDDEN), jnp.float32) * 0.02
    bp = jax.random.normal(k2, (1, HIDDEN), jnp.float32) * 0.02
    wf_f32 = jax.random.normal(k3, (HIDDEN, embedding_dim), jnp.float32) * 0.02
    bf = jax.random.normal(k4, (1, embedding_dim), jnp.float32) * 0.02
    return wp_f32, bp, wf_f32, bf


def _reference_f32(last_hidden_state, wp_f32, bp, wf_f32, bf):
    """Pure-f32 reference matching the PyTorch module exactly."""
    cls = last_hidden_state[:, 0, :].astype(jnp.float32)
    pooled = jnp.tanh(jnp.dot(cls, wp_f32) + bp)
    return jnp.dot(pooled, wf_f32) + bf


def _reference_bf16(last_hidden_state, wp_bf16, bp, wf_bf16, bf):
    """Pure-JAX reference using the same bf16-weight / f32-accumulate recipe."""
    cls = last_hidden_state[:, 0, :].astype(jnp.bfloat16)
    pooled = jnp.tanh(
        jnp.dot(cls, wp_bf16, preferred_element_type=jnp.float32) + bp
    )
    return jnp.dot(pooled.astype(jnp.bfloat16), wf_bf16,
                   preferred_element_type=jnp.float32) + bf


if __name__ == "__main__":
    key = jax.random.PRNGKey(0)
    k_hidden, k_params = jax.random.split(key)

    B, S = 8, 16
    # Synthetic stand-in for BERT's last_hidden_state.
    last_hidden_state = jax.random.normal(k_hidden, (B, S, HIDDEN), jnp.float32)

    wp_f32, bp, wf_f32, bf = init_params(k_params, EMBED_DIM)
    wp, wf = wp_f32.astype(jnp.bfloat16), wf_f32.astype(jnp.bfloat16)

    out = text_encoder_forward(last_hidden_state, wp, bp, wf, bf)
    out = jax.block_until_ready(out)
    assert out.shape == (B, EMBED_DIM)

    # Tight check against the identical bf16-weight recipe.
    ref_bf16 = _reference_bf16(last_hidden_state, wp, bp, wf, bf)
    assert jnp.allclose(out, ref_bf16, atol=2e-2, rtol=2e-2)

    # Loose check against the f32 PyTorch-equivalent model to bound quantization drift.
    ref_f32 = _reference_f32(last_hidden_state, wp_f32, bp, wf_f32, bf)
    assert jnp.allclose(out, ref_f32, atol=5e-2, rtol=5e-2)

    print("KERNEL_OK")
</pallas_src>

<mosaic_0001>
module attributes {stable_mosaic.version = 11 : i64} {
  func.func @_text_encoder_kernel(%arg0: i32, %arg1: memref<8x768xbf16, #tpu.memory_space<vmem>>, %arg2: memref<768x768xbf16, #tpu.memory_space<vmem>>, %arg3: memref<1x768xf32, #tpu.memory_space<vmem>>, %arg4: memref<768x128xbf16, #tpu.memory_space<vmem>>, %arg5: memref<1x128xf32, #tpu.memory_space<vmem>>, %arg6: memref<8x128xf32, #tpu.memory_space<vmem>>) attributes {dimension_semantics = [#tpu.dimension_semantics<parallel>], iteration_bounds = array<i64: 1>, scalar_prefetch = 0 : i64, scratch_operands = 0 : i64, tpu.core_type = #tpu.core_type<tc>, window_params = [{transform_indices = @transform_0, window_bounds = array<i64: 8, 768>}, {pipeline_mode = #tpu.pipeline_mode<synchronous>, transform_indices = @transform_1, window_bounds = array<i64: 768, 768>}, {pipeline_mode = #tpu.pipeline_mode<synchronous>, transform_indices = @transform_2, window_bounds = array<i64: 1, 768>}, {pipeline_mode = #tpu.pipeline_mode<synchronous>, transform_indices = @transform_3, window_bounds = array<i64: 768, 128>}, {pipeline_mode = #tpu.pipeline_mode<synchronous>, transform_indices = @transform_4, window_bounds = array<i64: 1, 128>}, {transform_indices = @transform_5, window_bounds = array<i64: 8, 128>}]} {
    %c0 = arith.constant 0 : index
    %c0_0 = arith.constant 0 : index
    %0 = vector.load %arg1[%c0, %c0_0] : memref<8x768xbf16, #tpu.memory_space<vmem>>, vector<8x768xbf16>
    %c0_1 = arith.constant 0 : index
    %c0_2 = arith.constant 0 : index
    %1 = vector.load %arg2[%c0_1, %c0_2] : memref<768x768xbf16, #tpu.memory_space<vmem>>, vector<768x768xbf16>
    %cst = arith.constant dense<0.000000e+00> : vector<8x768xf32>
    %2 = tpu.matmul %0, %1, %cst {dimension_numbers = #tpu.dot_dimension_numbers<[1], [0], [0], [1], [0, 0, 1, 1], [], []>} : vector<8x768xbf16>, vector<768x768xbf16>, vector<8x768xf32> -> vector<8x768xf32>
    %c0_3 = arith.constant 0 : index
    %c0_4 = arith.constant 0 : index
    %3 = vector.load %arg3[%c0_3, %c0_4] : memref<1x768xf32, #tpu.memory_space<vmem>>, vector<1x768xf32>
    %4 = vector.broadcast %3 : vector<1x768xf32> to vector<8x768xf32>
    %5 = arith.addf %2, %4 : vector<8x768xf32>
    %6 = math.tanh %5 : vector<8x768xf32>
    %7 = arith.truncf %6 : vector<8x768xf32> to vector<8x768xbf16>
    %c0_5 = arith.constant 0 : index
    %c0_6 = arith.constant 0 : index
    %8 = vector.load %arg4[%c0_5, %c0_6] : memref<768x128xbf16, #tpu.memory_space<vmem>>, vector<768x128xbf16>
    %cst_7 = arith.constant dense<0.000000e+00> : vector<8x128xf32>
    %9 = tpu.matmul %7, %8, %cst_7 {dimension_numbers = #tpu.dot_dimension_numbers<[1], [0], [0], [1], [0, 0, 1, 1], [], []>} : vector<8x768xbf16>, vector<768x128xbf16>, vector<8x128xf32> -> vector<8x128xf32>
    %c0_8 = arith.constant 0 : index
    %c0_9 = arith.constant 0 : index
    %10 = vector.load %arg5[%c0_8, %c0_9] : memref<1x128xf32, #tpu.memory_space<vmem>>, vector<1x128xf32>
    %11 = vector.broadcast %10 : vector<1x128xf32> to vector<8x128xf32>
    %12 = arith.addf %9, %11 : vector<8x128xf32>
    %c0_10 = arith.constant 0 : index
    %c0_11 = arith.constant 0 : index
    %13 = vector.load %arg6[%c0_10, %c0_11] : memref<8x128xf32, #tpu.memory_space<vmem>>, vector<8x128xf32>
    tpu.vector_store %arg6[%c0_10, %c0_11], %12 {strides = array<i32>} : memref<8x128xf32, #tpu.memory_space<vmem>>, vector<8x128xf32>,
    return
  }
  func.func @transform_0(%arg0: i32) -> (i32, i32) {
    %c0_i32 = arith.constant 0 : i32
    %c0_i32_0 = arith.constant 0 : i32
    return %arg0, %c0_i32 : i32, i32
  }
  func.func @transform_1(%arg0: i32) -> (i32, i32) {
    %c0_i32 = arith.constant 0 : i32
    %c0_i32_0 = arith.constant 0 : i32
    %c0_i32_1 = arith.constant 0 : i32
    return %c0_i32, %c0_i32_0 : i32, i32
  }
  func.func @transform_2(%arg0: i32) -> (i32, i32) {
    %c0_i32 = arith.constant 0 : i32
    %c0_i32_0 = arith.constant 0 : i32
    %c0_i32_1 = arith.constant 0 : i32
    return %c0_i32, %c0_i32_0 : i32, i32
  }
  func.func @transform_3(%arg0: i32) -> (i32, i32) {
    %c0_i32 = arith.constant 0 : i32
    %c0_i32_0 = arith.constant 0 : i32
    %c0_i32_1 = arith.constant 0 : i32
    return %c0_i32, %c0_i32_0 : i32, i32
  }
  func.func @transform_4(%arg0: i32) -> (i32, i32) {
    %c0_i32 = arith.constant 0 : i32
    %c0_i32_0 = arith.constant 0 : i32
    %c0_i32_1 = arith.constant 0 : i32
    return %c0_i32, %c0_i32_0 : i32, i32
  }
  func.func @transform_5(%arg0: i32) -> (i32, i32) {
    %c0_i32 = arith.constant 0 : i32
    %c0_i32_0 = arith.constant 0 : i32
    return %arg0, %c0_i32 : i32, i32
  }
}

module attributes {stable_mosaic.version = 11 : i64} {
  func.func @_text_encoder_kernel(%arg0: i32, %arg1: memref<8x768xbf16, #tpu.memory_space<vmem>>, %arg2: memref<768x768xbf16, #tpu.memory_space<vmem>>, %arg3: memref<1x768xf32, #tpu.memory_space<vmem>>, %arg4: memref<768x128xbf16, #tpu.memory_space<vmem>>, %arg5: memref<1x128xf32, #tpu.memory_space<vmem>>, %arg6: memref<8x128xf32, #tpu.memory_space<vmem>>) attributes {dimension_semantics = [#tpu.dimension_semantics<parallel>], iteration_bounds = array<i64: 1>, scalar_prefetch = 0 : i64, scratch_operands = 0 : i64, tpu.core_type = #tpu.core_type<tc>, window_params = [{transform_indices = @transform_0, window_bounds = array<i64: 8, 768>}, {pipeline_mode = #tpu.pipeline_mode<synchronous>, transform_indices = @transform_1, window_bounds = array<i64: 768, 768>}, {pipeline_mode = #tpu.pipeline_mode<synchronous>, transform_indices = @transform_2, window_bounds = array<i64: 1, 768>}, {pipeline_mode = #tpu.pipeline_mode<synchronous>, transform_indices = @transform_3, window_bounds = array<i64: 768, 128>}, {pipeline_mode = #tpu.pipeline_mode<synchronous>, transform_indices = @transform_4, window_bounds = array<i64: 1, 128>}, {transform_indices = @transform_5, window_bounds = array<i64: 8, 128>}]} {
    %c0 = arith.constant 0 : index
    %c0_0 = arith.constant 0 : index
    %0 = vector.load %arg1[%c0, %c0_0] : memref<8x768xbf16, #tpu.memory_space<vmem>>, vector<8x768xbf16>
    %c0_1 = arith.constant 0 : index
    %c0_2 = arith.constant 0 : index
    %1 = vector.load %arg2[%c0_1, %c0_2] : memref<768x768xbf16, #tpu.memory_space<vmem>>, vector<768x768xbf16>
    %cst = arith.constant dense<0.000000e+00> : vector<8x768xf32>
    %2 = tpu.matmul %0, %1, %cst {dimension_numbers = #tpu.dot_dimension_numbers<[1], [0], [0], [1], [0, 0, 1, 1], [], []>} : vector<8x768xbf16>, vector<768x768xbf16>, vector<8x768xf32> -> vector<8x768xf32>
    %c0_3 = arith.constant 0 : index
    %c0_4 = arith.constant 0 : index
    %3 = vector.load %arg3[%c0_3, %c0_4] : memref<1x768xf32, #tpu.memory_space<vmem>>, vector<1x768xf32>
    %4 = vector.broadcast %3 : vector<1x768xf32> to vector<8x768xf32>
    %5 = arith.addf %2, %4 : vector<8x768xf32>
    %6 = math.tanh %5 : vector<8x768xf32>
    %7 = arith.truncf %6 : vector<8x768xf32> to vector<8x768xbf16>
    %c0_5 = arith.constant 0 : index
    %c0_6 = arith.constant 0 : index
    %8 = vector.load %arg4[%c0_5, %c0_6] : memref<768x128xbf16, #tpu.memory_space<vmem>>, vector<768x128xbf16>
    %cst_7 = arith.constant dense<0.000000e+00> : vector<8x128xf32>
    %9 = tpu.matmul %7, %8, %cst_7 {dimension_numbers = #tpu.dot_dimension_numbers<[1], [0], [0], [1], [0, 0, 1, 1], [], []>} : vector<8x768xbf16>, vector<768x128xbf16>, vector<8x128xf32> -> vector<8x128xf32>
    %c0_8 = arith.constant 0 : index
    %c0_9 = arith.constant 0 : index
    %10 = vector.load %arg5[%c0_8, %c0_9] : memref<1x128xf32, #tpu.memory_space<vmem>>, vector<1x128xf32>
    %11 = vector.broadcast %10 : vector<1x128xf32> to vector<8x128xf32>
    %12 = arith.addf %9, %11 : vector<8x128xf32>
    %c0_10 = arith.constant 0 : index
    %c0_11 = arith.constant 0 : index
    %13 = vector.load %arg6[%c0_10, %c0_11] : memref<8x128xf32, #tpu.memory_space<vmem>>, vector<8x128xf32>
    tpu.vector_store %arg6[%c0_10, %c0_11], %12 {strides = array<i32>} : memref<8x128xf32, #tpu.memory_space<vmem>>, vector<8x128xf32>,
    return
  }
  func.func @transform_0(%arg0: i32) -> (i32, i32) {
    %c0_i32 = arith.constant 0 : i32
    %c0_i32_0 = arith.constant 0 : i32
    return %arg0, %c0_i32 : i32, i32
  }
  func.func @transform_1(%arg0: i32) -> (i32, i32) {
    %c0_i32 = arith.constant 0 : i32
    %c0_i32_0 = arith.constant 0 : i32
    %c0_i32_1 = arith.constant 0 : i32
    return %c0_i32, %c0_i32_0 : i32, i32
  }
  func.func @transform_2(%arg0: i32) -> (i32, i32) {
    %c0_i32 = arith.constant 0 : i32
    %c0_i32_0 = arith.constant 0 : i32
    %c0_i32_1 = arith.constant 0 : i32
    return %c0_i32, %c0_i32_0 : i32, i32
  }
  func.func @transform_3(%arg0: i32) -> (i32, i32) {
    %c0_i32 = arith.constant 0 : i32
    %c0_i32_0 = arith.constant 0 : i32
    %c0_i32_1 = arith.constant 0 : i32
    return %c0_i32, %c0_i32_0 : i32, i32
  }
  func.func @transform_4(%arg0: i32) -> (i32, i32) {
    %c0_i32 = arith.constant 0 : i32
    %c0_i32_0 = arith.constant 0 : i32
    %c0_i32_1 = arith.constant 0 : i32
    return %c0_i32, %c0_i32_0 : i32, i32
  }
  func.func @transform_5(%arg0: i32) -> (i32, i32) {
    %c0_i32 = arith.constant 0 : i32
    %c0_i32_0 = arith.constant 0 : i32
    return %arg0, %c0_i32 : i32, i32
  }
}

</mosaic_0001>

<bundles_post_ra>
// kernel: tpu_custom_call.1
= control target key start
LH: loop header
LB: loop body
LE: loop exit
PB: predicated region body
PF: predicated region fallthrough
CT: control target
= control target key end

     0   :  { %10 = vsyncpa [#allocation3], 0  ;;  %s4030_s0 = inlined_call_operand.hbm [shape: bf16[8,768], index: 0, kind: input, shape index: {}]   ;;  %s4031_s1 = inlined_call_operand.hbm [shape: bf16[768,768], index: 1, kind: input, shape index: {}]   ;;  %s4032_s2 = inlined_call_operand.hbm [shape: f32[1,768], index: 2, kind: input, shape index: {}]   ;;  %s4033_s3 = inlined_call_operand.hbm [shape: bf16[768,128], index: 3, kind: input, shape index: {}]   ;;  %s4034_s4 = inlined_call_operand.hbm [shape: f32[1,128], index: 4, kind: input, shape index: {}]   ;;  %s4035_s5 = inlined_call_operand.hbm [shape: f32[8,128], index: 5, kind: output, shape index: {}]  }
   0x1   :  { %11 = vsyncpa [#allocation6], 0 }
   0x2   :  { %12 = vsyncpa [#allocation9], 0 }
   0x3   :  { %13 = vsyncpa [#allocation4], 0  ;;  %s3863_s18 = smov [#allocation5]   ;;  %s3723_s22 = scalar_lea.hbm %s4031_s1, 36864 }
   0x4   :  { %s29_s19 = sshll.u32 %s3863_s18, 4  ;;  %p3724_p0 = scmp.ne.s32.totalorder %s4031_s1, %s3723_s22  ;;  %s30_s19 = int_to_ptr.vmem [resolvable:$true] %s29_s19 }
   0x5   :  { %p3727_p1 = scmp.lt.u32.totalorder %s3723_s22, %s4031_s1 }
   0x7   :  { %p3729_p2 = pnand %p3727_p1, %p3724_p0 }
   0x9   :  { %3732 = shalt.err (!%p3729_p2)
}
   0xa   :  { %s3733_s27 = scalar_lea.vmem %s30_s19, 36864  ;;  %p3738_p4 = scmp.lt.s32.totalorder %s30_s19, %s30_s19 }
   0xb   :  { %p3734_p3 = scmp.ne.s32.totalorder %s30_s19, %s3733_s27  ;;  %p3739_p5 = scmp.lt.s32.totalorder %s3733_s27, %s3733_s27 }
   0xd   :  { %p3740_p6 = por %p3739_p5, %p3738_p4 }
   0xf   :  { %p3741_p7 = pnand %p3740_p6, %p3734_p3 }
  0x11   :  { %3744 = shalt.err (!%p3741_p7)
}
  0x12   :  { %s3864_s28 = smov 384   ;;  %s3865_s29 = smov 24  }
  0x13   :  { %35 = dma.hbm_to_vmem [thread:$0]  %s4031_s1, 36864, %s30_s19, [#allocation6], %s3864_s28, %s3864_s28, %s3865_s29  }
  0x14   :  { %s3866_s7 = smov [#allocation8]   ;;  %s3745_s11 = scalar_lea.hbm %s4033_s3, 6144 }
  0x15   :  { %s51_s8 = sshll.u32 %s3866_s7, 4  ;;  %p3746_p8 = scmp.ne.s32.totalorder %s4033_s3, %s3745_s11  ;;  %s52_s8 = int_to_ptr.vmem [resolvable:$true] %s51_s8 }
  0x16   :  { %p3749_p9 = scmp.lt.u32.totalorder %s3745_s11, %s4033_s3 }
  0x18   :  { %p3751_p10 = pnand %p3749_p9, %p3746_p8 }
  0x1a   :  { %3754 = shalt.err (!%p3751_p10)
}
  0x1b   :  { %s3755_s16 = scalar_lea.vmem %s52_s8, 6144  ;;  %p3760_p12 = scmp.lt.s32.totalorder %s52_s8, %s52_s8 }
  0x1c   :  { %p3756_p11 = scmp.ne.s32.totalorder %s52_s8, %s3755_s16  ;;  %p3761_p13 = scmp.lt.s32.totalorder %s3755_s16, %s3755_s16 }
  0x1e   :  { %p3762_p0 = por %p3761_p13, %p3760_p12 }
  0x20   :  { %p3763_p1 = pnand %p3762_p0, %p3756_p11 }
  0x22   :  { %3766 = shalt.err (!%p3763_p1)
}
  0x23   :  { %s3867_s1 = smov 64   ;;  %s3868_s17 = smov 4  }
  0x24   :  { %57 = dma.hbm_to_vmem [thread:$0]  %s4033_s3, 6144, %s52_s8, [#allocation9], %s3867_s1, %s3867_s1, %s3868_s17  }
  0x25   :  { %s3869_s20 = smov [#allocation2]   ;;  %s3870_s22 = smov [#allocation7]  }
  0x26   :  { %s20_s21 = sshll.u32 %s3869_s20, 4  ;;  %s42_s23 = sshll.u32 %s3870_s22, 4  ;;  %s21_s21 = int_to_ptr.vmem [resolvable:$true] %s20_s21  ;;  %s43_s23 = int_to_ptr.vmem [resolvable:$true] %s42_s23 }
  0x27   :  { %s3767_s26 = scalar_lea.hbm %s4030_s0, 384 }
  0x28   :  { %p3768_p2 = scmp.ne.s32.totalorder %s4030_s0, %s3767_s26  ;;  %p3771_p3 = scmp.lt.u32.totalorder %s3767_s26, %s4030_s0 }
  0x2a   :  { %p3773_p4 = pnand %p3771_p3, %p3768_p2 }
  0x2c   :  { %3776 = shalt.err (!%p3773_p4)
}
  0x2d   :  { %s3777_s3 = scalar_lea.vmem %s21_s21, 384  ;;  %p3782_p6 = scmp.lt.s32.totalorder %s21_s21, %s21_s21 }
  0x2e   :  { %p3778_p5 = scmp.ne.s32.totalorder %s21_s21, %s3777_s3  ;;  %p3783_p7 = scmp.lt.s32.totalorder %s3777_s3, %s3777_s3 }
  0x30   :  { %p3784_p8 = por %p3783_p7, %p3782_p6 }
  0x32   :  { %p3785_p9 = pnand %p3784_p8, %p3778_p5 }
  0x34   :  { %3788 = shalt.err (!%p3785_p9)
}
  0x35   :  { %23 = dma.hbm_to_vmem [thread:$0]  %s4030_s0, 384, %s21_s21, [#allocation3]  }
  0x36   :  { %s3789_s10 = scalar_lea.hbm %s4032_s2, 96 }
  0x37   :  { %p3790_p10 = scmp.ne.s32.totalorder %s4032_s2, %s3789_s10  ;;  %p3793_p11 = scmp.lt.u32.totalorder %s3789_s10, %s4032_s2 }
  0x39   :  { %p3795_p12 = pnand %p3793_p11, %p3790_p10 }
  0x3b   :  { %3798 = shalt.err (!%p3795_p12)
}
  0x3c   :  { %s3799_s15 = scalar_lea.vmem %s43_s23, 96  ;;  %p3804_p0 = scmp.lt.s32.totalorder %s43_s23, %s43_s23 }
  0x3d   :  { %p3800_p13 = scmp.ne.s32.totalorder %s43_s23, %s3799_s15  ;;  %p3805_p1 = scmp.lt.s32.totalorder %s3799_s15, %s3799_s15 }
  0x3f   :  { %p3806_p2 = por %p3805_p1, %p3804_p0 }
  0x41   :  { %p3807_p3 = pnand %p3806_p2, %p3800_p13 }
  0x43   :  { %3810 = shalt.err (!%p3807_p3)
}
  0x44   :  { %45 = dma.hbm_to_vmem [thread:$0]  %s4032_s2, 96, %s43_s23, [#allocation6]  }
  0x45   :  { %s3871_s1 = smov [#allocation10]   ;;  %s3811_s20 = scalar_lea.hbm %s4034_s4, 16 }
  0x46   :  { %s64_s17 = sshll.u32 %s3871_s1, 4  ;;  %p3812_p4 = scmp.ne.s32.totalorder %s4034_s4, %s3811_s20  ;;  %s65_s17 = int_to_ptr.vmem [resolvable:$true] %s64_s17 }
  0x47   :  { %p3815_p5 = scmp.lt.u32.totalorder %s3811_s20, %s4034_s4 }
  0x49   :  { %p3817_p6 = pnand %p3815_p5, %p3812_p4 }
  0x4b   :  { %3820 = shalt.err (!%p3817_p6)
}
  0x4c   :  { %s3821_s26 = scalar_lea.vmem %s65_s17, 16  ;;  %s3825_s2 = scalar_lea.vmem %s65_s17, 32 }
  0x4d   :  { %p3822_p7 = scmp.ne.s32.totalorder %s65_s17, %s3821_s26  ;;  %p3826_p8 = scmp.lt.s32.totalorder %s65_s17, %s65_s17 }
  0x4e   :  { %p3827_p9 = scmp.lt.s32.totalorder %s3825_s2, %s3821_s26 }
  0x50   :  { %p3828_p10 = por %p3827_p9, %p3826_p8 }
  0x52   :  { %p3829_p11 = pnand %p3828_p10, %p3822_p7 }
  0x54   :  { %3832 = shalt.err (!%p3829_p11)
}
  0x55   :  { %67 = dma.hbm_to_vmem [thread:$0]  %s4034_s4, 16, %s65_s17, [#allocation9]  }
  0x56   :  { %3855 = dma.done.wait [#allocation3], 384  }
  0x57   :  { %3856 = vsyncadd [#allocation3], 4294966912 }
  0x58   :  { %3857 = dma.done.wait [#allocation6], 36960  }
  0x59   :  { %3858 = vsyncadd [#allocation6], 4294930336 }
  0x5a   :  { %3859 = dma.done.wait [#allocation9], 6160  }
  0x5b   :  { %3860 = vsyncadd [#allocation9], 4294961136  ;;  %v3225_v0 = vld [vmem:[#allocation5 + $0x4] ss:$24 sps:$4 sm:$0xff]   ;;  %v3229_v2 = vld [vmem:[#allocation5] ss:$24 sps:$4 sm:$0xff]  }
  0x5c   :  { %v3227_v1 = vld [vmem:[#allocation5 + $0x304] ss:$24 sps:$4 sm:$0xff]   ;;  %1868 = vmatprep.subr.bf16.mxu1 %v3225_v0  ;;  %v3230_v3 = vld [vmem:[#allocation5 + $0x300] ss:$24 sps:$4 sm:$0xff]   ;;  %v3231_v4 = vld [vmem:[#allocation5 + $0x34] ss:$24 sps:$4 sm:$0xff]  }
  0x5d   :  { %1909 = vmatprep.subr.bf16.mxu0 %v3227_v1  ;;  %1869 = vmatpush1.bf16.msra.mxu1 %v3229_v2  ;;  %v3233_v5 = vld [vmem:[#allocation5 + $0x334] ss:$24 sps:$4 sm:$0xff]   ;;  %v3235_v6 = vld [vmem:[#allocation5 + $0x30] ss:$24 sps:$4 sm:$0xff]   ;;  %v3237_v8 = vld [vmem:[#allocation5 + $0x64] ss:$24 sps:$4 sm:$0xff]  }
  0x5e   :  { %1910 = vmatpush1.bf16.msra.mxu0 %v3230_v3  ;;  %1870 = vmatprep.subr.bf16.mxu1 %v3231_v4  ;;  %v3236_v7 = vld [vmem:[#allocation5 + $0x330] ss:$24 sps:$4 sm:$0xff]   ;;  %v3239_v9 = vld [vmem:[#allocation5 + $0x364] ss:$24 sps:$4 sm:$0xff]   ;;  %v3241_v10 = vld [vmem:[#allocation5 + $0x60] ss:$24 sps:$4 sm:$0xff]  }
  0x5f   :  { %1911 = vmatprep.subr.bf16.mxu0 %v3233_v5  ;;  %v3242_v11 = vld [vmem:[#allocation5 + $0x360] ss:$24 sps:$4 sm:$0xff]   ;;  %v3243_v12 = vld [vmem:[#allocation5 + $0x94] ss:$24 sps:$4 sm:$0xff]   ;;  %v3247_v14 = vld [vmem:[#allocation5 + $0x90] ss:$24 sps:$4 sm:$0xff]  }
  0x60   :  { %v3245_v13 = vld [vmem:[#allocation5 + $0x394] ss:$24 sps:$4 sm:$0xff]   ;;  %v3248_v15 = vld [vmem:[#allocation5 + $0x390] ss:$24 sps:$4 sm:$0xff]   ;;  %v3249_v16 = vld [vmem:[#allocation5 + $0xc4] ss:$24 sps:$4 sm:$0xff]  }
  0x61   :  { %1871 = vmatpush1.bf16.msra.mxu1 %v3235_v6  ;;  %v3251_v17 = vld [vmem:[#allocation5 + $0x3c4] ss:$24 sps:$4 sm:$0xff]   ;;  %v3253_v18 = vld [vmem:[#allocation5 + $0xc0] ss:$24 sps:$4 sm:$0xff]   ;;  %v3255_v20 = vld [vmem:[#allocation5 + $0xf4] ss:$24 sps:$4 sm:$0xff]  }
  0x62   :  { %1912 = vmatpush1.bf16.msra.mxu0 %v3236_v7  ;;  %1872 = vmatprep.subr.bf16.mxu1 %v3237_v8  ;;  %v3254_v19 = vld [vmem:[#allocation5 + $0x3c0] ss:$24 sps:$4 sm:$0xff]   ;;  %v3257_v21 = vld [vmem:[#allocation5 + $0x3f4] ss:$24 sps:$4 sm:$0xff]   ;;  %v3259_v22 = vld [vmem:[#allocation5 + $0xf0] ss:$24 sps:$4 sm:$0xff]  }
  0x63   :  { %1913 = vmatprep.subr.bf16.mxu0 %v3239_v9  ;;  %v3260_v23 = vld [vmem:[#allocation5 + $0x3f0] ss:$24 sps:$4 sm:$0xff]   ;;  %v3261_v24 = vld [vmem:[#allocation5 + $0x124] ss:$24 sps:$4 sm:$0xff]   ;;  %v3265_v26 = vld [vmem:[#allocation5 + $0x120] ss:$24 sps:$4 sm:$0xff]  }
  0x64   :  { %v3263_v25 = vld [vmem:[#allocation5 + $0x424] ss:$24 sps:$4 sm:$0xff]   ;;  %v3266_v27 = vld [vmem:[#allocation5 + $0x420] ss:$24 sps:$4 sm:$0xff]   ;;  %v3267_v28 = vld [vmem:[#allocation5 + $0x154] ss:$24 sps:$4 sm:$0xff]  }
  0x65   :  { %1873 = vmatpush1.bf16.msra.mxu1 %v3241_v10  ;;  %v3269_v29 = vld [vmem:[#allocation5 + $0x454] ss:$24 sps:$4 sm:$0xff]   ;;  %v3271_v30 = vld [vmem:[#allocation5 + $0x150] ss:$24 sps:$4 sm:$0xff]   ;;  %v3273_v32 = vld [vmem:[#allocation5 + $0x184] ss:$24 sps:$4 sm:$0xff]  }
  0x66   :  { %1914 = vmatpush1.bf16.msra.mxu0 %v3242_v11  ;;  %1874 = vmatprep.subr.bf16.mxu1 %v3243_v12  ;;  %v3272_v31 = vld [vmem:[#allocation5 + $0x450] ss:$24 sps:$4 sm:$0xff]   ;;  %v3275_v33 = vld [vmem:[#allocation5 + $0x484] ss:$24 sps:$4 sm:$0xff]   ;;  %v3277_v34 = vld [vmem:[#allocation5 + $0x180] ss:$24 sps:$4 sm:$0xff]  }
  0x67   :  { %1915 = vmatprep.subr.bf16.mxu0 %v3245_v13  ;;  %v3278_v35 = vld [vmem:[#allocation5 + $0x480] ss:$24 sps:$4 sm:$0xff]   ;;  %v3279_v36 = vld [vmem:[#allocation5 + $0x1b4] ss:$24 sps:$4 sm:$0xff]   ;;  %v3283_v38 = vld [vmem:[#allocation5 + $0x1b0] ss:$24 sps:$4 sm:$0xff]  }
  0x68   :  { %v3281_v37 = vld [vmem:[#allocation5 + $0x4b4] ss:$24 sps:$4 sm:$0xff]   ;;  %v3284_v39 = vld [vmem:[#allocation5 + $0x4b0] ss:$24 sps:$4 sm:$0xff]   ;;  %v3285_v40 = vld [vmem:[#allocation5 + $0x1e4] ss:$24 sps:$4 sm:$0xff]  }
  0x69   :  { %1875 = vmatpush1.bf16.msra.mxu1 %v3247_v14  ;;  %v3287_v41 = vld [vmem:[#allocation5 + $0x4e4] ss:$24 sps:$4 sm:$0xff]   ;;  %v3289_v42 = vld [vmem:[#allocation5 + $0x1e0] ss:$24 sps:$4 sm:$0xff]   ;;  %v3291_v44 = vld [vmem:[#allocation5 + $0x214] ss:$24 sps:$4 sm:$0xff]  }
  0x6a   :  { %1916 = vmatpush1.bf16.msra.mxu0 %v3248_v15  ;;  %1876 = vmatprep.subr.bf16.mxu1 %v3249_v16  ;;  %v3290_v43 = vld [vmem:[#allocation5 + $0x4e0] ss:$24 sps:$4 sm:$0xff]   ;;  %v3293_v45 = vld [vmem:[#allocation5 + $0x514] ss:$24 sps:$4 sm:$0xff]   ;;  %v3295_v49 = vld [vmem:[#allocation5 + $0x210] ss:$24 sps:$4 sm:$0xff]  }
  0x6b   :  { %1917 = vmatprep.subr.bf16.mxu0 %v3251_v17  ;;  %v84_v46 = vld [vmem:[#allocation2] sm:$0xff]  ;;  %v85_v48 = vld [vmem:[#allocation2 + $0x8] sm:$0xff]  ;;  %v3297_v52 = vld [vmem:[#allocation5 + $0x244] ss:$24 sps:$4 sm:$0xff]   ;;  %s3872_s4 = smov [#allocation11]  }
  0x6c   :  { %v3963_v47 = vcombine.high %v84_v46, %v84_v46  ;;  %v3296_v50 = vld [vmem:[#allocation5 + $0x510] ss:$24 sps:$4 sm:$0xff]   ;;  %v3965_v51 = vcombine.high %v85_v48, %v85_v48  ;;  %v3299_v53 = vld [vmem:[#allocation5 + $0x544] ss:$24 sps:$4 sm:$0xff]   ;;  %v3301_v54 = vld [vmem:[#allocation5 + $0x240] ss:$24 sps:$4 sm:$0xff]   ;;  %v3969_v6 = vcombine.low %v84_v46, %v84_v46  ;;  %v3971_v7 = vcombine.low %v85_v48, %v85_v48 }
  0x6d   :  { %1877 = vmatpush1.bf16.msra.mxu1 %v3253_v18  ;;  %v3302_v55 = vld [vmem:[#allocation5 + $0x540] ss:$24 sps:$4 sm:$0xff]   ;;  %v3303_v56 = vld [vmem:[#allocation5 + $0x274] ss:$24 sps:$4 sm:$0xff]   ;;  %v3307_v58 = vld [vmem:[#allocation5 + $0x270] ss:$24 sps:$4 sm:$0xff]  }
  0x6e   :  { %1918 = vmatpush1.bf16.msra.mxu0 %v3254_v19  ;;  %1878 = vmatprep.subr.bf16.mxu1 %v3255_v20  ;;  %v3305_v57 = vld [vmem:[#allocation5 + $0x574] ss:$24 sps:$4 sm:$0xff]   ;;  %v3308_v59 = vld [vmem:[#allocation5 + $0x570] ss:$24 sps:$4 sm:$0xff]   ;;  %v3309_v60 = vld [vmem:[#allocation5 + $0x2a4] ss:$24 sps:$4 sm:$0xff]  }
  0x6f   :  { %1919 = vmatprep.subr.bf16.mxu0 %v3257_v21  ;;  %1900 = vmatprep.mubr.bf16.mxu1 %v3963_v47  ;;  %v3311_v61 = vld [vmem:[#allocation5 + $0x5a4] ss:$24 sps:$4 sm:$0xff]   ;;  %v3313_v62 = vld [vmem:[#allocation5 + $0x2a0] ss:$24 sps:$4 sm:$0xff]   ;;  %v3315_v0 = vld [vmem:[#allocation5 + $0x2d4] ss:$24 sps:$4 sm:$0xff]  }
  0x70   :  { %1941 = vmatprep.mubr.bf16.mxu0 %v3965_v51  ;;  %v3314_v63 = vld [vmem:[#allocation5 + $0x5a0] ss:$24 sps:$4 sm:$0xff]   ;;  %v3317_v1 = vld [vmem:[#allocation5 + $0x5d4] ss:$24 sps:$4 sm:$0xff]   ;;  %v3319_v2 = vld [vmem:[#allocation5 + $0x2d0] ss:$24 sps:$4 sm:$0xff]  }
  0x71   :  { %1879 = vmatpush1.bf16.msra.mxu1 %v3259_v22  ;;  %v3320_v3 = vld [vmem:[#allocation5 + $0x5d0] ss:$24 sps:$4 sm:$0xff]   ;;  %v3325_v4 = vld [vmem:[#allocation5 + $0x604] ss:$24 sps:$4 sm:$0xff]   ;;  %v3323_v8 = vld [vmem:[#allocation5 + $0x600] ss:$24 sps:$4 sm:$0xff]  }
  0x72   :  { %1920 = vmatpush1.bf16.msra.mxu0 %v3260_v23  ;;  %1880 = vmatprep.subr.bf16.mxu1 %v3261_v24  ;;  %v3328_v5 = vld [vmem:[#allocation5 + $0xc] ss:$24 sps:$4 sm:$0xff]   ;;  %v3326_v9 = vld [vmem:[#allocation5 + $0x8] ss:$24 sps:$4 sm:$0xff]   ;;  %v3336_v11 = vld [vmem:[#allocation5 + $0x3c] ss:$24 sps:$4 sm:$0xff]  }
  0x73   :  { %1921 = vmatprep.subr.bf16.mxu0 %v3263_v25  ;;  %v3333_v10 = vld [vmem:[#allocation5 + $0x634] ss:$24 sps:$4 sm:$0xff]   ;;  %v3331_v12 = vld [vmem:[#allocation5 + $0x630] ss:$24 sps:$4 sm:$0xff]   ;;  %v3339_v14 = vld [vmem:[#allocation5 + $0x664] ss:$24 sps:$4 sm:$0xff]  }
  0x74   :  { %v3334_v13 = vld [vmem:[#allocation5 + $0x38] ss:$24 sps:$4 sm:$0xff]   ;;  %v3342_v15 = vld [vmem:[#allocation5 + $0x6c] ss:$24 sps:$4 sm:$0xff]   ;;  %v3340_v17 = vld [vmem:[#allocation5 + $0x68] ss:$24 sps:$4 sm:$0xff]  }
  0x75   :  { %1881 = vmatpush1.bf16.msra.mxu1 %v3265_v26  ;;  %v3337_v16 = vld [vmem:[#allocation5 + $0x660] ss:$24 sps:$4 sm:$0xff]   ;;  %v3345_v18 = vld [vmem:[#allocation5 + $0x694] ss:$24 sps:$4 sm:$0xff]   ;;  %v3343_v20 = vld [vmem:[#allocation5 + $0x690] ss:$24 sps:$4 sm:$0xff]  }
  0x76   :  { %1922 = vmatpush1.bf16.msra.mxu0 %v3266_v27  ;;  %1882 = vmatprep.subr.bf16.mxu1 %v3267_v28  ;;  %v3348_v19 = vld [vmem:[#allocation5 + $0x9c] ss:$24 sps:$4 sm:$0xff]   ;;  %v3346_v21 = vld [vmem:[#allocation5 + $0x98] ss:$24 sps:$4 sm:$0xff]   ;;  %v3354_v23 = vld [vmem:[#allocation5 + $0xcc] ss:$24 sps:$4 sm:$0xff]  }
  0x77   :  { %1923 = vmatprep.subr.bf16.mxu0 %v3269_v29  ;;  %v3351_v22 = vld [vmem:[#allocation5 + $0x6c4] ss:$24 sps:$4 sm:$0xff]   ;;  %v3349_v24 = vld [vmem:[#allocation5 + $0x6c0] ss:$24 sps:$4 sm:$0xff]   ;;  %v3357_v26 = vld [vmem:[#allocation5 + $0x6f4] ss:$24 sps:$4 sm:$0xff]  }
  0x78   :  { %v3352_v25 = vld [vmem:[#allocation5 + $0xc8] ss:$24 sps:$4 sm:$0xff]   ;;  %v3360_v27 = vld [vmem:[#allocation5 + $0xfc] ss:$24 sps:$4 sm:$0xff]   ;;  %v3358_v29 = vld [vmem:[#allocation5 + $0xf8] ss:$24 sps:$4 sm:$0xff]  }
  0x79   :  { %1883 = vmatpush1.bf16.msra.mxu1 %v3271_v30  ;;  %v3355_v28 = vld [vmem:[#allocation5 + $0x6f0] ss:$24 sps:$4 sm:$0xff]   ;;  %v3363_v30 = vld [vmem:[#allocation5 + $0x724] ss:$24 sps:$4 sm:$0xff]   ;;  %s2767_s28 = sshll.u32 %s3872_s4, 4  ;;  %s2768_s28 = int_to_ptr.vmem [resolvable:$true] %s2767_s28 }
  0x7a   :  { %1924 = vmatpush1.bf16.msra.mxu0 %v3272_v31  ;;  %1884 = vmatprep.subr.bf16.mxu1 %v3273_v32  ;;  %v3366_v31 = vld [vmem:[#allocation5 + $0x12c] ss:$24 sps:$4 sm:$0xff]   ;;  %v3976_v32 = vld [vmem:[#allocation2 + $0x10] sm:$0xff]  ;;  %v3379_v46 = vld [vmem:[#allocation5 + $0x7b0] ss:$24 sps:$4 sm:$0xff]   ;;  %s3833_s29 = scalar_lea.vmem %s2768_s28, 128  ;;  %p3838_p13 = scmp.lt.s32.totalorder %s2768_s28, %s2768_s28 }
  0x7b   :  { %1925 = vmatprep.subr.bf16.mxu0 %v3275_v33  ;;  %v3361_v33 = vld [vmem:[#allocation5 + $0x720] ss:$24 sps:$4 sm:$0xff]   ;;  %p3834_p12 = scmp.ne.s32.totalorder %s2768_s28, %s3833_s29  ;;  %p3839_p0 = scmp.lt.s32.totalorder %s3833_s29, %s3833_s29 }
  0x7c   :  { %v3382_v48 = vld [vmem:[#allocation5 + $0x1b8] ss:$24 sps:$4 sm:$0xff]  }
  0x7d   :  { %1885 = vmatpush1.bf16.msra.mxu1 %v3277_v34  ;;  %v3980_v34 = vcombine.high %v3976_v32, %v3976_v32  ;;  %p3840_p1 = por %p3839_p0, %p3838_p13 }
  0x7e   :  { %1926 = vmatpush1.bf16.msra.mxu0 %v3278_v35  ;;  %1886 = vmatprep.subr.bf16.mxu1 %v3279_v36  ;;  %v3364_v35 = vld [vmem:[#allocation5 + $0x128] ss:$24 sps:$4 sm:$0xff]   ;;  %v3369_v36 = vld [vmem:[#allocation5 + $0x754] ss:$24 sps:$4 sm:$0xff]  }
  0x7f   :  { %1927 = vmatprep.subr.bf16.mxu0 %v3281_v37  ;;  %v3372_v37 = vld [vmem:[#allocation5 + $0x15c] ss:$24 sps:$4 sm:$0xff]   ;;  %p3841_p2 = pnand %p3840_p1, %p3834_p12 }
  0x81   :  { %1887 = vmatpush1.bf16.msra.mxu1 %v3283_v38  ;;  %v3367_v38 = vld [vmem:[#allocation5 + $0x750] ss:$24 sps:$4 sm:$0xff]  }
  0x82   :  { %1928 = vmatpush1.bf16.msra.mxu0 %v3284_v39  ;;  %1888 = vmatprep.subr.bf16.mxu1 %v3285_v40  ;;  %v3370_v39 = vld [vmem:[#allocation5 + $0x158] ss:$24 sps:$4 sm:$0xff]   ;;  %v3375_v40 = vld [vmem:[#allocation5 + $0x784] ss:$24 sps:$4 sm:$0xff]  }
  0x83   :  { %1929 = vmatprep.subr.bf16.mxu0 %v3287_v41  ;;  %v3378_v41 = vld [vmem:[#allocation5 + $0x18c] ss:$24 sps:$4 sm:$0xff]  }
  0x85   :  { %1889 = vmatpush1.bf16.msra.mxu1 %v3289_v42  ;;  %v3373_v42 = vld [vmem:[#allocation5 + $0x780] ss:$24 sps:$4 sm:$0xff]  }
  0x86   :  { %1930 = vmatpush1.bf16.msra.mxu0 %v3290_v43  ;;  %1890 = vmatprep.subr.bf16.mxu1 %v3291_v44  ;;  %v3376_v43 = vld [vmem:[#allocation5 + $0x188] ss:$24 sps:$4 sm:$0xff]   ;;  %v3381_v44 = vld [vmem:[#allocation5 + $0x7b4] ss:$24 sps:$4 sm:$0xff]  }
  0x87   :  { %1931 = vmatprep.subr.bf16.mxu0 %v3293_v45  ;;  %v3384_v45 = vld [vmem:[#allocation5 + $0x1bc] ss:$24 sps:$4 sm:$0xff]  }
  0x89   :  { %1891 = vmatpush1.bf16.msra.mxu1 %v3295_v49  ;;  %v3387_v49 = vld [vmem:[#allocation5 + $0x7e4] ss:$24 sps:$4 sm:$0xff]  }
  0x8a   :  { %1932 = vmatpush1.bf16.msra.mxu0 %v3296_v50  ;;  %1892 = vmatprep.subr.bf16.mxu1 %v3297_v52  ;;  %v3390_v50 = vld [vmem:[#allocation5 + $0x1ec] ss:$24 sps:$4 sm:$0xff]   ;;  %v3385_v52 = vld [vmem:[#allocation5 + $0x7e0] ss:$24 sps:$4 sm:$0xff]  }
  0x8b   :  { %1933 = vmatprep.subr.bf16.mxu0 %v3299_v53  ;;  %v3388_v53 = vld [vmem:[#allocation5 + $0x1e8] ss:$24 sps:$4 sm:$0xff]  }
  0x8d   :  { %1893 = vmatpush1.bf16.msra.mxu1 %v3301_v54  ;;  %v3393_v54 = vld [vmem:[#allocation5 + $0x814] ss:$24 sps:$4 sm:$0xff]  }
  0x8e   :  { %1934 = vmatpush1.bf16.msra.mxu0 %v3302_v55  ;;  %1894 = vmatprep.subr.bf16.mxu1 %v3303_v56  ;;  %v3396_v55 = vld [vmem:[#allocation5 + $0x21c] ss:$24 sps:$4 sm:$0xff]   ;;  %v3391_v56 = vld [vmem:[#allocation5 + $0x810] ss:$24 sps:$4 sm:$0xff]  }
  0x8f   :  { %1935 = vmatprep.subr.bf16.mxu0 %v3305_v57  ;;  %v3394_v57 = vld [vmem:[#allocation5 + $0x218] ss:$24 sps:$4 sm:$0xff]  }
  0x91   :  { %1895 = vmatpush1.bf16.msra.mxu1 %v3307_v58  ;;  %v3399_v58 = vld [vmem:[#allocation5 + $0x844] ss:$24 sps:$4 sm:$0xff]  }
  0x92   :  { %1936 = vmatpush1.bf16.msra.mxu0 %v3308_v59  ;;  %1896 = vmatprep.subr.bf16.mxu1 %v3309_v60  ;;  %v3402_v59 = vld [vmem:[#allocation5 + $0x24c] ss:$24 sps:$4 sm:$0xff]   ;;  %v3397_v60 = vld [vmem:[#allocation5 + $0x840] ss:$24 sps:$4 sm:$0xff]  }
  0x93   :  { %1937 = vmatprep.subr.bf16.mxu0 %v3311_v61  ;;  %v3400_v61 = vld [vmem:[#allocation5 + $0x248] ss:$24 sps:$4 sm:$0xff]  }
  0x95   :  { %1897 = vmatpush1.bf16.msra.mxu1 %v3313_v62  ;;  %v3405_v62 = vld [vmem:[#allocation5 + $0x874] ss:$24 sps:$4 sm:$0xff]  }
  0x96   :  { %1938 = vmatpush1.bf16.msra.mxu0 %v3314_v63  ;;  %1898 = vmatprep.subr.bf16.mxu1 %v3315_v0  ;;  %v3408_v63 = vld [vmem:[#allocation5 + $0x27c] ss:$24 sps:$4 sm:$0xff]   ;;  %v3403_v0 = vld [vmem:[#allocation5 + $0x870] ss:$24 sps:$4 sm:$0xff]  }
  0x97   :  { %1939 = vmatprep.subr.bf16.mxu0 %v3317_v1  ;;  %v3406_v1 = vld [vmem:[#allocation5 + $0x278] ss:$24 sps:$4 sm:$0xff]  }
  0x99   :  { %1899 = vmatpush1.bf16.msra.mxu1 %v3319_v2  ;;  %v3411_v2 = vld [vmem:[#allocation5 + $0x8a4] ss:$24 sps:$4 sm:$0xff]  }
  0x9a   :  { %1940 = vmatpush1.bf16.msra.mxu0 %v3320_v3  ;;  %1991 = vmatprep.subr.bf16.mxu1 %v3328_v5  ;;  %v3414_v3 = vld [vmem:[#allocation5 + $0x2ac] ss:$24 sps:$4 sm:$0xff]   ;;  %v3412_v5 = vld [vmem:[#allocation5 + $0x2a8] ss:$24 sps:$4 sm:$0xff]  }
  0x9b   :  { %1950 = vmatprep.subr.bf16.mxu0 %v3325_v4  ;;  %v3409_v4 = vld [vmem:[#allocation5 + $0x8a0] ss:$24 sps:$4 sm:$0xff]  }
  0x9c   :  { %1901 = vmatmul.mubr.bf16.vlgmr.msra.gmra.mrb[0].mxu1 %v3969_v6 }
  0x9d   :  { %1942 = vmatmul.mubr.bf16.vlgmr.msra.gmra.mrb[0].mxu0 %v3971_v7  ;;  %1992 = vmatpush1.bf16.msra.mxu1 %v3326_v9  ;;  %v3420_v9 = vld [vmem:[#allocation5 + $0x2dc] ss:$24 sps:$4 sm:$0xff]  }
  0x9e   :  { %1951 = vmatpush1.bf16.msra.mxu0 %v3323_v8  ;;  %1993 = vmatprep.subr.bf16.mxu1 %v3336_v11  ;;  %v3417_v8 = vld [vmem:[#allocation5 + $0x8d4] ss:$24 sps:$4 sm:$0xff]   ;;  %v3418_v11 = vld [vmem:[#allocation5 + $0x2d8] ss:$24 sps:$4 sm:$0xff]  }
  0x9f   :  { %1952 = vmatprep.subr.bf16.mxu0 %v3333_v10  ;;  %2023 = vmatprep.mubr.bf16.mxu1 %v3963_v47  ;;  %v3415_v10 = vld [vmem:[#allocation5 + $0x8d0] ss:$24 sps:$4 sm:$0xff]  }
  0xa0   :  { %1982 = vmatprep.mubr.bf16.mxu0 %v3980_v34 }
  0xa1   :  { %1994 = vmatpush1.bf16.msra.mxu1 %v3334_v13  ;;  %v3428_v13 = vld [vmem:[#allocation5 + $0x14] ss:$24 sps:$4 sm:$0xff]  }
  0xa2   :  { %1953 = vmatpush1.bf16.msra.mxu0 %v3331_v12  ;;  %1995 = vmatprep.subr.bf16.mxu1 %v3342_v15  ;;  %v3425_v12 = vld [vmem:[#allocation5 + $0x30c] ss:$24 sps:$4 sm:$0xff]   ;;  %v3423_v15 = vld [vmem:[#allocation5 + $0x308] ss:$24 sps:$4 sm:$0xff]  }
  0xa3   :  { %1954 = vmatprep.subr.bf16.mxu0 %v3339_v14  ;;  %v3985_v14 = vcombine.low %v3976_v32, %v3976_v32  ;;  %v3455_v32 = vld [vmem:[#allocation5 + $0x3fc] ss:$24 sps:$4 sm:$0xff]  }
  0xa5   :  { %1996 = vmatpush1.bf16.msra.mxu1 %v3340_v17  ;;  %v3431_v17 = vld [vmem:[#allocation5 + $0x33c] ss:$24 sps:$4 sm:$0xff]  }
  0xa6   :  { %1955 = vmatpush1.bf16.msra.mxu0 %v3337_v16  ;;  %1997 = vmatprep.subr.bf16.mxu1 %v3348_v19  ;;  %v3426_v16 = vld [vmem:[#allocation5 + $0x10] ss:$24 sps:$4 sm:$0xff]  }
  0xa7   :  { %1956 = vmatprep.subr.bf16.mxu0 %v3345_v18  ;;  %v3434_v18 = vld [vmem:[#allocation5 + $0x44] ss:$24 sps:$4 sm:$0xff]   ;;  %v3429_v19 = vld [vmem:[#allocation5 + $0x338] ss:$24 sps:$4 sm:$0xff]  }
  0xa9   :  { %1998 = vmatpush1.bf16.msra.mxu1 %v3346_v21  ;;  %v3437_v21 = vld [vmem:[#allocation5 + $0x36c] ss:$24 sps:$4 sm:$0xff]  }
  0xaa   :  { %1957 = vmatpush1.bf16.msra.mxu0 %v3343_v20  ;;  %1999 = vmatprep.subr.bf16.mxu1 %v3354_v23  ;;  %v3432_v20 = vld [vmem:[#allocation5 + $0x40] ss:$24 sps:$4 sm:$0xff]  }
  0xab   :  { %1958 = vmatprep.subr.bf16.mxu0 %v3351_v22  ;;  %v3440_v22 = vld [vmem:[#allocation5 + $0x74] ss:$24 sps:$4 sm:$0xff]   ;;  %v3435_v23 = vld [vmem:[#allocation5 + $0x368] ss:$24 sps:$4 sm:$0xff]  }
  0xad   :  { %2000 = vmatpush1.bf16.msra.mxu1 %v3352_v25  ;;  %v3443_v25 = vld [vmem:[#allocation5 + $0x39c] ss:$24 sps:$4 sm:$0xff]  }
  0xae   :  { %1959 = vmatpush1.bf16.msra.mxu0 %v3349_v24  ;;  %2001 = vmatprep.subr.bf16.mxu1 %v3360_v27  ;;  %v3438_v24 = vld [vmem:[#allocation5 + $0x70] ss:$24 sps:$4 sm:$0xff]  }
  0xaf   :  { %1960 = vmatprep.subr.bf16.mxu0 %v3357_v26  ;;  %v3446_v26 = vld [vmem:[#allocation5 + $0xa4] ss:$24 sps:$4 sm:$0xff]   ;;  %v3441_v27 = vld [vmem:[#allocation5 + $0x398] ss:$24 sps:$4 sm:$0xff]  }
  0xb1   :  { %2002 = vmatpush1.bf16.msra.mxu1 %v3358_v29  ;;  %v3449_v29 = vld [vmem:[#allocation5 + $0x3cc] ss:$24 sps:$4 sm:$0xff]  }
  0xb2   :  { %1961 = vmatpush1.bf16.msra.mxu0 %v3355_v28  ;;  %2003 = vmatprep.subr.bf16.mxu1 %v3366_v31  ;;  %v3444_v28 = vld [vmem:[#allocation5 + $0xa0] ss:$24 sps:$4 sm:$0xff]  }
  0xb3   :  { %1962 = vmatprep.subr.bf16.mxu0 %v3363_v30  ;;  %v3452_v30 = vld [vmem:[#allocation5 + $0xd4] ss:$24 sps:$4 sm:$0xff]   ;;  %v3447_v31 = vld [vmem:[#allocation5 + $0x3c8] ss:$24 sps:$4 sm:$0xff]  }
  0xb5   :  { %2004 = vmatpush1.bf16.msra.mxu1 %v3364_v35  ;;  %v3453_v35 = vld [vmem:[#allocation5 + $0x3f8] ss:$24 sps:$4 sm:$0xff]  }
  0xb6   :  { %1963 = vmatpush1.bf16.msra.mxu0 %v3361_v33  ;;  %2005 = vmatprep.subr.bf16.mxu1 %v3372_v37  ;;  %v3458_v33 = vld [vmem:[#allocation5 + $0x104] ss:$24 sps:$4 sm:$0xff]  }
  0xb7   :  { %1964 = vmatprep.subr.bf16.mxu0 %v3369_v36  ;;  %v3456_v36 = vld [vmem:[#allocation5 + $0x100] ss:$24 sps:$4 sm:$0xff]   ;;  %v3461_v37 = vld [vmem:[#allocation5 + $0x42c] ss:$24 sps:$4 sm:$0xff]  }
  0xb9   :  { %2006 = vmatpush1.bf16.msra.mxu1 %v3370_v39  ;;  %v3459_v39 = vld [vmem:[#allocation5 + $0x428] ss:$24 sps:$4 sm:$0xff]  }
  0xba   :  { %1965 = vmatpush1.bf16.msra.mxu0 %v3367_v38  ;;  %2007 = vmatprep.subr.bf16.mxu1 %v3378_v41  ;;  %v3464_v38 = vld [vmem:[#allocation5 + $0x134] ss:$24 sps:$4 sm:$0xff]  }
  0xbb   :  { %1966 = vmatprep.subr.bf16.mxu0 %v3375_v40  ;;  %v3462_v40 = vld [vmem:[#allocation5 + $0x130] ss:$24 sps:$4 sm:$0xff]   ;;  %v3467_v41 = vld [vmem:[#allocation5 + $0x45c] ss:$24 sps:$4 sm:$0xff]  }
  0xbd   :  { %2008 = vmatpush1.bf16.msra.mxu1 %v3376_v43  ;;  %v3465_v43 = vld [vmem:[#allocation5 + $0x458] ss:$24 sps:$4 sm:$0xff]  }
  0xbe   :  { %1967 = vmatpush1.bf16.msra.mxu0 %v3373_v42  ;;  %2009 = vmatprep.subr.bf16.mxu1 %v3384_v45  ;;  %v3470_v42 = vld [vmem:[#allocation5 + $0x164] ss:$24 sps:$4 sm:$0xff]  }
  0xbf   :  { %1968 = vmatprep.subr.bf16.mxu0 %v3381_v44  ;;  %v3468_v44 = vld [vmem:[#allocation5 + $0x160] ss:$24 sps:$4 sm:$0xff]   ;;  %v3473_v45 = vld [vmem:[#allocation5 + $0x48c] ss:$24 sps:$4 sm:$0xff]  }
  0xc1   :  { %2010 = vmatpush1.bf16.msra.mxu1 %v3382_v48  ;;  %v3471_v48 = vld [vmem:[#allocation5 + $0x488] ss:$24 sps:$4 sm:$0xff]  }
  0xc2   :  { %1969 = vmatpush1.bf16.msra.mxu0 %v3379_v46  ;;  %2011 = vmatprep.subr.bf16.mxu1 %v3390_v50  ;;  %v3476_v46 = vld [vmem:[#allocation5 + $0x194] ss:$24 sps:$4 sm:$0xff]  }
  0xc3   :  { %1970 = vmatprep.subr.bf16.mxu0 %v3387_v49  ;;  %v3474_v49 = vld [vmem:[#allocation5 + $0x190] ss:$24 sps:$4 sm:$0xff]   ;;  %v3479_v50 = vld [vmem:[#allocation5 + $0x4bc] ss:$24 sps:$4 sm:$0xff]  }
  0xc5   :  { %2012 = vmatpush1.bf16.msra.mxu1 %v3388_v53  ;;  %v3477_v53 = vld [vmem:[#allocation5 + $0x4b8] ss:$24 sps:$4 sm:$0xff]  }
  0xc6   :  { %1971 = vmatpush1.bf16.msra.mxu0 %v3385_v52  ;;  %2013 = vmatprep.subr.bf16.mxu1 %v3396_v55  ;;  %v3482_v52 = vld [vmem:[#allocation5 + $0x1c4] ss:$24 sps:$4 sm:$0xff]  }
  0xc7   :  { %1972 = vmatprep.subr.bf16.mxu0 %v3393_v54  ;;  %v3480_v54 = vld [vmem:[#allocation5 + $0x1c0] ss:$24 sps:$4 sm:$0xff]   ;;  %v3485_v55 = vld [vmem:[#allocation5 + $0x4ec] ss:$24 sps:$4 sm:$0xff]  }
  0xc9   :  { %2014 = vmatpush1.bf16.msra.mxu1 %v3394_v57  ;;  %v3483_v57 = vld [vmem:[#allocation5 + $0x4e8] ss:$24 sps:$4 sm:$0xff]  }
  0xca   :  { %1973 = vmatpush1.bf16.msra.mxu0 %v3391_v56  ;;  %2015 = vmatprep.subr.bf16.mxu1 %v3402_v59  ;;  %v3488_v56 = vld [vmem:[#allocation5 + $0x1f4] ss:$24 sps:$4 sm:$0xff]  }
  0xcb   :  { %1974 = vmatprep.subr.bf16.mxu0 %v3399_v58  ;;  %v3486_v58 = vld [vmem:[#allocation5 + $0x1f0] ss:$24 sps:$4 sm:$0xff]   ;;  %v3491_v59 = vld [vmem:[#allocation5 + $0x51c] ss:$24 sps:$4 sm:$0xff]  }
  0xcd   :  { %2016 = vmatpush1.bf16.msra.mxu1 %v3400_v61  ;;  %v3489_v61 = vld [vmem:[#allocation5 + $0x518] ss:$24 sps:$4 sm:$0xff]  }
  0xce   :  { %1975 = vmatpush1.bf16.msra.mxu0 %v3397_v60  ;;  %2017 = vmatprep.subr.bf16.mxu1 %v3408_v63  ;;  %v3494_v60 = vld [vmem:[#allocation5 + $0x224] ss:$24 sps:$4 sm:$0xff]  }
  0xcf   :  { %1976 = vmatprep.subr.bf16.mxu0 %v3405_v62  ;;  %v3492_v62 = vld [vmem:[#allocation5 + $0x220] ss:$24 sps:$4 sm:$0xff]   ;;  %v3497_v63 = vld [vmem:[#allocation5 + $0x54c] ss:$24 sps:$4 sm:$0xff]  }
  0xd1   :  { %2018 = vmatpush1.bf16.msra.mxu1 %v3406_v1  ;;  %v3495_v1 = vld [vmem:[#allocation5 + $0x548] ss:$24 sps:$4 sm:$0xff]  }
  0xd2   :  { %1977 = vmatpush1.bf16.msra.mxu0 %v3403_v0  ;;  %2019 = vmatprep.subr.bf16.mxu1 %v3414_v3  ;;  %v3500_v0 = vld [vmem:[#allocation5 + $0x254] ss:$24 sps:$4 sm:$0xff]  }
  0xd3   :  { %1978 = vmatprep.subr.bf16.mxu0 %v3411_v2  ;;  %v3498_v2 = vld [vmem:[#allocation5 + $0x250] ss:$24 sps:$4 sm:$0xff]   ;;  %v3503_v3 = vld [vmem:[#allocation5 + $0x57c] ss:$24 sps:$4 sm:$0xff]  }
  0xd5   :  { %2020 = vmatpush1.bf16.msra.mxu1 %v3412_v5  ;;  %v3501_v5 = vld [vmem:[#allocation5 + $0x578] ss:$24 sps:$4 sm:$0xff]  }
  0xd6   :  { %1979 = vmatpush1.bf16.msra.mxu0 %v3409_v4  ;;  %2021 = vmatprep.subr.bf16.mxu1 %v3420_v9  ;;  %v3506_v4 = vld [vmem:[#allocation5 + $0x284] ss:$24 sps:$4 sm:$0xff]  }
  0xd7   :  { %1980 = vmatprep.subr.bf16.mxu0 %v3417_v8  ;;  %v3504_v8 = vld [vmem:[#allocation5 + $0x280] ss:$24 sps:$4 sm:$0xff]   ;;  %v3509_v9 = vld [vmem:[#allocation5 + $0x5ac] ss:$24 sps:$4 sm:$0xff]  }
  0xd9   :  { %2022 = vmatpush1.bf16.msra.mxu1 %v3418_v11  ;;  %v3507_v11 = vld [vmem:[#allocation5 + $0x5a8] ss:$24 sps:$4 sm:$0xff]  }
  0xda   :  { %1981 = vmatpush1.bf16.msra.mxu0 %v3415_v10  ;;  %2032 = vmatprep.subr.bf16.mxu1 %v3425_v12  ;;  %v3512_v10 = vld [vmem:[#allocation5 + $0x2b4] ss:$24 sps:$4 sm:$0xff]   ;;  %v3510_v12 = vld [vmem:[#allocation5 + $0x2b0] ss:$24 sps:$4 sm:$0xff]  }
  0xdb   :  { %2114 = vmatprep.subr.bf16.mxu0 %v3428_v13  ;;  %v3515_v13 = vld [vmem:[#allocation5 + $0x5dc] ss:$24 sps:$4 sm:$0xff]  }
  0xdc   :  { %2024 = vmatmul.mubr.bf16.vlgmr.msra.gmra.mrb[4].mxu1 %v3969_v6 }
  0xdd   :  { %1983 = vmatmul.mubr.bf16.vlgmr.msra.gmra.mrb[0].mxu0 %v3985_v14  ;;  %2033 = vmatpush1.bf16.msra.mxu1 %v3423_v15  ;;  %v3518_v15 = vld [vmem:[#allocation5 + $0x2e4] ss:$24 sps:$4 sm:$0xff]  }
  0xde   :  { %2115 = vmatpush1.bf16.msra.mxu0 %v3426_v16  ;;  %2034 = vmatprep.subr.bf16.mxu1 %v3431_v17  ;;  %v3513_v16 = vld [vmem:[#allocation5 + $0x5d8] ss:$24 sps:$4 sm:$0xff]  }
  0xdf   :  { %2116 = vmatprep.subr.bf16.mxu0 %v3434_v18  ;;  %2064 = vmatprep.mubr.bf16.mxu1 %v3965_v51  ;;  %v3516_v17 = vld [vmem:[#allocation5 + $0x2e0] ss:$24 sps:$4 sm:$0xff]   ;;  %v3521_v18 = vld [vmem:[#allocation5 + $0x60c] ss:$24 sps:$4 sm:$0xff]  }
  0xe0   :  { %2146 = vmatprep.mubr.bf16.mxu0 %v3963_v47  ;;  %v3450_v47 = vld [vmem:[#allocation5 + $0xd0] ss:$24 sps:$4 sm:$0xff]  }
  0xe1   :  { %2035 = vmatpush1.bf16.msra.mxu1 %v3429_v19  ;;  %v3524_v19 = vld [vmem:[#allocation5 + $0x314] ss:$24 sps:$4 sm:$0xff]  }
  0xe2   :  { %2117 = vmatpush1.bf16.msra.mxu0 %v3432_v20  ;;  %2036 = vmatprep.subr.bf16.mxu1 %v3437_v21  ;;  %v3519_v20 = vld [vmem:[#allocation5 + $0x608] ss:$24 sps:$4 sm:$0xff]  }
  0xe3   :  { %2118 = vmatprep.subr.bf16.mxu0 %v3440_v22  ;;  %v3522_v21 = vld [vmem:[#allocation5 + $0x310] ss:$24 sps:$4 sm:$0xff]   ;;  %v3527_v22 = vld [vmem:[#allocation5 + $0x63c] ss:$24 sps:$4 sm:$0xff]  }
  0xe5   :  { %2037 = vmatpush1.bf16.msra.mxu1 %v3435_v23  ;;  %v3530_v23 = vld [vmem:[#allocation5 + $0x344] ss:$24 sps:$4 sm:$0xff]  }
  0xe6   :  { %2119 = vmatpush1.bf16.msra.mxu0 %v3438_v24  ;;  %2038 = vmatprep.subr.bf16.mxu1 %v3443_v25  ;;  %v3525_v24 = vld [vmem:[#allocation5 + $0x638] ss:$24 sps:$4 sm:$0xff]  }
  0xe7   :  { %2120 = vmatprep.subr.bf16.mxu0 %v3446_v26  ;;  %v3528_v25 = vld [vmem:[#allocation5 + $0x340] ss:$24 sps:$4 sm:$0xff]   ;;  %v3533_v26 = vld [vmem:[#allocation5 + $0x66c] ss:$24 sps:$4 sm:$0xff]  }
  0xe9   :  { %2039 = vmatpush1.bf16.msra.mxu1 %v3441_v27  ;;  %v3536_v27 = vld [vmem:[#allocation5 + $0x374] ss:$24 sps:$4 sm:$0xff]  }
  0xea   :  { %2121 = vmatpush1.bf16.msra.mxu0 %v3444_v28  ;;  %2040 = vmatprep.subr.bf16.mxu1 %v3449_v29  ;;  %v3531_v28 = vld [vmem:[#allocation5 + $0x668] ss:$24 sps:$4 sm:$0xff]  }
  0xeb   :  { %2122 = vmatprep.subr.bf16.mxu0 %v3452_v30  ;;  %v3534_v29 = vld [vmem:[#allocation5 + $0x370] ss:$24 sps:$4 sm:$0xff]   ;;  %v3539_v30 = vld [vmem:[#allocation5 + $0x69c] ss:$24 sps:$4 sm:$0xff]  }
  0xed   :  { %2041 = vmatpush1.bf16.msra.mxu1 %v3447_v31  ;;  %v3537_v31 = vld [vmem:[#allocation5 + $0x698] ss:$24 sps:$4 sm:$0xff]  }
  0xee   :  { %2123 = vmatpush1.bf16.msra.mxu0 %v3450_v47  ;;  %2042 = vmatprep.subr.bf16.mxu1 %v3455_v32  ;;  %v3540_v47 = vld [vmem:[#allocation5 + $0x3a0] ss:$24 sps:$4 sm:$0xff]   ;;  %v3545_v32 = vld [vmem:[#allocation5 + $0x6cc] ss:$24 sps:$4 sm:$0xff]  }
  0xef   :  { %2124 = vmatprep.subr.bf16.mxu0 %v3458_v33  ;;  %v3548_v33 = vld [vmem:[#allocation5 + $0x3d4] ss:$24 sps:$4 sm:$0xff]  }
  0xf1   :  { %2043 = vmatpush1.bf16.msra.mxu1 %v3453_v35  ;;  %v3543_v35 = vld [vmem:[#allocation5 + $0x6c8] ss:$24 sps:$4 sm:$0xff]  }
  0xf2   :  { %2125 = vmatpush1.bf16.msra.mxu0 %v3456_v36  ;;  %2044 = vmatprep.subr.bf16.mxu1 %v3461_v37  ;;  %v3546_v36 = vld [vmem:[#allocation5 + $0x3d0] ss:$24 sps:$4 sm:$0xff]   ;;  %v3551_v37 = vld [vmem:[#allocation5 + $0x6fc] ss:$24 sps:$4 sm:$0xff]  }
  0xf3   :  { %2126 = vmatprep.subr.bf16.mxu0 %v3464_v38  ;;  %v3554_v38 = vld [vmem:[#allocation5 + $0x404] ss:$24 sps:$4 sm:$0xff]  }
  0xf5   :  { %2045 = vmatpush1.bf16.msra.mxu1 %v3459_v39  ;;  %v3552_v39 = vld [vmem:[#allocation5 + $0x400] ss:$24 sps:$4 sm:$0xff]  }
  0xf6   :  { %2127 = vmatpush1.bf16.msra.mxu0 %v3462_v40  ;;  %2046 = vmatprep.subr.bf16.mxu1 %v3467_v41  ;;  %v3557_v40 = vld [vmem:[#allocation5 + $0x72c] ss:$24 sps:$4 sm:$0xff]  }
  0xf7   :  { %2128 = vmatprep.subr.bf16.mxu0 %v3470_v42  ;;  %v3560_v41 = vld [vmem:[#allocation5 + $0x434] ss:$24 sps:$4 sm:$0xff]   ;;  %v3555_v42 = vld [vmem:[#allocation5 + $0x728] ss:$24 sps:$4 sm:$0xff]  }
  0xf9   :  { %2047 = vmatpush1.bf16.msra.mxu1 %v3465_v43  ;;  %v3558_v43 = vld [vmem:[#allocation5 + $0x430] ss:$24 sps:$4 sm:$0xff]  }
  0xfa   :  { %2129 = vmatpush1.bf16.msra.mxu0 %v3468_v44  ;;  %2048 = vmatprep.subr.bf16.mxu1 %v3473_v45  ;;  %v3563_v44 = vld [vmem:[#allocation5 + $0x75c] ss:$24 sps:$4 sm:$0xff]  }
  0xfb   :  { %2130 = vmatprep.subr.bf16.mxu0 %v3476_v46  ;;  %v3566_v45 = vld [vmem:[#allocation5 + $0x464] ss:$24 sps:$4 sm:$0xff]   ;;  %v3561_v46 = vld [vmem:[#allocation5 + $0x758] ss:$24 sps:$4 sm:$0xff]  }
  0xfd   :  { %2049 = vmatpush1.bf16.msra.mxu1 %v3471_v48  ;;  %v3564_v48 = vld [vmem:[#allocation5 + $0x460] ss:$24 sps:$4 sm:$0xff]  }
  0xfe   :  { %2131 = vmatpush1.bf16.msra.mxu0 %v3474_v49  ;;  %2050 = vmatprep.subr.bf16.mxu1 %v3479_v50  ;;  %v3569_v49 = vld [vmem:[#allocation5 + $0x78c] ss:$24 sps:$4 sm:$0xff]  }
  0xff   :  { %2132 = vmatprep.subr.bf16.mxu0 %v3482_v52  ;;  %v3572_v50 = vld [vmem:[#allocation5 + $0x494] ss:$24 sps:$4 sm:$0xff]   ;;  %v3567_v52 = vld [vmem:[#allocation5 + $0x788] ss:$24 sps:$4 sm:$0xff]  }
 0x101   :  { %2051 = vmatpush1.bf16.msra.mxu1 %v3477_v53  ;;  %v3570_v53 = vld [vmem:[#allocation5 + $0x490] ss:$24 sps:$4 sm:$0xff]  }
 0x102   :  { %2133 = vmatpush1.bf16.msra.mxu0 %v3480_v54  ;;  %2052 = vmatprep.subr.bf16.mxu1 %v3485_v55  ;;  %v3575_v54 = vld [vmem:[#allocation5 + $0x7bc] ss:$24 sps:$4 sm:$0xff]  }
 0x103   :  { %2134 = vmatprep.subr.bf16.mxu0 %v3488_v56  ;;  %v3578_v55 = vld [vmem:[#allocation5 + $0x4c4] ss:$24 sps:$4 sm:$0xff]   ;;  %v3573_v56 = vld [vmem:[#allocation5 + $0x7b8] ss:$24 sps:$4 sm:$0xff]  }
 0x105   :  { %2053 = vmatpush1.bf16.msra.mxu1 %v3483_v57  ;;  %v3576_v57 = vld [vmem:[#allocation5 + $0x4c0] ss:$24 sps:$4 sm:$0xff]  }
 0x106   :  { %2135 = vmatpush1.bf16.msra.mxu0 %v3486_v58  ;;  %2054 = vmatprep.subr.bf16.mxu1 %v3491_v59  ;;  %v3581_v58 = vld [vmem:[#allocation5 + $0x7ec] ss:$24 sps:$4 sm:$0xff]  }
 0x107   :  { %2136 = vmatprep.subr.bf16.mxu0 %v3494_v60  ;;  %v3584_v59 = vld [vmem:[#allocation5 + $0x4f4] ss:$24 sps:$4 sm:$0xff]   ;;  %v3579_v60 = vld [vmem:[#allocation5 + $0x7e8] ss:$24 sps:$4 sm:$0xff]  }
 0x109   :  { %2055 = vmatpush1.bf16.msra.mxu1 %v3489_v61  ;;  %v3582_v61 = vld [vmem:[#allocation5 + $0x4f0] ss:$24 sps:$4 sm:$0xff]  }
 0x10a   :  { %2137 = vmatpush1.bf16.msra.mxu0 %v3492_v62  ;;  %2056 = vmatprep.subr.bf16.mxu1 %v3497_v63  ;;  %v3587_v62 = vld [vmem:[#allocation5 + $0x81c] ss:$24 sps:$4 sm:$0xff]  }
 0x10b   :  { %2138 = vmatprep.subr.bf16.mxu0 %v3500_v0  ;;  %v3590_v63 = vld [vmem:[#allocation5 + $0x524] ss:$24 sps:$4 sm:$0xff]   ;;  %v3585_v0 = vld [vmem:[#allocation5 + $0x818] ss:$24 sps:$4 sm:$0xff]  }
 0x10d   :  { %2057 = vmatpush1.bf16.msra.mxu1 %v3495_v1  ;;  %v3588_v1 = vld [vmem:[#allocation5 + $0x520] ss:$24 sps:$4 sm:$0xff]  }
 0x10e   :  { %2139 = vmatpush1.bf16.msra.mxu0 %v3498_v2  ;;  %2058 = vmatprep.subr.bf16.mxu1 %v3503_v3  ;;  %v3593_v2 = vld [vmem:[#allocation5 + $0x84c] ss:$24 sps:$4 sm:$0xff]  }
 0x10f   :  { %2140 = vmatprep.subr.bf16.mxu0 %v3506_v4  ;;  %v3596_v3 = vld [vmem:[#allocation5 + $0x554] ss:$24 sps:$4 sm:$0xff]   ;;  %v3591_v4 = vld [vmem:[#allocation5 + $0x848] ss:$24 sps:$4 sm:$0xff]  }
 0x111   :  { %2059 = vmatpush1.bf16.msra.mxu1 %v3501_v5  ;;  %v3594_v5 = vld [vmem:[#allocation5 + $0x550] ss:$24 sps:$4 sm:$0xff]  }
 0x112   :  { %2141 = vmatpush1.bf16.msra.mxu0 %v3504_v8  ;;  %2060 = vmatprep.subr.bf16.mxu1 %v3509_v9  ;;  %v3599_v8 = vld [vmem:[#allocation5 + $0x87c] ss:$24 sps:$4 sm:$0xff]  }
 0x113   :  { %2142 = vmatprep.subr.bf16.mxu0 %v3512_v10  ;;  %v3602_v9 = vld [vmem:[#allocation5 + $0x584] ss:$24 sps:$4 sm:$0xff]   ;;  %v3597_v10 = vld [vmem:[#allocation5 + $0x878] ss:$24 sps:$4 sm:$0xff]  }
 0x115   :  { %2061 = vmatpush1.bf16.msra.mxu1 %v3507_v11  ;;  %v3600_v11 = vld [vmem:[#allocation5 + $0x580] ss:$24 sps:$4 sm:$0xff]  }
 0x116   :  { %2143 = vmatpush1.bf16.msra.mxu0 %v3510_v12  ;;  %2062 = vmatprep.subr.bf16.mxu1 %v3515_v13  ;;  %v3605_v12 = vld [vmem:[#allocation5 + $0x8ac] ss:$24 sps:$4 sm:$0xff]  }
 0x117   :  { %2144 = vmatprep.subr.bf16.mxu0 %v3518_v15  ;;  %v3608_v13 = vld [vmem:[#allocation5 + $0x5b4] ss:$24 sps:$4 sm:$0xff]   ;;  %v3603_v15 = vld [vmem:[#allocation5 + $0x8a8] ss:$24 sps:$4 sm:$0xff]  }
 0x119   :  { %2063 = vmatpush1.bf16.msra.mxu1 %v3513_v16  ;;  %v3606_v16 = vld [vmem:[#allocation5 + $0x5b0] ss:$24 sps:$4 sm:$0xff]  }
 0x11a   :  { %2145 = vmatpush1.bf16.msra.mxu0 %v3516_v17  ;;  %2073 = vmatprep.subr.bf16.mxu1 %v3521_v18  ;;  %v3611_v17 = vld [vmem:[#allocation5 + $0x8dc] ss:$24 sps:$4 sm:$0xff]  }
 0x11b   :  { %2155 = vmatprep.subr.bf16.mxu0 %v3524_v19  ;;  %v3614_v18 = vld [vmem:[#allocation5 + $0x5e4] ss:$24 sps:$4 sm:$0xff]   ;;  %v3609_v19 = vld [vmem:[#allocation5 + $0x8d8] ss:$24 sps:$4 sm:$0xff]  }
 0x11c   :  { %2065 = vmatmul.mubr.bf16.vlgmr.msra.gmra.mrb[4].mxu1 %v3971_v7 }
 0x11d   :  { %2147 = vmatmul.mubr.bf16.vlgmr.msra.gmra.mrb[4].mxu0 %v3969_v6  ;;  %2074 = vmatpush1.bf16.msra.mxu1 %v3519_v20  ;;  %v3542_v6 = vld [vmem:[#allocation5 + $0x3a4] ss:$24 sps:$4 sm:$0xff]   ;;  %v3612_v20 = vld [vmem:[#allocation5 + $0x5e0] ss:$24 sps:$4 sm:$0xff]  }
 0x11e   :  { %2156 = vmatpush1.bf16.msra.mxu0 %v3522_v21  ;;  %2075 = vmatprep.subr.bf16.mxu1 %v3527_v22  ;;  %v3617_v21 = vld [vmem:[#allocation5 + $0x614] ss:$24 sps:$4 sm:$0xff]  }
 0x11f   :  { %2157 = vmatprep.subr.bf16.mxu0 %v3530_v23  ;;  %2105 = vmatprep.mubr.bf16.mxu1 %v3980_v34  ;;  %v3663_v22 = vld [vmem:[#allocation8 + $0x40] sm:$0xff]  }
 0x120   :  { %2187 = vmatprep.mubr.bf16.mxu0 %v3965_v51  ;;  %v3549_v51 = vld [vmem:[#allocation5 + $0x6f8] ss:$24 sps:$4 sm:$0xff]  }
 0x121   :  { %2076 = vmatpush1.bf16.msra.mxu1 %v3525_v24  ;;  %v3615_v23 = vld [vmem:[#allocation5 + $0x610] ss:$24 sps:$4 sm:$0xff]   ;;  %v3620_v24 = vld [vmem:[#allocation5 + $0x644] ss:$24 sps:$4 sm:$0xff]  }
 0x122   :  { %2158 = vmatpush1.bf16.msra.mxu0 %v3528_v25  ;;  %2077 = vmatprep.subr.bf16.mxu1 %v3533_v26  ;;  %v3664_v25 = vld [vmem:[#allocation8] sm:$0xff]   ;;  %v3665_v26 = vld [vmem:[#allocation8 + $0x48] sm:$0xff]  }
 0x123   :  { %2159 = vmatprep.subr.bf16.mxu0 %v3536_v27  ;;  %v3618_v27 = vld [vmem:[#allocation5 + $0x640] ss:$24 sps:$4 sm:$0xff]  }
 0x125   :  { %2078 = vmatpush1.bf16.msra.mxu1 %v3531_v28  ;;  %v3623_v28 = vld [vmem:[#allocation5 + $0x674] ss:$24 sps:$4 sm:$0xff]  }
 0x126   :  { %2160 = vmatpush1.bf16.msra.mxu0 %v3534_v29  ;;  %2079 = vmatprep.subr.bf16.mxu1 %v3539_v30  ;;  %v3666_v29 = vld [vmem:[#allocation8 + $0x8] sm:$0xff]   ;;  %v3667_v30 = vld [vmem:[#allocation8 + $0x50] sm:$0xff]  }
 0x127   :  { %2161 = vmatprep.subr.bf16.mxu0 %v3542_v6  ;;  %v3621_v6 = vld [vmem:[#allocation5 + $0x670] ss:$24 sps:$4 sm:$0xff]  }
 0x129   :  { %2080 = vmatpush1.bf16.msra.mxu1 %v3537_v31  ;;  %v3626_v31 = vld [vmem:[#allocation5 + $0x6a4] ss:$24 sps:$4 sm:$0xff]  }
 0x12a   :  { %2162 = vmatpush1.bf16.msra.mxu0 %v3540_v47  ;;  %2081 = vmatprep.subr.bf16.mxu1 %v3545_v32  ;;  %v3668_v47 = vld [vmem:[#allocation8 + $0x10] sm:$0xff]   ;;  %v3669_v32 = vld [vmem:[#allocation8 + $0x58] sm:$0xff]  }
 0x12b   :  { %2163 = vmatprep.subr.bf16.mxu0 %v3548_v33  ;;  %v3629_v33 = vld [vmem:[#allocation5 + $0x6d4] ss:$24 sps:$4 sm:$0xff]  }
 0x12d   :  { %2082 = vmatpush1.bf16.msra.mxu1 %v3543_v35  ;;  %v3671_v35 = vld [vmem:[#allocation8 + $0x60] sm:$0xff]  }
 0x12e   :  { %2164 = vmatpush1.bf16.msra.mxu0 %v3546_v36  ;;  %2083 = vmatprep.subr.bf16.mxu1 %v3551_v37  ;;  %v3627_v36 = vld [vmem:[#allocation5 + $0x6d0] ss:$24 sps:$4 sm:$0xff]   ;;  %v3632_v37 = vld [vmem:[#allocation5 + $0x704] ss:$24 sps:$4 sm:$0xff]  }
 0x12f   :  { %2165 = vmatprep.subr.bf16.mxu0 %v3554_v38  ;;  %v3672_v38 = vld [vmem:[#allocation8 + $0x20] sm:$0xff]  }
 0x131   :  { %2084 = vmatpush1.bf16.msra.mxu1 %v3549_v51  ;;  %v3673_v51 = vld [vmem:[#allocation8 + $0x68] sm:$0xff]  }
 0x132   :  { %2166 = vmatpush1.bf16.msra.mxu0 %v3552_v39  ;;  %2085 = vmatprep.subr.bf16.mxu1 %v3557_v40  ;;  %v3630_v39 = vld [vmem:[#allocation5 + $0x700] ss:$24 sps:$4 sm:$0xff]   ;;  %v3635_v40 = vld [vmem:[#allocation5 + $0x734] ss:$24 sps:$4 sm:$0xff]  }
 0x133   :  { %2167 = vmatprep.subr.bf16.mxu0 %v3560_v41  ;;  %v3674_v41 = vld [vmem:[#allocation8 + $0x28] sm:$0xff]  }
 0x135   :  { %2086 = vmatpush1.bf16.msra.mxu1 %v3555_v42 }
 0x136   :  { %2168 = vmatpush1.bf16.msra.mxu0 %v3558_v43  ;;  %2087 = vmatprep.subr.bf16.mxu1 %v3563_v44  ;;  %v3675_v43 = vld [vmem:[#allocation8 + $0x70] sm:$0xff]  }
 0x137   :  { %2169 = vmatprep.subr.bf16.mxu0 %v3566_v45  ;;  %v3633_v45 = vld [vmem:[#allocation5 + $0x730] ss:$24 sps:$4 sm:$0xff]  }
 0x139   :  { %2088 = vmatpush1.bf16.msra.mxu1 %v3561_v46 }
 0x13a   :  { %2170 = vmatpush1.bf16.msra.mxu0 %v3564_v48  ;;  %2089 = vmatprep.subr.bf16.mxu1 %v3569_v49  ;;  %v3638_v48 = vld [vmem:[#allocation5 + $0x764] ss:$24 sps:$4 sm:$0xff]  }
 0x13b   :  { %2171 = vmatprep.subr.bf16.mxu0 %v3572_v50  ;;  %v3676_v50 = vld [vmem:[#allocation8 + $0x30] sm:$0xff]  }
 0x13d   :  { %2090 = vmatpush1.bf16.msra.mxu1 %v3567_v52  ;;  %v3677_v52 = vld [vmem:[#allocation8 + $0x78] sm:$0xff]  }
 0x13e   :  { %2172 = vmatpush1.bf16.msra.mxu0 %v3570_v53  ;;  %2091 = vmatprep.subr.bf16.mxu1 %v3575_v54  ;;  %v3636_v53 = vld [vmem:[#allocation5 + $0x760] ss:$24 sps:$4 sm:$0xff]   ;;  %v3641_v54 = vld [vmem:[#allocation5 + $0x794] ss:$24 sps:$4 sm:$0xff]  }
 0x13f   :  { %2173 = vmatprep.subr.bf16.mxu0 %v3578_v55  ;;  %v3678_v55 = vld [vmem:[#allocation8 + $0x38] sm:$0xff]  }
 0x141   :  { %2092 = vmatpush1.bf16.msra.mxu1 %v3573_v56  ;;  %v3679_v56 = vld [vmem:[#allocation8 + $0xc0] sm:$0xff]  }
 0x142   :  { %2174 = vmatpush1.bf16.msra.mxu0 %v3576_v57  ;;  %2093 = vmatprep.subr.bf16.mxu1 %v3581_v58  ;;  %v3639_v57 = vld [vmem:[#allocation5 + $0x790] ss:$24 sps:$4 sm:$0xff]   ;;  %v3644_v58 = vld [vmem:[#allocation5 + $0x7c4] ss:$24 sps:$4 sm:$0xff]  }
 0x143   :  { %2175 = vmatprep.subr.bf16.mxu0 %v3584_v59  ;;  %v3642_v59 = vld [vmem:[#allocation5 + $0x7c0] ss:$24 sps:$4 sm:$0xff]  }
 0x145   :  { %2094 = vmatpush1.bf16.msra.mxu1 %v3579_v60  ;;  %v3647_v60 = vld [vmem:[#allocation5 + $0x7f4] ss:$24 sps:$4 sm:$0xff]  }
 0x146   :  { %2176 = vmatpush1.bf16.msra.mxu0 %v3582_v61  ;;  %2095 = vmatprep.subr.bf16.mxu1 %v3587_v62  ;;  %v3645_v61 = vld [vmem:[#allocation5 + $0x7f0] ss:$24 sps:$4 sm:$0xff]   ;;  %v3650_v62 = vld [vmem:[#allocation5 + $0x824] ss:$24 sps:$4 sm:$0xff]  }
 0x147   :  { %2177 = vmatprep.subr.bf16.mxu0 %v3590_v63  ;;  %v3648_v63 = vld [vmem:[#allocation5 + $0x820] ss:$24 sps:$4 sm:$0xff]  }
 0x149   :  { %2096 = vmatpush1.bf16.msra.mxu1 %v3585_v0  ;;  %v3653_v0 = vld [vmem:[#allocation5 + $0x854] ss:$24 sps:$4 sm:$0xff]  }
 0x14a   :  { %2178 = vmatpush1.bf16.msra.mxu0 %v3588_v1  ;;  %2097 = vmatprep.subr.bf16.mxu1 %v3593_v2  ;;  %v3651_v1 = vld [vmem:[#allocation5 + $0x850] ss:$24 sps:$4 sm:$0xff]   ;;  %v3656_v2 = vld [vmem:[#allocation5 + $0x884] ss:$24 sps:$4 sm:$0xff]  }
 0x14b   :  { %2179 = vmatprep.subr.bf16.mxu0 %v3596_v3  ;;  %v3654_v3 = vld [vmem:[#allocation5 + $0x880] ss:$24 sps:$4 sm:$0xff]  }
 0x14d   :  { %2098 = vmatpush1.bf16.msra.mxu1 %v3591_v4  ;;  %v3659_v4 = vld [vmem:[#allocation5 + $0x8b4] ss:$24 sps:$4 sm:$0xff]  }
 0x14e   :  { %2180 = vmatpush1.bf16.msra.mxu0 %v3594_v5  ;;  %2099 = vmatprep.subr.bf16.mxu1 %v3599_v8  ;;  %v3657_v5 = vld [vmem:[#allocation5 + $0x8b0] ss:$24 sps:$4 sm:$0xff]   ;;  %v3662_v8 = vld [vmem:[#allocation5 + $0x8e4] ss:$24 sps:$4 sm:$0xff]  }
 0x14f   :  { %2181 = vmatprep.subr.bf16.mxu0 %v3602_v9  ;;  %v3660_v9 = vld [vmem:[#allocation5 + $0x8e0] ss:$24 sps:$4 sm:$0xff]  }
 0x151   :  { %2100 = vmatpush1.bf16.msra.mxu1 %v3597_v10  ;;  %v377_v10 = vlaneseq }
 0x152   :  { %2182 = vmatpush1.bf16.msra.mxu0 %v3600_v11  ;;  %2101 = vmatprep.subr.bf16.mxu1 %v3605_v12 }
 0x153   :  { %2183 = vmatprep.subr.bf16.mxu0 %v3608_v13  ;;  %v4001_v11 = vshrl.u32 %v377_v10, 7  ;;  %v4004_v13 = vld [vmem:[#allocation7] sm:$0x3f] }
 0x155   :  { %2102 = vmatpush1.bf16.msra.mxu1 %v3603_v15  ;;  %v379_v12 = vsub.s32 0, %v4001_v11  ;;  %v383_v15 = vsub.s32 1, %v4001_v11  ;;  %v395_v10 = vsub.s32 4, %v4001_v11 }
 0x156   :  { %2184 = vmatpush1.bf16.msra.mxu0 %v3606_v16  ;;  %2103 = vmatprep.subr.bf16.mxu1 %v3611_v17 }
 0x157   :  { %2185 = vmatprep.subr.bf16.mxu0 %v3614_v18  ;;  %v380_v16 = vrot.slane %v4004_v13, %v379_v12  ;;  %v384_v17 = vrot.slane %v4004_v13, %v383_v15  ;;  %v399_v12 = vsub.s32 5, %v4001_v11  ;;  %v396_v15 = vrot.slane %v4004_v13, %v395_v10 }
 0x159   :  { %2104 = vmatpush1.bf16.msra.mxu1 %v3609_v19 }
 0x15a   :  { %2186 = vmatpush1.bf16.msra.mxu0 %v3612_v20  ;;  %3121 = vmatprep.subr.bf16.mxu1 %v3663_v22 }
 0x15b   :  { %2196 = vmatprep.subr.bf16.mxu0 %v3617_v21 }
 0x15c   :  { %2106 = vmatmul.mubr.bf16.vlgmr.msra.gmra.mrb[4].mxu1 %v3985_v14 }
 0x15d   :  { %2188 = vmatmul.mubr.bf16.vlgmr.msra.gmra.mrb[4].mxu0 %v3971_v7  ;;  %3122 = vmatpush3.bf16.msra.mxu1 %v3664_v25  ;;  %v3624_v7 = vld [vmem:[#allocation5 + $0x6a0] ss:$24 sps:$4 sm:$0xff]  }
 0x15e   :  { %2197 = vmatpush1.bf16.msra.mxu0 %v3615_v23  ;;  %2228 = vmatprep.mubr.bf16.mxu0 %v3980_v34  ;;  %v3670_v34 = vld [vmem:[#allocation8 + $0x18] sm:$0xff]  }
 0x15f   :  { %2198 = vmatprep.subr.bf16.mxu0 %v3620_v24  ;;  %3123 = vmatprep.subr.bf16.mxu1 %v3665_v26 }
 0x161   :  { %3124 = vmatpush3.bf16.msra.mxu1 %v3666_v29 }
 0x162   :  { %2199 = vmatpush1.bf16.msra.mxu0 %v3618_v27  ;;  %3125 = vmatprep.subr.bf16.mxu1 %v3667_v30  ;;  %v3681_v30 = vld [vmem:[#allocation8 + $0xc8] sm:$0xff]  }
 0x163   :  { %2200 = vmatprep.subr.bf16.mxu0 %v3623_v28  ;;  %v3680_v28 = vld [vmem:[#allocation8 + $0x80] sm:$0xff]  }
 0x165   :  { %3126 = vmatpush3.bf16.msra.mxu1 %v3668_v47  ;;  %v3684_v47 = vld [vmem:[#allocation8 + $0x90] sm:$0xff]  }
 0x166   :  { %2201 = vmatpush1.bf16.msra.mxu0 %v3621_v6  ;;  %3127 = vmatprep.subr.bf16.mxu1 %v3669_v32  ;;  %v3682_v6 = vld [vmem:[#allocation8 + $0x88] sm:$0xff]   ;;  %v3685_v32 = vld [vmem:[#allocation8 + $0xd8] sm:$0xff]  }
 0x167   :  { %2202 = vmatprep.subr.bf16.mxu0 %v3626_v31  ;;  %v3683_v31 = vld [vmem:[#allocation8 + $0xd0] sm:$0xff]  }
 0x169   :  { %3128 = vmatpush3.bf16.msra.mxu1 %v3670_v34  ;;  %v3688_v34 = vld [vmem:[#allocation8 + $0xa0] sm:$0xff]  }
 0x16a   :  { %2203 = vmatpush1.bf16.msra.mxu0 %v3624_v7  ;;  %3129 = vmatprep.subr.bf16.mxu1 %v3671_v35  ;;  %v3686_v7 = vld [vmem:[#allocation8 + $0x98] sm:$0xff]   ;;  %v3689_v35 = vld [vmem:[#allocation8 + $0xe8] sm:$0xff]  }
 0x16b   :  { %2204 = vmatprep.subr.bf16.mxu0 %v3629_v33  ;;  %v3687_v33 = vld [vmem:[#allocation8 + $0xe0] sm:$0xff]  }
 0x16d   :  { %3130 = vmatpush3.bf16.msra.mxu1 %v3672_v38  ;;  %v3692_v38 = vld [vmem:[#allocation8 + $0xb0] sm:$0xff]  }
 0x16e   :  { %2205 = vmatpush1.bf16.msra.mxu0 %v3627_v36  ;;  %3131 = vmatprep.subr.bf16.mxu1 %v3673_v51  ;;  %v3690_v36 = vld [vmem:[#allocation8 + $0xa8] sm:$0xff]   ;;  %v3693_v51 = vld [vmem:[#allocation8 + $0xf8] sm:$0xff]  }
 0x16f   :  { %2206 = vmatprep.subr.bf16.mxu0 %v3632_v37  ;;  %v3998_v42 = vpop.f32.mrb[0].mxu1  ;;  %v3691_v37 = vld [vmem:[#allocation8 + $0xf0] sm:$0xff]  }
 0x170   :  { %v1904_v44 = vpop.f32.mrb[1].mxu1  ;;  %v1903_v18 = vadd.f32 %v3998_v42, %v380_v16  ;;  %v391_v42 = vsub.s32 3, %v4001_v11  ;;  %v400_v16 = vrot.slane %v4004_v13, %v399_v12 }
 0x171   :  { %v1906_v46 = vpop.f32.mrb[2].mxu1  ;;  %3132 = vmatpush3.bf16.msra.mxu1 %v3674_v41  ;;  %v1905_v19 = vadd.f32 %v1904_v44, %v384_v17  ;;  %v387_v41 = vsub.s32 2, %v4001_v11 }
 0x172   :  { %2207 = vmatpush1.bf16.msra.mxu0 %v3630_v39  ;;  %v1907_v49 = vpop.f32.mrb[3].mxu1  ;;  %3133 = vmatprep.subr.bf16.mxu1 %v3675_v43  ;;  %v3694_v39 = vld [vmem:[#allocation8 + $0xb8] sm:$0xff]   ;;  %v392_v44 = vrot.slane %v4004_v13, %v391_v42 }
 0x173   :  { %2208 = vmatprep.subr.bf16.mxu0 %v3635_v40  ;;  %v3695_v40 = vld [vmem:[#allocation8 + $0x140] sm:$0xff]   ;;  %v388_v43 = vrot.slane %v4004_v13, %v387_v41 }
 0x174   :  { %v3072_v13 = vld [vmem:[#allocation10] ss:$0 sm:$0xff] }
 0x175   :  { %3134 = vmatpush3.bf16.msra.mxu1 %v3676_v50 }
 0x176   :  { %2209 = vmatpush1.bf16.msra.mxu0 %v3633_v45  ;;  %3135 = vmatprep.subr.bf16.mxu1 %v3677_v52 }
 0x177   :  { %2210 = vmatprep.subr.bf16.mxu0 %v3638_v48 }
 0x179   :  { %3136 = vmatpush3.bf16.msra.mxu1 %v3678_v55 }
 0x17a   :  { %2211 = vmatpush1.bf16.msra.mxu0 %v3636_v53  ;;  %3143 = vmatprep.subr.bf16.mxu1 %v3679_v56  ;;  %v3696_v56 = vld [vmem:[#allocation8 + $0x100] sm:$0xff]  }
 0x17b   :  { %2212 = vmatprep.subr.bf16.mxu0 %v3641_v54 }
 0x17e   :  { %2213 = vmatpush1.bf16.msra.mxu0 %v3639_v57 }
 0x17f   :  { %2214 = vmatprep.subr.bf16.mxu0 %v3644_v58  ;;  %v3697_v58 = vld [vmem:[#allocation8 + $0x148] sm:$0xff]  }
 0x182   :  { %2215 = vmatpush1.bf16.msra.mxu0 %v3642_v59  ;;  %v3698_v59 = vld [vmem:[#allocation8 + $0x108] sm:$0xff]  }
 0x183   :  { %2216 = vmatprep.subr.bf16.mxu0 %v3647_v60  ;;  %v3699_v60 = vld [vmem:[#allocation8 + $0x150] sm:$0xff]  }
 0x186   :  { %2217 = vmatpush1.bf16.msra.mxu0 %v3645_v61  ;;  %v3700_v61 = vld [vmem:[#allocation8 + $0x110] sm:$0xff]  }
 0x187   :  { %2218 = vmatprep.subr.bf16.mxu0 %v3650_v62  ;;  %v3701_v62 = vld [vmem:[#allocation8 + $0x158] sm:$0xff]  }
 0x18a   :  { %2219 = vmatpush1.bf16.msra.mxu0 %v3648_v63  ;;  %v3702_v63 = vld [vmem:[#allocation8 + $0x118] sm:$0xff]  }
 0x18b   :  { %2220 = vmatprep.subr.bf16.mxu0 %v3653_v0  ;;  %v3703_v0 = vld [vmem:[#allocation8 + $0x160] sm:$0xff]  }
 0x18e   :  { %2221 = vmatpush1.bf16.msra.mxu0 %v3651_v1  ;;  %v3704_v1 = vld [vmem:[#allocation8 + $0x120] sm:$0xff]  }
 0x18f   :  { %2222 = vmatprep.subr.bf16.mxu0 %v3656_v2  ;;  %v3705_v2 = vld [vmem:[#allocation8 + $0x168] sm:$0xff]  }
 0x192   :  { %2223 = vmatpush1.bf16.msra.mxu0 %v3654_v3  ;;  %v3706_v3 = vld [vmem:[#allocation8 + $0x128] sm:$0xff]  }
 0x193   :  { %2224 = vmatprep.subr.bf16.mxu0 %v3659_v4  ;;  %v3707_v4 = vld [vmem:[#allocation8 + $0x170] sm:$0xff]  }
 0x196   :  { %2225 = vmatpush1.bf16.msra.mxu0 %v3657_v5  ;;  %v3708_v5 = vld [vmem:[#allocation8 + $0x130] sm:$0xff]  }
 0x197   :  { %2226 = vmatprep.subr.bf16.mxu0 %v3662_v8  ;;  %v3709_v8 = vld [vmem:[#allocation8 + $0x178] sm:$0xff]  }
 0x19a   :  { %2227 = vmatpush1.bf16.msra.mxu0 %v3660_v9  ;;  %v3710_v9 = vld [vmem:[#allocation8 + $0x138] sm:$0xff]  }
 0x19d   :  { %2229 = vmatmul.mubr.bf16.vlgmr.msra.gmra.mrb[4].mxu0 %v3985_v14 }
 0x1b0   :  { %v1984_v20 = vpop.f32.mrb[0].mxu0 }
 0x1b1   :  { %v3188_v21 = vadd.f32 %v1984_v20, %v1903_v18  ;;  %v1986_v22 = vpop.f32.mrb[1].mxu0 }
 0x1b2   :  { %v3190_v14 = vadd.f32 %v1986_v22, %v1905_v19  ;;  %v1988_v23 = vpop.f32.mrb[2].mxu0 }
 0x1b3   :  { %3711 = vtanh.f32 %v3188_v21  ;;  %v1989_v24 = vpop.f32.mrb[3].mxu0 }
 0x1b4   :  { %3713 = vtanh.f32 %v3190_v14 }
 0x1bd   :  { %v3712_v25 = vpop.eup %3711 }
 0x1be   :  { %v3714_v26 = vpop.eup %3713  ;;  %v2243_v29 = vpack.c.bf16 %v3712_v25, %v3712_v25 }
 0x1bf   :  { %v2244_v27 = vpack.c.bf16 %v3714_v26, %v3714_v26 }
 0x1c1   :  { %2672 = vmatprep.mubr.bf16.mxu1 %v2244_v27 }
 0x1c2   :  { %2673 = vmatmul.mubr.bf16.vlgmr.msra.gmra.mrb[8].mxu1 %v2243_v29 }
 0x1c3   :  { %3144 = vmatpush3.bf16.msra.mxu1 %v3680_v28 }
 0x1c4   :  { %3145 = vmatprep.subr.bf16.mxu1 %v3681_v30 }
 0x1c7   :  { %3146 = vmatpush3.bf16.msra.mxu1 %v3682_v6 }
 0x1c8   :  { %3147 = vmatprep.subr.bf16.mxu1 %v3683_v31 }
 0x1cb   :  { %3148 = vmatpush3.bf16.msra.mxu1 %v3684_v47 }
 0x1cc   :  { %3149 = vmatprep.subr.bf16.mxu1 %v3685_v32 }
 0x1cf   :  { %3150 = vmatpush3.bf16.msra.mxu1 %v3686_v7 }
 0x1d0   :  { %3151 = vmatprep.subr.bf16.mxu1 %v3687_v33 }
 0x1d3   :  { %3152 = vmatpush3.bf16.msra.mxu1 %v3688_v34 }
 0x1d4   :  { %3153 = vmatprep.subr.bf16.mxu1 %v3689_v35 }
 0x1d7   :  { %3154 = vmatpush3.bf16.msra.mxu1 %v3690_v36 }
 0x1d8   :  { %3155 = vmatprep.subr.bf16.mxu1 %v3691_v37 }
 0x1db   :  { %3156 = vmatpush3.bf16.msra.mxu1 %v3692_v38 }
 0x1dc   :  { %3157 = vmatprep.subr.bf16.mxu1 %v3693_v51 }
 0x1df   :  { %3158 = vmatpush3.bf16.msra.mxu1 %v3694_v39 }
 0x1e0   :  { %3165 = vmatprep.subr.bf16.mxu1 %v3695_v40 }
 0x22f   :  { %v2107_v45 = vpop.f32.mrb[4].mxu1 }
 0x230   :  { %v3191_v46 = vadd.f32 %v2107_v45, %v388_v43  ;;  %v2109_v48 = vpop.f32.mrb[5].mxu1 }
 0x231   :  { %v3192_v49 = vadd.f32 %v2109_v48, %v392_v44  ;;  %v2111_v50 = vpop.f32.mrb[6].mxu1 }
 0x232   :  { %3715 = vtanh.f32 %v3191_v46  ;;  %v2112_v52 = vpop.f32.mrb[7].mxu1 }
 0x233   :  { %3717 = vtanh.f32 %v3192_v49 }
 0x23c   :  { %v3716_v53 = vpop.eup %3715 }
 0x23d   :  { %v3718_v54 = vpop.eup %3717  ;;  %v2245_v57 = vpack.c.bf16 %v3716_v53, %v3716_v53 }
 0x23e   :  { %v2246_v55 = vpack.c.bf16 %v3718_v54, %v3718_v54 }
 0x240   :  { %2712 = vmatprep.mubr.bf16.mxu1 %v2246_v55 }
 0x241   :  { %2713 = vmatmul.mubr.bf16.vlgmr.msra.gmra.mrb[12].mxu1 %v2245_v57 }
 0x242   :  { %3166 = vmatpush3.bf16.msra.mxu1 %v3696_v56 }
 0x243   :  { %3167 = vmatprep.subr.bf16.mxu1 %v3697_v58 }
 0x246   :  { %3168 = vmatpush3.bf16.msra.mxu1 %v3698_v59 }
 0x247   :  { %3169 = vmatprep.subr.bf16.mxu1 %v3699_v60 }
 0x24a   :  { %3170 = vmatpush3.bf16.msra.mxu1 %v3700_v61 }
 0x24b   :  { %3171 = vmatprep.subr.bf16.mxu1 %v3701_v62 }
 0x24e   :  { %3172 = vmatpush3.bf16.msra.mxu1 %v3702_v63 }
 0x24f   :  { %3173 = vmatprep.subr.bf16.mxu1 %v3703_v0 }
 0x252   :  { %3174 = vmatpush3.bf16.msra.mxu1 %v3704_v1 }
 0x253   :  { %3175 = vmatprep.subr.bf16.mxu1 %v3705_v2 }
 0x256   :  { %3176 = vmatpush3.bf16.msra.mxu1 %v3706_v3 }
 0x257   :  { %3177 = vmatprep.subr.bf16.mxu1 %v3707_v4 }
 0x25a   :  { %3178 = vmatpush3.bf16.msra.mxu1 %v3708_v5 }
 0x25b   :  { %3179 = vmatprep.subr.bf16.mxu1 %v3709_v8 }
 0x25e   :  { %3180 = vmatpush3.bf16.msra.mxu1 %v3710_v9 }
 0x270   :  { %v2230_v17 = vpop.f32.mrb[4].mxu0 }
 0x271   :  { %v3193_v18 = vadd.f32 %v2230_v17, %v396_v15  ;;  %v2232_v19 = vpop.f32.mrb[5].mxu0 }
 0x272   :  { %v3194_v20 = vadd.f32 %v2232_v19, %v400_v16  ;;  %v2234_v21 = vpop.f32.mrb[6].mxu0 }
 0x273   :  { %3719 = vtanh.f32 %v3193_v18  ;;  %v2235_v22 = vpop.f32.mrb[7].mxu0 }
 0x274   :  { %3721 = vtanh.f32 %v3194_v20 }
 0x27d   :  { %v3720_v14 = vpop.eup %3719 }
 0x27e   :  { %v3722_v23 = vpop.eup %3721  ;;  %v2247_v25 = vpack.c.bf16 %v3720_v14, %v3720_v14 }
 0x27f   :  { %v2248_v24 = vpack.c.bf16 %v3722_v23, %v3722_v23 }
 0x281   :  { %2752 = vmatprep.mubr.bf16.mxu1 %v2248_v24 }
 0x282   :  { %2753 = vmatmul.mubr.bf16.vlgmr.msra.gmra.mrb[16].mxu1 %v2247_v25 }
 0x295   :  { %v3137_v26 = vpop.f32.mrb[8].mxu1 }
 0x296   :  { %v3138_v11 = vpop.f32.mrb[9].mxu1 }
 0x297   :  { %v3139_v27 = vadd.f32 %v3138_v11, %v3137_v26  ;;  %v3140_v28 = vpop.f32.mrb[10].mxu1 }
 0x298   :  { %v3141_v29 = vpop.f32.mrb[11].mxu1 }
 0x299   :  { %v2675_v31 = vadd.f32 %v3139_v27, %v3072_v13 }
 0x314   :  { %v3159_v30 = vpop.f32.mrb[12].mxu1 }
 0x315   :  { %v3160_v6 = vpop.f32.mrb[13].mxu1 }
 0x316   :  { %v3161_v47 = vadd.f32 %v3160_v6, %v3159_v30  ;;  %v3162_v32 = vpop.f32.mrb[14].mxu1 }
 0x317   :  { %v3163_v7 = vpop.f32.mrb[15].mxu1 }
 0x318   :  { %v2715_v33 = vadd.f32 %v3161_v47, %v2675_v31 }
 0x355   :  { %v3181_v34 = vpop.f32.mrb[16].mxu1 }
 0x356   :  { %v3182_v35 = vpop.f32.mrb[17].mxu1 }
 0x357   :  { %v3183_v36 = vadd.f32 %v3182_v35, %v3181_v34  ;;  %v3184_v37 = vpop.f32.mrb[18].mxu1 }
 0x358   :  { %v3185_v38 = vpop.f32.mrb[19].mxu1 }
 0x359   :  { %v2755_v51 = vadd.f32 %v3183_v36, %v2715_v33 }
 0x35b   :  { %2760 = vst [vmem:[#allocation11] sm:$0xff] %v2755_v51 }
 0x35c   :  { %3844 = shalt.err (!%p3841_p2)
}
 0x35d   :  { %s3845_s6 = scalar_lea.hbm %s4035_s5, 128 }
 0x35e   :  { %p3846_p3 = scmp.ne.s32.totalorder %s4035_s5, %s3845_s6  ;;  %p3849_p4 = scmp.lt.u32.totalorder %s3845_s6, %s4035_s5 }
 0x360   :  { %p3851_p5 = pnand %p3849_p4, %p3846_p3 }
 0x362   :  { %3854 = shalt.err (!%p3851_p5)
}
 0x363   :  { %2770 = dma.vmem_to_hbm [thread:$0]  %s2768_s28, 128, %s4035_s5, [#allocation4]  }
 0x364   :  { %3861 = dma.done.wait [#allocation4], 128  }
 0x365   :  { %3862 = vsyncadd [#allocation4], 4294967168 }
 0x366   :  { %2774 = vsyncpa [#allocation3], 1 }
 0x367   :  { %2775 = vsyncpa [#allocation6], 1 }
 0x368   :  { %2776 = vsyncpa [#allocation9], 1 }
 0x369   :  { %2777 = vsyncpa [#allocation4], 1 }

// kernel: tpu_custom_call.1
= control target key start
LH: loop header
LB: loop body
LE: loop exit
PB: predicated region body
PF: predicated region fallthrough
CT: control target
= control target key end

     0   :  { %10 = vsyncpa [#allocation3], 0  ;;  %s4030_s0 = inlined_call_operand.hbm [shape: bf16[8,768], index: 0, kind: input, shape index: {}]   ;;  %s4031_s1 = inlined_call_operand.hbm [shape: bf16[768,768], index: 1, kind: input, shape index: {}]   ;;  %s4032_s2 = inlined_call_operand.hbm [shape: f32[1,768], index: 2, kind: input, shape index: {}]   ;;  %s4033_s3 = inlined_call_operand.hbm [shape: bf16[768,128], index: 3, kind: input, shape index: {}]   ;;  %s4034_s4 = inlined_call_operand.hbm [shape: f32[1,128], index: 4, kind: input, shape index: {}]   ;;  %s4035_s5 = inlined_call_operand.hbm [shape: f32[8,128], index: 5, kind: output, shape index: {}]  }
   0x1   :  { %11 = vsyncpa [#allocation6], 0 }
   0x2   :  { %12 = vsyncpa [#allocation9], 0 }
   0x3   :  { %13 = vsyncpa [#allocation4], 0  ;;  %s3863_s18 = smov [#allocation5]   ;;  %s3723_s22 = scalar_lea.hbm %s4031_s1, 36864 }
   0x4   :  { %s29_s19 = sshll.u32 %s3863_s18, 4  ;;  %p3724_p0 = scmp.ne.s32.totalorder %s4031_s1, %s3723_s22  ;;  %s30_s19 = int_to_ptr.vmem [resolvable:$true] %s29_s19 }
   0x5   :  { %p3727_p1 = scmp.lt.u32.totalorder %s3723_s22, %s4031_s1 }
   0x7   :  { %p3729_p2 = pnand %p3727_p1, %p3724_p0 }
   0x9   :  { %3732 = shalt.err (!%p3729_p2)
}
   0xa   :  { %s3733_s27 = scalar_lea.vmem %s30_s19, 36864  ;;  %p3738_p4 = scmp.lt.s32.totalorder %s30_s19, %s30_s19 }
   0xb   :  { %p3734_p3 = scmp.ne.s32.totalorder %s30_s19, %s3733_s27  ;;  %p3739_p5 = scmp.lt.s32.totalorder %s3733_s27, %s3733_s27 }
   0xd   :  { %p3740_p6 = por %p3739_p5, %p3738_p4 }
   0xf   :  { %p3741_p7 = pnand %p3740_p6, %p3734_p3 }
  0x11   :  { %3744 = shalt.err (!%p3741_p7)
}
  0x12   :  { %s3864_s28 = smov 384   ;;  %s3865_s29 = smov 24  }
  0x13   :  { %35 = dma.hbm_to_vmem [thread:$0]  %s4031_s1, 36864, %s30_s19, [#allocation6], %s3864_s28, %s3864_s28, %s3865_s29  }
  0x14   :  { %s3866_s7 = smov [#allocation8]   ;;  %s3745_s11 = scalar_lea.hbm %s4033_s3, 6144 }
  0x15   :  { %s51_s8 = sshll.u32 %s3866_s7, 4  ;;  %p3746_p8 = scmp.ne.s32.totalorder %s4033_s3, %s3745_s11  ;;  %s52_s8 = int_to_ptr.vmem [resolvable:$true] %s51_s8 }
  0x16   :  { %p3749_p9 = scmp.lt.u32.totalorder %s3745_s11, %s4033_s3 }
  0x18   :  { %p3751_p10 = pnand %p3749_p9, %p3746_p8 }
  0x1a   :  { %3754 = shalt.err (!%p3751_p10)
}
  0x1b   :  { %s3755_s16 = scalar_lea.vmem %s52_s8, 6144  ;;  %p3760_p12 = scmp.lt.s32.totalorder %s52_s8, %s52_s8 }
  0x1c   :  { %p3756_p11 = scmp.ne.s32.totalorder %s52_s8, %s3755_s16  ;;  %p3761_p13 = scmp.lt.s32.totalorder %s3755_s16, %s3755_s16 }
  0x1e   :  { %p3762_p0 = por %p3761_p13, %p3760_p12 }
  0x20   :  { %p3763_p1 = pnand %p3762_p0, %p3756_p11 }
  0x22   :  { %3766 = shalt.err (!%p3763_p1)
}
  0x23   :  { %s3867_s1 = smov 64   ;;  %s3868_s17 = smov 4  }
  0x24   :  { %57 = dma.hbm_to_vmem [thread:$0]  %s4033_s3, 6144, %s52_s8, [#allocation9], %s3867_s1, %s3867_s1, %s3868_s17  }
  0x25   :  { %s3869_s20 = smov [#allocation2]   ;;  %s3870_s22 = smov [#allocation7]  }
  0x26   :  { %s20_s21 = sshll.u32 %s3869_s20, 4  ;;  %s42_s23 = sshll.u32 %s3870_s22, 4  ;;  %s21_s21 = int_to_ptr.vmem [resolvable:$true] %s20_s21  ;;  %s43_s23 = int_to_ptr.vmem [resolvable:$true] %s42_s23 }
  0x27   :  { %s3767_s26 = scalar_lea.hbm %s4030_s0, 384 }
  0x28   :  { %p3768_p2 = scmp.ne.s32.totalorder %s4030_s0, %s3767_s26  ;;  %p3771_p3 = scmp.lt.u32.totalorder %s3767_s26, %s4030_s0 }
  0x2a   :  { %p3773_p4 = pnand %p3771_p3, %p3768_p2 }
  0x2c   :  { %3776 = shalt.err (!%p3773_p4)
}
  0x2d   :  { %s3777_s3 = scalar_lea.vmem %s21_s21, 384  ;;  %p3782_p6 = scmp.lt.s32.totalorder %s21_s21, %s21_s21 }
  0x2e   :  { %p3778_p5 = scmp.ne.s32.totalorder %s21_s21, %s3777_s3  ;;  %p3783_p7 = scmp.lt.s32.totalorder %s3777_s3, %s3777_s3 }
  0x30   :  { %p3784_p8 = por %p3783_p7, %p3782_p6 }
  0x32   :  { %p3785_p9 = pnand %p3784_p8, %p3778_p5 }
  0x34   :  { %3788 = shalt.err (!%p3785_p9)
}
  0x35   :  { %23 = dma.hbm_to_vmem [thread:$0]  %s4030_s0, 384, %s21_s21, [#allocation3]  }
  0x36   :  { %s3789_s10 = scalar_lea.hbm %s4032_s2, 96 }
  0x37   :  { %p3790_p10 = scmp.ne.s32.totalorder %s4032_s2, %s3789_s10  ;;  %p3793_p11 = scmp.lt.u32.totalorder %s3789_s10, %s4032_s2 }
  0x39   :  { %p3795_p12 = pnand %p3793_p11, %p3790_p10 }
  0x3b   :  { %3798 = shalt.err (!%p3795_p12)
}
  0x3c   :  { %s3799_s15 = scalar_lea.vmem %s43_s23, 96  ;;  %p3804_p0 = scmp.lt.s32.totalorder %s43_s23, %s43_s23 }
  0x3d   :  { %p3800_p13 = scmp.ne.s32.totalorder %s43_s23, %s3799_s15  ;;  %p3805_p1 = scmp.lt.s32.totalorder %s3799_s15, %s3799_s15 }
  0x3f   :  { %p3806_p2 = por %p3805_p1, %p3804_p0 }
  0x41   :  { %p3807_p3 = pnand %p3806_p2, %p3800_p13 }
  0x43   :  { %3810 = shalt.err (!%p3807_p3)
}
  0x44   :  { %45 = dma.hbm_to_vmem [thread:$0]  %s4032_s2, 96, %s43_s23, [#allocation6]  }
  0x45   :  { %s3871_s1 = smov [#allocation10]   ;;  %s3811_s20 = scalar_lea.hbm %s4034_s4, 16 }
  0x46   :  { %s64_s17 = sshll.u32 %s3871_s1, 4  ;;  %p3812_p4 = scmp.ne.s32.totalorder %s4034_s4, %s3811_s20  ;;  %s65_s17 = int_to_ptr.vmem [resolvable:$true] %s64_s17 }
  0x47   :  { %p3815_p5 = scmp.lt.u32.totalorder %s3811_s20, %s4034_s4 }
  0x49   :  { %p3817_p6 = pnand %p3815_p5, %p3812_p4 }
  0x4b   :  { %3820 = shalt.err (!%p3817_p6)
}
  0x4c   :  { %s3821_s26 = scalar_lea.vmem %s65_s17, 16  ;;  %s3825_s2 = scalar_lea.vmem %s65_s17, 32 }
  0x4d   :  { %p3822_p7 = scmp.ne.s32.totalorder %s65_s17, %s3821_s26  ;;  %p3826_p8 = scmp.lt.s32.totalorder %s65_s17, %s65_s17 }
  0x4e   :  { %p3827_p9 = scmp.lt.s32.totalorder %s3825_s2, %s3821_s26 }
  0x50   :  { %p3828_p10 = por %p3827_p9, %p3826_p8 }
  0x52   :  { %p3829_p11 = pnand %p3828_p10, %p3822_p7 }
  0x54   :  { %3832 = shalt.err (!%p3829_p11)
}
  0x55   :  { %67 = dma.hbm_to_vmem [thread:$0]  %s4034_s4, 16, %s65_s17, [#allocation9]  }
  0x56   :  { %3855 = dma.done.wait [#allocation3], 384  }
  0x57   :  { %3856 = vsyncadd [#allocation3], 4294966912 }
  0x58   :  { %3857 = dma.done.wait [#allocation6], 36960  }
  0x59   :  { %3858 = vsyncadd [#allocation6], 4294930336 }
  0x5a   :  { %3859 = dma.done.wait [#allocation9], 6160  }
  0x5b   :  { %3860 = vsyncadd [#allocation9], 4294961136  ;;  %v3225_v0 = vld [vmem:[#allocation5 + $0x4] ss:$24 sps:$4 sm:$0xff]   ;;  %v3229_v2 = vld [vmem:[#allocation5] ss:$24 sps:$4 sm:$0xff]  }
  0x5c   :  { %v3227_v1 = vld [vmem:[#allocation5 + $0x304] ss:$24 sps:$4 sm:$0xff]   ;;  %1868 = vmatprep.subr.bf16.mxu1 %v3225_v0  ;;  %v3230_v3 = vld [vmem:[#allocation5 + $0x300] ss:$24 sps:$4 sm:$0xff]   ;;  %v3231_v4 = vld [vmem:[#allocation5 + $0x34] ss:$24 sps:$4 sm:$0xff]  }
  0x5d   :  { %1909 = vmatprep.subr.bf16.mxu0 %v3227_v1  ;;  %1869 = vmatpush1.bf16.msra.mxu1 %v3229_v2  ;;  %v3233_v5 = vld [vmem:[#allocation5 + $0x334] ss:$24 sps:$4 sm:$0xff]   ;;  %v3235_v6 = vld [vmem:[#allocation5 + $0x30] ss:$24 sps:$4 sm:$0xff]   ;;  %v3237_v8 = vld [vmem:[#allocation5 + $0x64] ss:$24 sps:$4 sm:$0xff]  }
  0x5e   :  { %1910 = vmatpush1.bf16.msra.mxu0 %v3230_v3  ;;  %1870 = vmatprep.subr.bf16.mxu1 %v3231_v4  ;;  %v3236_v7 = vld [vmem:[#allocation5 + $0x330] ss:$24 sps:$4 sm:$0xff]   ;;  %v3239_v9 = vld [vmem:[#allocation5 + $0x364] ss:$24 sps:$4 sm:$0xff]   ;;  %v3241_v10 = vld [vmem:[#allocation5 + $0x60] ss:$24 sps:$4 sm:$0xff]  }
  0x5f   :  { %1911 = vmatprep.subr.bf16.mxu0 %v3233_v5  ;;  %v3242_v11 = vld [vmem:[#allocation5 + $0x360] ss:$24 sps:$4 sm:$0xff]   ;;  %v3243_v12 = vld [vmem:[#allocation5 + $0x94] ss:$24 sps:$4 sm:$0xff]   ;;  %v3247_v14 = vld [vmem:[#allocation5 + $0x90] ss:$24 sps:$4 sm:$0xff]  }
  0x60   :  { %v3245_v13 = vld [vmem:[#allocation5 + $0x394] ss:$24 sps:$4 sm:$0xff]   ;;  %v3248_v15 = vld [vmem:[#allocation5 + $0x390] ss:$24 sps:$4 sm:$0xff]   ;;  %v3249_v16 = vld [vmem:[#allocation5 + $0xc4] ss:$24 sps:$4 sm:$0xff]  }
  0x61   :  { %1871 = vmatpush1.bf16.msra.mxu1 %v3235_v6  ;;  %v3251_v17 = vld [vmem:[#allocation5 + $0x3c4] ss:$24 sps:$4 sm:$0xff]   ;;  %v3253_v18 = vld [vmem:[#allocation5 + $0xc0] ss:$24 sps:$4 sm:$0xff]   ;;  %v3255_v20 = vld [vmem:[#allocation5 + $0xf4] ss:$24 sps:$4 sm:$0xff]  }
  0x62   :  { %1912 = vmatpush1.bf16.msra.mxu0 %v3236_v7  ;;  %1872 = vmatprep.subr.bf16.mxu1 %v3237_v8  ;;  %v3254_v19 = vld [vmem:[#allocation5 + $0x3c0] ss:$24 sps:$4 sm:$0xff]   ;;  %v3257_v21 = vld [vmem:[#allocation5 + $0x3f4] ss:$24 sps:$4 sm:$0xff]   ;;  %v3259_v22 = vld [vmem:[#allocation5 + $0xf0] ss:$24 sps:$4 sm:$0xff]  }
  0x63   :  { %1913 = vmatprep.subr.bf16.mxu0 %v3239_v9  ;;  %v3260_v23 = vld [vmem:[#allocation5 + $0x3f0] ss:$24 sps:$4 sm:$0xff]   ;;  %v3261_v24 = vld [vmem:[#allocation5 + $0x124] ss:$24 sps:$4 sm:$0xff]   ;;  %v3265_v26 = vld [vmem:[#allocation5 + $0x120] ss:$24 sps:$4 sm:$0xff]  }
  0x64   :  { %v3263_v25 = vld [vmem:[#allocation5 + $0x424] ss:$24 sps:$4 sm:$0xff]   ;;  %v3266_v27 = vld [vmem:[#allocation5 + $0x420] ss:$24 sps:$4 sm:$0xff]   ;;  %v3267_v28 = vld [vmem:[#allocation5 + $0x154] ss:$24 sps:$4 sm:$0xff]  }
  0x65   :  { %1873 = vmatpush1.bf16.msra.mxu1 %v3241_v10  ;;  %v3269_v29 = vld [vmem:[#allocation5 + $0x454] ss:$24 sps:$4 sm:$0xff]   ;;  %v3271_v30 = vld [vmem:[#allocation5 + $0x150] ss:$24 sps:$4 sm:$0xff]   ;;  %v3273_v32 = vld [vmem:[#allocation5 + $0x184] ss:$24 sps:$4 sm:$0xff]  }
  0x66   :  { %1914 = vmatpush1.bf16.msra.mxu0 %v3242_v11  ;;  %1874 = vmatprep.subr.bf16.mxu1 %v3243_v12  ;;  %v3272_v31 = vld [vmem:[#allocation5 + $0x450] ss:$24 sps:$4 sm:$0xff]   ;;  %v3275_v33 = vld [vmem:[#allocation5 + $0x484] ss:$24 sps:$4 sm:$0xff]   ;;  %v3277_v34 = vld [vmem:[#allocation5 + $0x180] ss:$24 sps:$4 sm:$0xff]  }
  0x67   :  { %1915 = vmatprep.subr.bf16.mxu0 %v3245_v13  ;;  %v3278_v35 = vld [vmem:[#allocation5 + $0x480] ss:$24 sps:$4 sm:$0xff]   ;;  %v3279_v36 = vld [vmem:[#allocation5 + $0x1b4] ss:$24 sps:$4 sm:$0xff]   ;;  %v3283_v38 = vld [vmem:[#allocation5 + $0x1b0] ss:$24 sps:$4 sm:$0xff]  }
  0x68   :  { %v3281_v37 = vld [vmem:[#allocation5 + $0x4b4] ss:$24 sps:$4 sm:$0xff]   ;;  %v3284_v39 = vld [vmem:[#allocation5 + $0x4b0] ss:$24 sps:$4 sm:$0xff]   ;;  %v3285_v40 = vld [vmem:[#allocation5 + $0x1e4] ss:$24 sps:$4 sm:$0xff]  }
  0x69   :  { %1875 = vmatpush1.bf16.msra.mxu1 %v3247_v14  ;;  %v3287_v41 = vld [vmem:[#allocation5 + $0x4e4] ss:$24 sps:$4 sm:$0xff]   ;;  %v3289_v42 = vld [vmem:[#allocation5 + $0x1e0] ss:$24 sps:$4 sm:$0xff]   ;;  %v3291_v44 = vld [vmem:[#allocation5 + $0x214] ss:$24 sps:$4 sm:$0xff]  }
  0x6a   :  { %1916 = vmatpush1.bf16.msra.mxu0 %v3248_v15  ;;  %1876 = vmatprep.subr.bf16.mxu1 %v3249_v16  ;;  %v3290_v43 = vld [vmem:[#allocation5 + $0x4e0] ss:$24 sps:$4 sm:$0xff]   ;;  %v3293_v45 = vld [vmem:[#allocation5 + $0x514] ss:$24 sps:$4 sm:$0xff]   ;;  %v3295_v49 = vld [vmem:[#allocation5 + $0x210] ss:$24 sps:$4 sm:$0xff]  }
  0x6b   :  { %1917 = vmatprep.subr.bf16.mxu0 %v3251_v17  ;;  %v84_v46 = vld [vmem:[#allocation2] sm:$0xff]  ;;  %v85_v48 = vld [vmem:[#allocation2 + $0x8] sm:$0xff]  ;;  %v3297_v52 = vld [vmem:[#allocation5 + $0x244] ss:$24 sps:$4 sm:$0xff]   ;;  %s3872_s4 = smov [#allocation11]  }
  0x6c   :  { %v3963_v47 = vcombine.high %v84_v46, %v84_v46  ;;  %v3296_v50 = vld [vmem:[#allocation5 + $0x510] ss:$24 sps:$4 sm:$0xff]   ;;  %v3965_v51 = vcombine.high %v85_v48, %v85_v48  ;;  %v3299_v53 = vld [vmem:[#allocation5 + $0x544] ss:$24 sps:$4 sm:$0xff]   ;;  %v3301_v54 = vld [vmem:[#allocation5 + $0x240] ss:$24 sps:$4 sm:$0xff]   ;;  %v3969_v6 = vcombine.low %v84_v46, %v84_v46  ;;  %v3971_v7 = vcombine.low %v85_v48, %v85_v48 }
  0x6d   :  { %1877 = vmatpush1.bf16.msra.mxu1 %v3253_v18  ;;  %v3302_v55 = vld [vmem:[#allocation5 + $0x540] ss:$24 sps:$4 sm:$0xff]   ;;  %v3303_v56 = vld [vmem:[#allocation5 + $0x274] ss:$24 sps:$4 sm:$0xff]   ;;  %v3307_v58 = vld [vmem:[#allocation5 + $0x270] ss:$24 sps:$4 sm:$0xff]  }
  0x6e   :  { %1918 = vmatpush1.bf16.msra.mxu0 %v3254_v19  ;;  %1878 = vmatprep.subr.bf16.mxu1 %v3255_v20  ;;  %v3305_v57 = vld [vmem:[#allocation5 + $0x574] ss:$24 sps:$4 sm:$0xff]   ;;  %v3308_v59 = vld [vmem:[#allocation5 + $0x570] ss:$24 sps:$4 sm:$0xff]   ;;  %v3309_v60 = vld [vmem:[#allocation5 + $0x2a4] ss:$24 sps:$4 sm:$0xff]  }
  0x6f   :  { %1919 = vmatprep.subr.bf16.mxu0 %v3257_v21  ;;  %1900 = vmatprep.mubr.bf16.mxu1 %v3963_v47  ;;  %v3311_v61 = vld [vmem:[#allocation5 + $0x5a4] ss:$24 sps:$4 sm:$0xff]   ;;  %v3313_v62 = vld [vmem:[#allocation5 + $0x2a0] ss:$24 sps:$4 sm:$0xff]   ;;  %v3315_v0 = vld [vmem:[#allocation5 + $0x2d4] ss:$24 sps:$4 sm:$0xff]  }
  0x70   :  { %1941 = vmatprep.mubr.bf16.mxu0 %v3965_v51  ;;  %v3314_v63 = vld [vmem:[#allocation5 + $0x5a0] ss:$24 sps:$4 sm:$0xff]   ;;  %v3317_v1 = vld [vmem:[#allocation5 + $0x5d4] ss:$24 sps:$4 sm:$0xff]   ;;  %v3319_v2 = vld [vmem:[#allocation5 + $0x2d0] ss:$24 sps:$4 sm:$0xff]  }
  0x71   :  { %1879 = vmatpush1.bf16.msra.mxu1 %v3259_v22  ;;  %v3320_v3 = vld [vmem:[#allocation5 + $0x5d0] ss:$24 sps:$4 sm:$0xff]   ;;  %v3325_v4 = vld [vmem:[#allocation5 + $0x604] ss:$24 sps:$4 sm:$0xff]   ;;  %v3323_v8 = vld [vmem:[#allocation5 + $0x600] ss:$24 sps:$4 sm:$0xff]  }
  0x72   :  { %1920 = vmatpush1.bf16.msra.mxu0 %v3260_v23  ;;  %1880 = vmatprep.subr.bf16.mxu1 %v3261_v24  ;;  %v3328_v5 = vld [vmem:[#allocation5 + $0xc] ss:$24 sps:$4 sm:$0xff]   ;;  %v3326_v9 = vld [vmem:[#allocation5 + $0x8] ss:$24 sps:$4 sm:$0xff]   ;;  %v3336_v11 = vld [vmem:[#allocation5 + $0x3c] ss:$24 sps:$4 sm:$0xff]  }
  0x73   :  { %1921 = vmatprep.subr.bf16.mxu0 %v3263_v25  ;;  %v3333_v10 = vld [vmem:[#allocation5 + $0x634] ss:$24 sps:$4 sm:$0xff]   ;;  %v3331_v12 = vld [vmem:[#allocation5 + $0x630] ss:$24 sps:$4 sm:$0xff]   ;;  %v3339_v14 = vld [vmem:[#allocation5 + $0x664] ss:$24 sps:$4 sm:$0xff]  }
  0x74   :  { %v3334_v13 = vld [vmem:[#allocation5 + $0x38] ss:$24 sps:$4 sm:$0xff]   ;;  %v3342_v15 = vld [vmem:[#allocation5 + $0x6c] ss:$24 sps:$4 sm:$0xff]   ;;  %v3340_v17 = vld [vmem:[#allocation5 + $0x68] ss:$24 sps:$4 sm:$0xff]  }
  0x75   :  { %1881 = vmatpush1.bf16.msra.mxu1 %v3265_v26  ;;  %v3337_v16 = vld [vmem:[#allocation5 + $0x660] ss:$24 sps:$4 sm:$0xff]   ;;  %v3345_v18 = vld [vmem:[#allocation5 + $0x694] ss:$24 sps:$4 sm:$0xff]   ;;  %v3343_v20 = vld [vmem:[#allocation5 + $0x690] ss:$24 sps:$4 sm:$0xff]  }
  0x76   :  { %1922 = vmatpush1.bf16.msra.mxu0 %v3266_v27  ;;  %1882 = vmatprep.subr.bf16.mxu1 %v3267_v28  ;;  %v3348_v19 = vld [vmem:[#allocation5 + $0x9c] ss:$24 sps:$4 sm:$0xff]   ;;  %v3346_v21 = vld [vmem:[#allocation5 + $0x98] ss:$24 sps:$4 sm:$0xff]   ;;  %v3354_v23 = vld [vmem:[#allocation5 + $0xcc] ss:$24 sps:$4 sm:$0xff]  }
  0x77   :  { %1923 = vmatprep.subr.bf16.mxu0 %v3269_v29  ;;  %v3351_v22 = vld [vmem:[#allocation5 + $0x6c4] ss:$24 sps:$4 sm:$0xff]   ;;  %v3349_v24 = vld [vmem:[#allocation5 + $0x6c0] ss:$24 sps:$4 sm:$0xff]   ;;  %v3357_v26 = vld [vmem:[#allocation5 + $0x6f4] ss:$24 sps:$4 sm:$0xff]  }
  0x78   :  { %v3352_v25 = vld [vmem:[#allocation5 + $0xc8] ss:$24 sps:$4 sm:$0xff]   ;;  %v3360_v27 = vld [vmem:[#allocation5 + $0xfc] ss:$24 sps:$4 sm:$0xff]   ;;  %v3358_v29 = vld [vmem:[#allocation5 + $0xf8] ss:$24 sps:$4 sm:$0xff]  }
  0x79   :  { %1883 = vmatpush1.bf16.msra.mxu1 %v3271_v30  ;;  %v3355_v28 = vld [vmem:[#allocation5 + $0x6f0] ss:$24 sps:$4 sm:$0xff]   ;;  %v3363_v30 = vld [vmem:[#allocation5 + $0x724] ss:$24 sps:$4 sm:$0xff]   ;;  %s2767_s28 = sshll.u32 %s3872_s4, 4  ;;  %s2768_s28 = int_to_ptr.vmem [resolvable:$true] %s2767_s28 }
  0x7a   :  { %1924 = vmatpush1.bf16.msra.mxu0 %v3272_v31  ;;  %1884 = vmatprep.subr.bf16.mxu1 %v3273_v32  ;;  %v3366_v31 = vld [vmem:[#allocation5 + $0x12c] ss:$24 sps:$4 sm:$0xff]   ;;  %v3976_v32 = vld [vmem:[#allocation2 + $0x10] sm:$0xff]  ;;  %v3379_v46 = vld [vmem:[#allocation5 + $0x7b0] ss:$24 sps:$4 sm:$0xff]   ;;  %s3833_s29 = scalar_lea.vmem %s2768_s28, 128  ;;  %p3838_p13 = scmp.lt.s32.totalorder %s2768_s28, %s2768_s28 }
  0x7b   :  { %1925 = vmatprep.subr.bf16.mxu0 %v3275_v33  ;;  %v3361_v33 = vld [vmem:[#allocation5 + $0x720] ss:$24 sps:$4 sm:$0xff]   ;;  %p3834_p12 = scmp.ne.s32.totalorder %s2768_s28, %s3833_s29  ;;  %p3839_p0 = scmp.lt.s32.totalorder %s3833_s29, %s3833_s29 }
  0x7c   :  { %v3382_v48 = vld [vmem:[#allocation5 + $0x1b8] ss:$24 sps:$4 sm:$0xff]  }
  0x7d   :  { %1885 = vmatpush1.bf16.msra.mxu1 %v3277_v34  ;;  %v3980_v34 = vcombine.high %v3976_v32, %v3976_v32  ;;  %p3840_p1 = por %p3839_p0, %p3838_p13 }
  0x7e   :  { %1926 = vmatpush1.bf16.msra.mxu0 %v3278_v35  ;;  %1886 = vmatprep.subr.bf16.mxu1 %v3279_v36  ;;  %v3364_v35 = vld [vmem:[#allocation5 + $0x128] ss:$24 sps:$4 sm:$0xff]   ;;  %v3369_v36 = vld [vmem:[#allocation5 + $0x754] ss:$24 sps:$4 sm:$0xff]  }
  0x7f   :  { %1927 = vmatprep.subr.bf16.mxu0 %v3281_v37  ;;  %v3372_v37 = vld [vmem:[#allocation5 + $0x15c] ss:$24 sps:$4 sm:$0xff]   ;;  %p3841_p2 = pnand %p3840_p1, %p3834_p12 }
  0x81   :  { %1887 = vmatpush1.bf16.msra.mxu1 %v3283_v38  ;;  %v3367_v38 = vld [vmem:[#allocation5 + $0x750] ss:$24 sps:$4 sm:$0xff]  }
  0x82   :  { %1928 = vmatpush1.bf16.msra.mxu0 %v3284_v39  ;;  %1888 = vmatprep.subr.bf16.mxu1 %v3285_v40  ;;  %v3370_v39 = vld [vmem:[#allocation5 + $0x158] ss:$24 sps:$4 sm:$0xff]   ;;  %v3375_v40 = vld [vmem:[#allocation5 + $0x784] ss:$24 sps:$4 sm:$0xff]  }
  0x83   :  { %1929 = vmatprep.subr.bf16.mxu0 %v3287_v41  ;;  %v3378_v41 = vld [vmem:[#allocation5 + $0x18c] ss:$24 sps:$4 sm:$0xff]  }
  0x85   :  { %1889 = vmatpush1.bf16.msra.mxu1 %v3289_v42  ;;  %v3373_v42 = vld [vmem:[#allocation5 + $0x780] ss:$24 sps:$4 sm:$0xff]  }
  0x86   :  { %1930 = vmatpush1.bf16.msra.mxu0 %v3290_v43  ;;  %1890 = vmatprep.subr.bf16.mxu1 %v3291_v44  ;;  %v3376_v43 = vld [vmem:[#allocation5 + $0x188] ss:$24 sps:$4 sm:$0xff]   ;;  %v3381_v44 = vld [vmem:[#allocation5 + $0x7b4] ss:$24 sps:$4 sm:$0xff]  }
  0x87   :  { %1931 = vmatprep.subr.bf16.mxu0 %v3293_v45  ;;  %v3384_v45 = vld [vmem:[#allocation5 + $0x1bc] ss:$24 sps:$4 sm:$0xff]  }
  0x89   :  { %1891 = vmatpush1.bf16.msra.mxu1 %v3295_v49  ;;  %v3387_v49 = vld [vmem:[#allocation5 + $0x7e4] ss:$24 sps:$4 sm:$0xff]  }
  0x8a   :  { %1932 = vmatpush1.bf16.msra.mxu0 %v3296_v50  ;;  %1892 = vmatprep.subr.bf16.mxu1 %v3297_v52  ;;  %v3390_v50 = vld [vmem:[#allocation5 + $0x1ec] ss:$24 sps:$4 sm:$0xff]   ;;  %v3385_v52 = vld [vmem:[#allocation5 + $0x7e0] ss:$24 sps:$4 sm:$0xff]  }
  0x8b   :  { %1933 = vmatprep.subr.bf16.mxu0 %v3299_v53  ;;  %v3388_v53 = vld [vmem:[#allocation5 + $0x1e8] ss:$24 sps:$4 sm:$0xff]  }
  0x8d   :  { %1893 = vmatpush1.bf16.msra.mxu1 %v3301_v54  ;;  %v3393_v54 = vld [vmem:[#allocation5 + $0x814] ss:$24 sps:$4 sm:$0xff]  }
  0x8e   :  { %1934 = vmatpush1.bf16.msra.mxu0 %v3302_v55  ;;  %1894 = vmatprep.subr.bf16.mxu1 %v3303_v56  ;;  %v3396_v55 = vld [vmem:[#allocation5 + $0x21c] ss:$24 sps:$4 sm:$0xff]   ;;  %v3391_v56 = vld [vmem:[#allocation5 + $0x810] ss:$24 sps:$4 sm:$0xff]  }
  0x8f   :  { %1935 = vmatprep.subr.bf16.mxu0 %v3305_v57  ;;  %v3394_v57 = vld [vmem:[#allocation5 + $0x218] ss:$24 sps:$4 sm:$0xff]  }
  0x91   :  { %1895 = vmatpush1.bf16.msra.mxu1 %v3307_v58  ;;  %v3399_v58 = vld [vmem:[#allocation5 + $0x844] ss:$24 sps:$4 sm:$0xff]  }
  0x92   :  { %1936 = vmatpush1.bf16.msra.mxu0 %v3308_v59  ;;  %1896 = vmatprep.subr.bf16.mxu1 %v3309_v60  ;;  %v3402_v59 = vld [vmem:[#allocation5 + $0x24c] ss:$24 sps:$4 sm:$0xff]   ;;  %v3397_v60 = vld [vmem:[#allocation5 + $0x840] ss:$24 sps:$4 sm:$0xff]  }
  0x93   :  { %1937 = vmatprep.subr.bf16.mxu0 %v3311_v61  ;;  %v3400_v61 = vld [vmem:[#allocation5 + $0x248] ss:$24 sps:$4 sm:$0xff]  }
  0x95   :  { %1897 = vmatpush1.bf16.msra.mxu1 %v3313_v62  ;;  %v3405_v62 = vld [vmem:[#allocation5 + $0x874] ss:$24 sps:$4 sm:$0xff]  }
  0x96   :  { %1938 = vmatpush1.bf16.msra.mxu0 %v3314_v63  ;;  %1898 = vmatprep.subr.bf16.mxu1 %v3315_v0  ;;  %v3408_v63 = vld [vmem:[#allocation5 + $0x27c] ss:$24 sps:$4 sm:$0xff]   ;;  %v3403_v0 = vld [vmem:[#allocation5 + $0x870] ss:$24 sps:$4 sm:$0xff]  }
  0x97   :  { %1939 = vmatprep.subr.bf16.mxu0 %v3317_v1  ;;  %v3406_v1 = vld [vmem:[#allocation5 + $0x278] ss:$24 sps:$4 sm:$0xff]  }
  0x99   :  { %1899 = vmatpush1.bf16.msra.mxu1 %v3319_v2  ;;  %v3411_v2 = vld [vmem:[#allocation5 + $0x8a4] ss:$24 sps:$4 sm:$0xff]  }
  0x9a   :  { %1940 = vmatpush1.bf16.msra.mxu0 %v3320_v3  ;;  %1991 = vmatprep.subr.bf16.mxu1 %v3328_v5  ;;  %v3414_v3 = vld [vmem:[#allocation5 + $0x2ac] ss:$24 sps:$4 sm:$0xff]   ;;  %v3412_v5 = vld [vmem:[#allocation5 + $0x2a8] ss:$24 sps:$4 sm:$0xff]  }
  0x9b   :  { %1950 = vmatprep.subr.bf16.mxu0 %v3325_v4  ;;  %v3409_v4 = vld [vmem:[#allocation5 + $0x8a0] ss:$24 sps:$4 sm:$0xff]  }
  0x9c   :  { %1901 = vmatmul.mubr.bf16.vlgmr.msra.gmra.mrb[0].mxu1 %v3969_v6 }
  0x9d   :  { %1942 = vmatmul.mubr.bf16.vlgmr.msra.gmra.mrb[0].mxu0 %v3971_v7  ;;  %1992 = vmatpush1.bf16.msra.mxu1 %v3326_v9  ;;  %v3420_v9 = vld [vmem:[#allocation5 + $0x2dc] ss:$24 sps:$4 sm:$0xff]  }
  0x9e   :  { %1951 = vmatpush1.bf16.msra.mxu0 %v3323_v8  ;;  %1993 = vmatprep.subr.bf16.mxu1 %v3336_v11  ;;  %v3417_v8 = vld [vmem:[#allocation5 + $0x8d4] ss:$24 sps:$4 sm:$0xff]   ;;  %v3418_v11 = vld [vmem:[#allocation5 + $0x2d8] ss:$24 sps:$4 sm:$0xff]  }
  0x9f   :  { %1952 = vmatprep.subr.bf16.mxu0 %v3333_v10  ;;  %2023 = vmatprep.mubr.bf16.mxu1 %v3963_v47  ;;  %v3415_v10 = vld [vmem:[#allocation5 + $0x8d0] ss:$24 sps:$4 sm:$0xff]  }
  0xa0   :  { %1982 = vmatprep.mubr.bf16.mxu0 %v3980_v34 }
  0xa1   :  { %1994 = vmatpush1.bf16.msra.mxu1 %v3334_v13  ;;  %v3428_v13 = vld [vmem:[#allocation5 + $0x14] ss:$24 sps:$4 sm:$0xff]  }
  0xa2   :  { %1953 = vmatpush1.bf16.msra.mxu0 %v3331_v12  ;;  %1995 = vmatprep.subr.bf16.mxu1 %v3342_v15  ;;  %v3425_v12 = vld [vmem:[#allocation5 + $0x30c] ss:$24 sps:$4 sm:$0xff]   ;;  %v3423_v15 = vld [vmem:[#allocation5 + $0x308] ss:$24 sps:$4 sm:$0xff]  }
  0xa3   :  { %1954 = vmatprep.subr.bf16.mxu0 %v3339_v14  ;;  %v3985_v14 = vcombine.low %v3976_v32, %v3976_v32  ;;  %v3455_v32 = vld [vmem:[#allocation5 + $0x3fc] ss:$24 sps:$4 sm:$0xff]  }
  0xa5   :  { %1996 = vmatpush1.bf16.msra.mxu1 %v3340_v17  ;;  %v3431_v17 = vld [vmem:[#allocation5 + $0x33c] ss:$24 sps:$4 sm:$0xff]  }
  0xa6   :  { %1955 = vmatpush1.bf16.msra.mxu0 %v3337_v16  ;;  %1997 = vmatprep.subr.bf16.mxu1 %v3348_v19  ;;  %v3426_v16 = vld [vmem:[#allocation5 + $0x10] ss:$24 sps:$4 sm:$0xff]  }
  0xa7   :  { %1956 = vmatprep.subr.bf16.mxu0 %v3345_v18  ;;  %v3434_v18 = vld [vmem:[#allocation5 + $0x44] ss:$24 sps:$4 sm:$0xff]   ;;  %v3429_v19 = vld [vmem:[#allocation5 + $0x338] ss:$24 sps:$4 sm:$0xff]  }
  0xa9   :  { %1998 = vmatpush1.bf16.msra.mxu1 %v3346_v21  ;;  %v3437_v21 = vld [vmem:[#allocation5 + $0x36c] ss:$24 sps:$4 sm:$0xff]  }
  0xaa   :  { %1957 = vmatpush1.bf16.msra.mxu0 %v3343_v20  ;;  %1999 = vmatprep.subr.bf16.mxu1 %v3354_v23  ;;  %v3432_v20 = vld [vmem:[#allocation5 + $0x40] ss:$24 sps:$4 sm:$0xff]  }
  0xab   :  { %1958 = vmatprep.subr.bf16.mxu0 %v3351_v22  ;;  %v3440_v22 = vld [vmem:[#allocation5 + $0x74] ss:$24 sps:$4 sm:$0xff]   ;;  %v3435_v23 = vld [vmem:[#allocation5 + $0x368] ss:$24 sps:$4 sm:$0xff]  }
  0xad   :  { %2000 = vmatpush1.bf16.msra.mxu1 %v3352_v25  ;;  %v3443_v25 = vld [vmem:[#allocation5 + $0x39c] ss:$24 sps:$4 sm:$0xff]  }
  0xae   :  { %1959 = vmatpush1.bf16.msra.mxu0 %v3349_v24  ;;  %2001 = vmatprep.subr.bf16.mxu1 %v3360_v27  ;;  %v3438_v24 = vld [vmem:[#allocation5 + $0x70] ss:$24 sps:$4 sm:$0xff]  }
  0xaf   :  { %1960 = vmatprep.subr.bf16.mxu0 %v3357_v26  ;;  %v3446_v26 = vld [vmem:[#allocation5 + $0xa4] ss:$24 sps:$4 sm:$0xff]   ;;  %v3441_v27 = vld [vmem:[#allocation5 + $0x398] ss:$24 sps:$4 sm:$0xff]  }
  0xb1   :  { %2002 = vmatpush1.bf16.msra.mxu1 %v3358_v29  ;;  %v3449_v29 = vld [vmem:[#allocation5 + $0x3cc] ss:$24 sps:$4 sm:$0xff]  }
  0xb2   :  { %1961 = vmatpush1.bf16.msra.mxu0 %v3355_v28  ;;  %2003 = vmatprep.subr.bf16.mxu1 %v3366_v31  ;;  %v3444_v28 = vld [vmem:[#allocation5 + $0xa0] ss:$24 sps:$4 sm:$0xff]  }
  0xb3   :  { %1962 = vmatprep.subr.bf16.mxu0 %v3363_v30  ;;  %v3452_v30 = vld [vmem:[#allocation5 + $0xd4] ss:$24 sps:$4 sm:$0xff]   ;;  %v3447_v31 = vld [vmem:[#allocation5 + $0x3c8] ss:$24 sps:$4 sm:$0xff]  }
  0xb5   :  { %2004 = vmatpush1.bf16.msra.mxu1 %v3364_v35  ;;  %v3453_v35 = vld [vmem:[#allocation5 + $0x3f8] ss:$24 sps:$4 sm:$0xff]  }
  0xb6   :  { %1963 = vmatpush1.bf16.msra.mxu0 %v3361_v33  ;;  %2005 = vmatprep.subr.bf16.mxu1 %v3372_v37  ;;  %v3458_v33 = vld [vmem:[#allocation5 + $0x104] ss:$24 sps:$4 sm:$0xff]  }
  0xb7   :  { %1964 = vmatprep.subr.bf16.mxu0 %v3369_v36  ;;  %v3456_v36 = vld [vmem:[#allocation5 + $0x100] ss:$24 sps:$4 sm:$0xff]   ;;  %v3461_v37 = vld [vmem:[#allocation5 + $0x42c] ss:$24 sps:$4 sm:$0xff]  }
  0xb9   :  { %2006 = vmatpush1.bf16.msra.mxu1 %v3370_v39  ;;  %v3459_v39 = vld [vmem:[#allocation5 + $0x428] ss:$24 sps:$4 sm:$0xff]  }
  0xba   :  { %1965 = vmatpush1.bf16.msra.mxu0 %v3367_v38  ;;  %2007 = vmatprep.subr.bf16.mxu1 %v3378_v41  ;;  %v3464_v38 = vld [vmem:[#allocation5 + $0x134] ss:$24 sps:$4 sm:$0xff]  }
  0xbb   :  { %1966 = vmatprep.subr.bf16.mxu0 %v3375_v40  ;;  %v3462_v40 = vld [vmem:[#allocation5 + $0x130] ss:$24 sps:$4 sm:$0xff]   ;;  %v3467_v41 = vld [vmem:[#allocation5 + $0x45c] ss:$24 sps:$4 sm:$0xff]  }
  0xbd   :  { %2008 = vmatpush1.bf16.msra.mxu1 %v3376_v43  ;;  %v3465_v43 = vld [vmem:[#allocation5 + $0x458] ss:$24 sps:$4 sm:$0xff]  }
  0xbe   :  { %1967 = vmatpush1.bf16.msra.mxu0 %v3373_v42  ;;  %2009 = vmatprep.subr.bf16.mxu1 %v3384_v45  ;;  %v3470_v42 = vld [vmem:[#allocation5 + $0x164] ss:$24 sps:$4 sm:$0xff]  }
  0xbf   :  { %1968 = vmatprep.subr.bf16.mxu0 %v3381_v44  ;;  %v3468_v44 = vld [vmem:[#allocation5 + $0x160] ss:$24 sps:$4 sm:$0xff]   ;;  %v3473_v45 = vld [vmem:[#allocation5 + $0x48c] ss:$24 sps:$4 sm:$0xff]  }
  0xc1   :  { %2010 = vmatpush1.bf16.msra.mxu1 %v3382_v48  ;;  %v3471_v48 = vld [vmem:[#allocation5 + $0x488] ss:$24 sps:$4 sm:$0xff]  }
  0xc2   :  { %1969 = vmatpush1.bf16.msra.mxu0 %v3379_v46  ;;  %2011 = vmatprep.subr.bf16.mxu1 %v3390_v50  ;;  %v3476_v46 = vld [vmem:[#allocation5 + $0x194] ss:$24 sps:$4 sm:$0xff]  }
  0xc3   :  { %1970 = vmatprep.subr.bf16.mxu0 %v3387_v49  ;;  %v3474_v49 = vld [vmem:[#allocation5 + $0x190] ss:$24 sps:$4 sm:$0xff]   ;;  %v3479_v50 = vld [vmem:[#allocation5 + $0x4bc] ss:$24 sps:$4 sm:$0xff]  }
  0xc5   :  { %2012 = vmatpush1.bf16.msra.mxu1 %v3388_v53  ;;  %v3477_v53 = vld [vmem:[#allocation5 + $0x4b8] ss:$24 sps:$4 sm:$0xff]  }
  0xc6   :  { %1971 = vmatpush1.bf16.msra.mxu0 %v3385_v52  ;;  %2013 = vmatprep.subr.bf16.mxu1 %v3396_v55  ;;  %v3482_v52 = vld [vmem:[#allocation5 + $0x1c4] ss:$24 sps:$4 sm:$0xff]  }
  0xc7   :  { %1972 = vmatprep.subr.bf16.mxu0 %v3393_v54  ;;  %v3480_v54 = vld [vmem:[#allocation5 + $0x1c0] ss:$24 sps:$4 sm:$0xff]   ;;  %v3485_v55 = vld [vmem:[#allocation5 + $0x4ec] ss:$24 sps:$4 sm:$0xff]  }
  0xc9   :  { %2014 = vmatpush1.bf16.msra.mxu1 %v3394_v57  ;;  %v3483_v57 = vld [vmem:[#allocation5 + $0x4e8] ss:$24 sps:$4 sm:$0xff]  }
  0xca   :  { %1973 = vmatpush1.bf16.msra.mxu0 %v3391_v56  ;;  %2015 = vmatprep.subr.bf16.mxu1 %v3402_v59  ;;  %v3488_v56 = vld [vmem:[#allocation5 + $0x1f4] ss:$24 sps:$4 sm:$0xff]  }
  0xcb   :  { %1974 = vmatprep.subr.bf16.mxu0 %v3399_v58  ;;  %v3486_v58 = vld [vmem:[#allocation5 + $0x1f0] ss:$24 sps:$4 sm:$0xff]   ;;  %v3491_v59 = vld [vmem:[#allocation5 + $0x51c] ss:$24 sps:$4 sm:$0xff]  }
  0xcd   :  { %2016 = vmatpush1.bf16.msra.mxu1 %v3400_v61  ;;  %v3489_v61 = vld [vmem:[#allocation5 + $0x518] ss:$24 sps:$4 sm:$0xff]  }
  0xce   :  { %1975 = vmatpush1.bf16.msra.mxu0 %v3397_v60  ;;  %2017 = vmatprep.subr.bf16.mxu1 %v3408_v63  ;;  %v3494_v60 = vld [vmem:[#allocation5 + $0x224] ss:$24 sps:$4 sm:$0xff]  }
  0xcf   :  { %1976 = vmatprep.subr.bf16.mxu0 %v3405_v62  ;;  %v3492_v62 = vld [vmem:[#allocation5 + $0x220] ss:$24 sps:$4 sm:$0xff]   ;;  %v3497_v63 = vld [vmem:[#allocation5 + $0x54c] ss:$24 sps:$4 sm:$0xff]  }
  0xd1   :  { %2018 = vmatpush1.bf16.msra.mxu1 %v3406_v1  ;;  %v3495_v1 = vld [vmem:[#allocation5 + $0x548] ss:$24 sps:$4 sm:$0xff]  }
  0xd2   :  { %1977 = vmatpush1.bf16.msra.mxu0 %v3403_v0  ;;  %2019 = vmatprep.subr.bf16.mxu1 %v3414_v3  ;;  %v3500_v0 = vld [vmem:[#allocation5 + $0x254] ss:$24 sps:$4 sm:$0xff]  }
  0xd3   :  { %1978 = vmatprep.subr.bf16.mxu0 %v3411_v2  ;;  %v3498_v2 = vld [vmem:[#allocation5 + $0x250] ss:$24 sps:$4 sm:$0xff]   ;;  %v3503_v3 = vld [vmem:[#allocation5 + $0x57c] ss:$24 sps:$4 sm:$0xff]  }
  0xd5   :  { %2020 = vmatpush1.bf16.msra.mxu1 %v3412_v5  ;;  %v3501_v5 = vld [vmem:[#allocation5 + $0x578] ss:$24 sps:$4 sm:$0xff]  }
  0xd6   :  { %1979 = vmatpush1.bf16.msra.mxu0 %v3409_v4  ;;  %2021 = vmatprep.subr.bf16.mxu1 %v3420_v9  ;;  %v3506_v4 = vld [vmem:[#allocation5 + $0x284] ss:$24 sps:$4 sm:$0xff]  }
  0xd7   :  { %1980 = vmatprep.subr.bf16.mxu0 %v3417_v8  ;;  %v3504_v8 = vld [vmem:[#allocation5 + $0x280] ss:$24 sps:$4 sm:$0xff]   ;;  %v3509_v9 = vld [vmem:[#allocation5 + $0x5ac] ss:$24 sps:$4 sm:$0xff]  }
  0xd9   :  { %2022 = vmatpush1.bf16.msra.mxu1 %v3418_v11  ;;  %v3507_v11 = vld [vmem:[#allocation5 + $0x5a8] ss:$24 sps:$4 sm:$0xff]  }
  0xda   :  { %1981 = vmatpush1.bf16.msra.mxu0 %v3415_v10  ;;  %2032 = vmatprep.subr.bf16.mxu1 %v3425_v12  ;;  %v3512_v10 = vld [vmem:[#allocation5 + $0x2b4] ss:$24 sps:$4 sm:$0xff]   ;;  %v3510_v12 = vld [vmem:[#allocation5 + $0x2b0] ss:$24 sps:$4 sm:$0xff]  }
  0xdb   :  { %2114 = vmatprep.subr.bf16.mxu0 %v3428_v13  ;;  %v3515_v13 = vld [vmem:[#allocation5 + $0x5dc] ss:$24 sps:$4 sm:$0xff]  }
  0xdc   :  { %2024 = vmatmul.mubr.bf16.vlgmr.msra.gmra.mrb[4].mxu1 %v3969_v6 }
  0xdd   :  { %1983 = vmatmul.mubr.bf16.vlgmr.msra.gmra.mrb[0].mxu0 %v3985_v14  ;;  %2033 = vmatpush1.bf16.msra.mxu1 %v3423_v15  ;;  %v3518_v15 = vld [vmem:[#allocation5 + $0x2e4] ss:$24 sps:$4 sm:$0xff]  }
  0xde   :  { %2115 = vmatpush1.bf16.msra.mxu0 %v3426_v16  ;;  %2034 = vmatprep.subr.bf16.mxu1 %v3431_v17  ;;  %v3513_v16 = vld [vmem:[#allocation5 + $0x5d8] ss:$24 sps:$4 sm:$0xff]  }
  0xdf   :  { %2116 = vmatprep.subr.bf16.mxu0 %v3434_v18  ;;  %2064 = vmatprep.mubr.bf16.mxu1 %v3965_v51  ;;  %v3516_v17 = vld [vmem:[#allocation5 + $0x2e0] ss:$24 sps:$4 sm:$0xff]   ;;  %v3521_v18 = vld [vmem:[#allocation5 + $0x60c] ss:$24 sps:$4 sm:$0xff]  }
  0xe0   :  { %2146 = vmatprep.mubr.bf16.mxu0 %v3963_v47  ;;  %v3450_v47 = vld [vmem:[#allocation5 + $0xd0] ss:$24 sps:$4 sm:$0xff]  }
  0xe1   :  { %2035 = vmatpush1.bf16.msra.mxu1 %v3429_v19  ;;  %v3524_v19 = vld [vmem:[#allocation5 + $0x314] ss:$24 sps:$4 sm:$0xff]  }
  0xe2   :  { %2117 = vmatpush1.bf16.msra.mxu0 %v3432_v20  ;;  %2036 = vmatprep.subr.bf16.mxu1 %v3437_v21  ;;  %v3519_v20 = vld [vmem:[#allocation5 + $0x608] ss:$24 sps:$4 sm:$0xff]  }
  0xe3   :  { %2118 = vmatprep.subr.bf16.mxu0 %v3440_v22  ;;  %v3522_v21 = vld [vmem:[#allocation5 + $0x310] ss:$24 sps:$4 sm:$0xff]   ;;  %v3527_v22 = vld [vmem:[#allocation5 + $0x63c] ss:$24 sps:$4 sm:$0xff]  }
  0xe5   :  { %2037 = vmatpush1.bf16.msra.mxu1 %v3435_v23  ;;  %v3530_v23 = vld [vmem:[#allocation5 + $0x344] ss:$24 sps:$4 sm:$0xff]  }
  0xe6   :  { %2119 = vmatpush1.bf16.msra.mxu0 %v3438_v24  ;;  %2038 = vmatprep.subr.bf16.mxu1 %v3443_v25  ;;  %v3525_v24 = vld [vmem:[#allocation5 + $0x638] ss:$24 sps:$4 sm:$0xff]  }
  0xe7   :  { %2120 = vmatprep.subr.bf16.mxu0 %v3446_v26  ;;  %v3528_v25 = vld [vmem:[#allocation5 + $0x340] ss:$24 sps:$4 sm:$0xff]   ;;  %v3533_v26 = vld [vmem:[#allocation5 + $0x66c] ss:$24 sps:$4 sm:$0xff]  }
  0xe9   :  { %2039 = vmatpush1.bf16.msra.mxu1 %v3441_v27  ;;  %v3536_v27 = vld [vmem:[#allocation5 + $0x374] ss:$24 sps:$4 sm:$0xff]  }
  0xea   :  { %2121 = vmatpush1.bf16.msra.mxu0 %v3444_v28  ;;  %2040 = vmatprep.subr.bf16.mxu1 %v3449_v29  ;;  %v3531_v28 = vld [vmem:[#allocation5 + $0x668] ss:$24 sps:$4 sm:$0xff]  }
  0xeb   :  { %2122 = vmatprep.subr.bf16.mxu0 %v3452_v30  ;;  %v3534_v29 = vld [vmem:[#allocation5 + $0x370] ss:$24 sps:$4 sm:$0xff]   ;;  %v3539_v30 = vld [vmem:[#allocation5 + $0x69c] ss:$24 sps:$4 sm:$0xff]  }
  0xed   :  { %2041 = vmatpush1.bf16.msra.mxu1 %v3447_v31  ;;  %v3537_v31 = vld [vmem:[#allocation5 + $0x698] ss:$24 sps:$4 sm:$0xff]  }
  0xee   :  { %2123 = vmatpush1.bf16.msra.mxu0 %v3450_v47  ;;  %2042 = vmatprep.subr.bf16.mxu1 %v3455_v32  ;;  %v3540_v47 = vld [vmem:[#allocation5 + $0x3a0] ss:$24 sps:$4 sm:$0xff]   ;;  %v3545_v32 = vld [vmem:[#allocation5 + $0x6cc] ss:$24 sps:$4 sm:$0xff]  }
  0xef   :  { %2124 = vmatprep.subr.bf16.mxu0 %v3458_v33  ;;  %v3548_v33 = vld [vmem:[#allocation5 + $0x3d4] ss:$24 sps:$4 sm:$0xff]  }
  0xf1   :  { %2043 = vmatpush1.bf16.msra.mxu1 %v3453_v35  ;;  %v3543_v35 = vld [vmem:[#allocation5 + $0x6c8] ss:$24 sps:$4 sm:$0xff]  }
  0xf2   :  { %2125 = vmatpush1.bf16.msra.mxu0 %v3456_v36  ;;  %2044 = vmatprep.subr.bf16.mxu1 %v3461_v37  ;;  %v3546_v36 = vld [vmem:[#allocation5 + $0x3d0] ss:$24 sps:$4 sm:$0xff]   ;;  %v3551_v37 = vld [vmem:[#allocation5 + $0x6fc] ss:$24 sps:$4 sm:$0xff]  }
  0xf3   :  { %2126 = vmatprep.subr.bf16.mxu0 %v3464_v38  ;;  %v3554_v38 = vld [vmem:[#allocation5 + $0x404] ss:$24 sps:$4 sm:$0xff]  }
  0xf5   :  { %2045 = vmatpush1.bf16.msra.mxu1 %v3459_v39  ;;  %v3552_v39 = vld [vmem:[#allocation5 + $0x400] ss:$24 sps:$4 sm:$0xff]  }
  0xf6   :  { %2127 = vmatpush1.bf16.msra.mxu0 %v3462_v40  ;;  %2046 = vmatprep.subr.bf16.mxu1 %v3467_v41  ;;  %v3557_v40 = vld [vmem:[#allocation5 + $0x72c] ss:$24 sps:$4 sm:$0xff]  }
  0xf7   :  { %2128 = vmatprep.subr.bf16.mxu0 %v3470_v42  ;;  %v3560_v41 = vld [vmem:[#allocation5 + $0x434] ss:$24 sps:$4 sm:$0xff]   ;;  %v3555_v42 = vld [vmem:[#allocation5 + $0x728] ss:$24 sps:$4 sm:$0xff]  }
  0xf9   :  { %2047 = vmatpush1.bf16.msra.mxu1 %v3465_v43  ;;  %v3558_v43 = vld [vmem:[#allocation5 + $0x430] ss:$24 sps:$4 sm:$0xff]  }
  0xfa   :  { %2129 = vmatpush1.bf16.msra.mxu0 %v3468_v44  ;;  %2048 = vmatprep.subr.bf16.mxu1 %v3473_v45  ;;  %v3563_v44 = vld [vmem:[#allocation5 + $0x75c] ss:$24 sps:$4 sm:$0xff]  }
  0xfb   :  { %2130 = vmatprep.subr.bf16.mxu0 %v3476_v46  ;;  %v3566_v45 = vld [vmem:[#allocation5 + $0x464] ss:$24 sps:$4 sm:$0xff]   ;;  %v3561_v46 = vld [vmem:[#allocation5 + $0x758] ss:$24 sps:$4 sm:$0xff]  }
  0xfd   :  { %2049 = vmatpush1.bf16.msra.mxu1 %v3471_v48  ;;  %v3564_v48 = vld [vmem:[#allocation5 + $0x460] ss:$24 sps:$4 sm:$0xff]  }
  0xfe   :  { %2131 = vmatpush1.bf16.msra.mxu0 %v3474_v49  ;;  %2050 = vmatprep.subr.bf16.mxu1 %v3479_v50  ;;  %v3569_v49 = vld [vmem:[#allocation5 + $0x78c] ss:$24 sps:$4 sm:$0xff]  }
  0xff   :  { %2132 = vmatprep.subr.bf16.mxu0 %v3482_v52  ;;  %v3572_v50 = vld [vmem:[#allocation5 + $0x494] ss:$24 sps:$4 sm:$0xff]   ;;  %v3567_v52 = vld [vmem:[#allocation5 + $0x788] ss:$24 sps:$4 sm:$0xff]  }
 0x101   :  { %2051 = vmatpush1.bf16.msra.mxu1 %v3477_v53  ;;  %v3570_v53 = vld [vmem:[#allocation5 + $0x490] ss:$24 sps:$4 sm:$0xff]  }
 0x102   :  { %2133 = vmatpush1.bf16.msra.mxu0 %v3480_v54  ;;  %2052 = vmatprep.subr.bf16.mxu1 %v3485_v55  ;;  %v3575_v54 = vld [vmem:[#allocation5 + $0x7bc] ss:$24 sps:$4 sm:$0xff]  }
 0x103   :  { %2134 = vmatprep.subr.bf16.mxu0 %v3488_v56  ;;  %v3578_v55 = vld [vmem:[#allocation5 + $0x4c4] ss:$24 sps:$4 sm:$0xff]   ;;  %v3573_v56 = vld [vmem:[#allocation5 + $0x7b8] ss:$24 sps:$4 sm:$0xff]  }
 0x105   :  { %2053 = vmatpush1.bf16.msra.mxu1 %v3483_v57  ;;  %v3576_v57 = vld [vmem:[#allocation5 + $0x4c0] ss:$24 sps:$4 sm:$0xff]  }
 0x106   :  { %2135 = vmatpush1.bf16.msra.mxu0 %v3486_v58  ;;  %2054 = vmatprep.subr.bf16.mxu1 %v3491_v59  ;;  %v3581_v58 = vld [vmem:[#allocation5 + $0x7ec] ss:$24 sps:$4 sm:$0xff]  }
 0x107   :  { %2136 = vmatprep.subr.bf16.mxu0 %v3494_v60  ;;  %v3584_v59 = vld [vmem:[#allocation5 + $0x4f4] ss:$24 sps:$4 sm:$0xff]   ;;  %v3579_v60 = vld [vmem:[#allocation5 + $0x7e8] ss:$24 sps:$4 sm:$0xff]  }
 0x109   :  { %2055 = vmatpush1.bf16.msra.mxu1 %v3489_v61  ;;  %v3582_v61 = vld [vmem:[#allocation5 + $0x4f0] ss:$24 sps:$4 sm:$0xff]  }
 0x10a   :  { %2137 = vmatpush1.bf16.msra.mxu0 %v3492_v62  ;;  %2056 = vmatprep.subr.bf16.mxu1 %v3497_v63  ;;  %v3587_v62 = vld [vmem:[#allocation5 + $0x81c] ss:$24 sps:$4 sm:$0xff]  }
 0x10b   :  { %2138 = vmatprep.subr.bf16.mxu0 %v3500_v0  ;;  %v3590_v63 = vld [vmem:[#allocation5 + $0x524] ss:$24 sps:$4 sm:$0xff]   ;;  %v3585_v0 = vld [vmem:[#allocation5 + $0x818] ss:$24 sps:$4 sm:$0xff]  }
 0x10d   :  { %2057 = vmatpush1.bf16.msra.mxu1 %v3495_v1  ;;  %v3588_v1 = vld [vmem:[#allocation5 + $0x520] ss:$24 sps:$4 sm:$0xff]  }
 0x10e   :  { %2139 = vmatpush1.bf16.msra.mxu0 %v3498_v2  ;;  %2058 = vmatprep.subr.bf16.mxu1 %v3503_v3  ;;  %v3593_v2 = vld [vmem:[#allocation5 + $0x84c] ss:$24 sps:$4 sm:$0xff]  }
 0x10f   :  { %2140 = vmatprep.subr.bf16.mxu0 %v3506_v4  ;;  %v3596_v3 = vld [vmem:[#allocation5 + $0x554] ss:$24 sps:$4 sm:$0xff]   ;;  %v3591_v4 = vld [vmem:[#allocation5 + $0x848] ss:$24 sps:$4 sm:$0xff]  }
 0x111   :  { %2059 = vmatpush1.bf16.msra.mxu1 %v3501_v5  ;;  %v3594_v5 = vld [vmem:[#allocation5 + $0x550] ss:$24 sps:$4 sm:$0xff]  }
 0x112   :  { %2141 = vmatpush1.bf16.msra.mxu0 %v3504_v8  ;;  %2060 = vmatprep.subr.bf16.mxu1 %v3509_v9  ;;  %v3599_v8 = vld [vmem:[#allocation5 + $0x87c] ss:$24 sps:$4 sm:$0xff]  }
 0x113   :  { %2142 = vmatprep.subr.bf16.mxu0 %v3512_v10  ;;  %v3602_v9 = vld [vmem:[#allocation5 + $0x584] ss:$24 sps:$4 sm:$0xff]   ;;  %v3597_v10 = vld [vmem:[#allocation5 + $0x878] ss:$24 sps:$4 sm:$0xff]  }
 0x115   :  { %2061 = vmatpush1.bf16.msra.mxu1 %v3507_v11  ;;  %v3600_v11 = vld [vmem:[#allocation5 + $0x580] ss:$24 sps:$4 sm:$0xff]  }
 0x116   :  { %2143 = vmatpush1.bf16.msra.mxu0 %v3510_v12  ;;  %2062 = vmatprep.subr.bf16.mxu1 %v3515_v13  ;;  %v3605_v12 = vld [vmem:[#allocation5 + $0x8ac] ss:$24 sps:$4 sm:$0xff]  }
 0x117   :  { %2144 = vmatprep.subr.bf16.mxu0 %v3518_v15  ;;  %v3608_v13 = vld [vmem:[#allocation5 + $0x5b4] ss:$24 sps:$4 sm:$0xff]   ;;  %v3603_v15 = vld [vmem:[#allocation5 + $0x8a8] ss:$24 sps:$4 sm:$0xff]  }
 0x119   :  { %2063 = vmatpush1.bf16.msra.mxu1 %v3513_v16  ;;  %v3606_v16 = vld [vmem:[#allocation5 + $0x5b0] ss:$24 sps:$4 sm:$0xff]  }
 0x11a   :  { %2145 = vmatpush1.bf16.msra.mxu0 %v3516_v17  ;;  %2073 = vmatprep.subr.bf16.mxu1 %v3521_v18  ;;  %v3611_v17 = vld [vmem:[#allocation5 + $0x8dc] ss:$24 sps:$4 sm:$0xff]  }
 0x11b   :  { %2155 = vmatprep.subr.bf16.mxu0 %v3524_v19  ;;  %v3614_v18 = vld [vmem:[#allocation5 + $0x5e4] ss:$24 sps:$4 sm:$0xff]   ;;  %v3609_v19 = vld [vmem:[#allocation5 + $0x8d8] ss:$24 sps:$4 sm:$0xff]  }
 0x11c   :  { %2065 = vmatmul.mubr.bf16.vlgmr.msra.gmra.mrb[4].mxu1 %v3971_v7 }
 0x11d   :  { %2147 = vmatmul.mubr.bf16.vlgmr.msra.gmra.mrb[4].mxu0 %v3969_v6  ;;  %2074 = vmatpush1.bf16.msra.mxu1 %v3519_v20  ;;  %v3542_v6 = vld [vmem:[#allocation5 + $0x3a4] ss:$24 sps:$4 sm:$0xff]   ;;  %v3612_v20 = vld [vmem:[#allocation5 + $0x5e0] ss:$24 sps:$4 sm:$0xff]  }
 0x11e   :  { %2156 = vmatpush1.bf16.msra.mxu0 %v3522_v21  ;;  %2075 = vmatprep.subr.bf16.mxu1 %v3527_v22  ;;  %v3617_v21 = vld [vmem:[#allocation5 + $0x614] ss:$24 sps:$4 sm:$0xff]  }
 0x11f   :  { %2157 = vmatprep.subr.bf16.mxu0 %v3530_v23  ;;  %2105 = vmatprep.mubr.bf16.mxu1 %v3980_v34  ;;  %v3663_v22 = vld [vmem:[#allocation8 + $0x40] sm:$0xff]  }
 0x120   :  { %2187 = vmatprep.mubr.bf16.mxu0 %v3965_v51  ;;  %v3549_v51 = vld [vmem:[#allocation5 + $0x6f8] ss:$24 sps:$4 sm:$0xff]  }
 0x121   :  { %2076 = vmatpush1.bf16.msra.mxu1 %v3525_v24  ;;  %v3615_v23 = vld [vmem:[#allocation5 + $0x610] ss:$24 sps:$4 sm:$0xff]   ;;  %v3620_v24 = vld [vmem:[#allocation5 + $0x644] ss:$24 sps:$4 sm:$0xff]  }
 0x122   :  { %2158 = vmatpush1.bf16.msra.mxu0 %v3528_v25  ;;  %2077 = vmatprep.subr.bf16.mxu1 %v3533_v26  ;;  %v3664_v25 = vld [vmem:[#allocation8] sm:$0xff]   ;;  %v3665_v26 = vld [vmem:[#allocation8 + $0x48] sm:$0xff]  }
 0x123   :  { %2159 = vmatprep.subr.bf16.mxu0 %v3536_v27  ;;  %v3618_v27 = vld [vmem:[#allocation5 + $0x640] ss:$24 sps:$4 sm:$0xff]  }
 0x125   :  { %2078 = vmatpush1.bf16.msra.mxu1 %v3531_v28  ;;  %v3623_v28 = vld [vmem:[#allocation5 + $0x674] ss:$24 sps:$4 sm:$0xff]  }
 0x126   :  { %2160 = vmatpush1.bf16.msra.mxu0 %v3534_v29  ;;  %2079 = vmatprep.subr.bf16.mxu1 %v3539_v30  ;;  %v3666_v29 = vld [vmem:[#allocation8 + $0x8] sm:$0xff]   ;;  %v3667_v30 = vld [vmem:[#allocation8 + $0x50] sm:$0xff]  }
 0x127   :  { %2161 = vmatprep.subr.bf16.mxu0 %v3542_v6  ;;  %v3621_v6 = vld [vmem:[#allocation5 + $0x670] ss:$24 sps:$4 sm:$0xff]  }
 0x129   :  { %2080 = vmatpush1.bf16.msra.mxu1 %v3537_v31  ;;  %v3626_v31 = vld [vmem:[#allocation5 + $0x6a4] ss:$24 sps:$4 sm:$0xff]  }
 0x12a   :  { %2162 = vmatpush1.bf16.msra.mxu0 %v3540_v47  ;;  %2081 = vmatprep.subr.bf16.mxu1 %v3545_v32  ;;  %v3668_v47 = vld [vmem:[#allocation8 + $0x10] sm:$0xff]   ;;  %v3669_v32 = vld [vmem:[#allocation8 + $0x58] sm:$0xff]  }
 0x12b   :  { %2163 = vmatprep.subr.bf16.mxu0 %v3548_v33  ;;  %v3629_v33 = vld [vmem:[#allocation5 + $0x6d4] ss:$24 sps:$4 sm:$0xff]  }
 0x12d   :  { %2082 = vmatpush1.bf16.msra.mxu1 %v3543_v35  ;;  %v3671_v35 = vld [vmem:[#allocation8 + $0x60] sm:$0xff]  }
 0x12e   :  { %2164 = vmatpush1.bf16.msra.mxu0 %v3546_v36  ;;  %2083 = vmatprep.subr.bf16.mxu1 %v3551_v37  ;;  %v3627_v36 = vld [vmem:[#allocation5 + $0x6d0] ss:$24 sps:$4 sm:$0xff]   ;;  %v3632_v37 = vld [vmem:[#allocation5 + $0x704] ss:$24 sps:$4 sm:$0xff]  }
 0x12f   :  { %2165 = vmatprep.subr.bf16.mxu0 %v3554_v38  ;;  %v3672_v38 = vld [vmem:[#allocation8 + $0x20] sm:$0xff]  }
 0x131   :  { %2084 = vmatpush1.bf16.msra.mxu1 %v3549_v51  ;;  %v3673_v51 = vld [vmem:[#allocation8 + $0x68] sm:$0xff]  }
 0x132   :  { %2166 = vmatpush1.bf16.msra.mxu0 %v3552_v39  ;;  %2085 = vmatprep.subr.bf16.mxu1 %v3557_v40  ;;  %v3630_v39 = vld [vmem:[#allocation5 + $0x700] ss:$24 sps:$4 sm:$0xff]   ;;  %v3635_v40 = vld [vmem:[#allocation5 + $0x734] ss:$24 sps:$4 sm:$0xff]  }
 0x133   :  { %2167 = vmatprep.subr.bf16.mxu0 %v3560_v41  ;;  %v3674_v41 = vld [vmem:[#allocation8 + $0x28] sm:$0xff]  }
 0x135   :  { %2086 = vmatpush1.bf16.msra.mxu1 %v3555_v42 }
 0x136   :  { %2168 = vmatpush1.bf16.msra.mxu0 %v3558_v43  ;;  %2087 = vmatprep.subr.bf16.mxu1 %v3563_v44  ;;  %v3675_v43 = vld [vmem:[#allocation8 + $0x70] sm:$0xff]  }
 0x137   :  { %2169 = vmatprep.subr.bf16.mxu0 %v3566_v45  ;;  %v3633_v45 = vld [vmem:[#allocation5 + $0x730] ss:$24 sps:$4 sm:$0xff]  }
 0x139   :  { %2088 = vmatpush1.bf16.msra.mxu1 %v3561_v46 }
 0x13a   :  { %2170 = vmatpush1.bf16.msra.mxu0 %v3564_v48  ;;  %2089 = vmatprep.subr.bf16.mxu1 %v3569_v49  ;;  %v3638_v48 = vld [vmem:[#allocation5 + $0x764] ss:$24 sps:$4 sm:$0xff]  }
 0x13b   :  { %2171 = vmatprep.subr.bf16.mxu0 %v3572_v50  ;;  %v3676_v50 = vld [vmem:[#allocation8 + $0x30] sm:$0xff]  }
 0x13d   :  { %2090 = vmatpush1.bf16.msra.mxu1 %v3567_v52  ;;  %v3677_v52 = vld [vmem:[#allocation8 + $0x78] sm:$0xff]  }
 0x13e   :  { %2172 = vmatpush1.bf16.msra.mxu0 %v3570_v53  ;;  %2091 = vmatprep.subr.bf16.mxu1 %v3575_v54  ;;  %v3636_v53 = vld [vmem:[#allocation5 + $0x760] ss:$24 sps:$4 sm:$0xff]   ;;  %v3641_v54 = vld [vmem:[#allocation5 + $0x794] ss:$24 sps:$4 sm:$0xff]  }
 0x13f   :  { %2173 = vmatprep.subr.bf16.mxu0 %v3578_v55  ;;  %v3678_v55 = vld [vmem:[#allocation8 + $0x38] sm:$0xff]  }
 0x141   :  { %2092 = vmatpush1.bf16.msra.mxu1 %v3573_v56  ;;  %v3679_v56 = vld [vmem:[#allocation8 + $0xc0] sm:$0xff]  }
 0x142   :  { %2174 = vmatpush1.bf16.msra.mxu0 %v3576_v57  ;;  %2093 = vmatprep.subr.bf16.mxu1 %v3581_v58  ;;  %v3639_v57 = vld [vmem:[#allocation5 + $0x790] ss:$24 sps:$4 sm:$0xff]   ;;  %v3644_v58 = vld [vmem:[#allocation5 + $0x7c4] ss:$24 sps:$4 sm:$0xff]  }
 0x143   :  { %2175 = vmatprep.subr.bf16.mxu0 %v3584_v59  ;;  %v3642_v59 = vld [vmem:[#allocation5 + $0x7c0] ss:$24 sps:$4 sm:$0xff]  }
 0x145   :  { %2094 = vmatpush1.bf16.msra.mxu1 %v3579_v60  ;;  %v3647_v60 = vld [vmem:[#allocation5 + $0x7f4] ss:$24 sps:$4 sm:$0xff]  }
 0x146   :  { %2176 = vmatpush1.bf16.msra.mxu0 %v3582_v61  ;;  %2095 = vmatprep.subr.bf16.mxu1 %v3587_v62  ;;  %v3645_v61 = vld [vmem:[#allocation5 + $0x7f0] ss:$24 sps:$4 sm:$0xff]   ;;  %v3650_v62 = vld [vmem:[#allocation5 + $0x824] ss:$24 sps:$4 sm:$0xff]  }
 0x147   :  { %2177 = vmatprep.subr.bf16.mxu0 %v3590_v63  ;;  %v3648_v63 = vld [vmem:[#allocation5 + $0x820] ss:$24 sps:$4 sm:$0xff]  }
 0x149   :  { %2096 = vmatpush1.bf16.msra.mxu1 %v3585_v0  ;;  %v3653_v0 = vld [vmem:[#allocation5 + $0x854] ss:$24 sps:$4 sm:$0xff]  }
 0x14a   :  { %2178 = vmatpush1.bf16.msra.mxu0 %v3588_v1  ;;  %2097 = vmatprep.subr.bf16.mxu1 %v3593_v2  ;;  %v3651_v1 = vld [vmem:[#allocation5 + $0x850] ss:$24 sps:$4 sm:$0xff]   ;;  %v3656_v2 = vld [vmem:[#allocation5 + $0x884] ss:$24 sps:$4 sm:$0xff]  }
 0x14b   :  { %2179 = vmatprep.subr.bf16.mxu0 %v3596_v3  ;;  %v3654_v3 = vld [vmem:[#allocation5 + $0x880] ss:$24 sps:$4 sm:$0xff]  }
 0x14d   :  { %2098 = vmatpush1.bf16.msra.mxu1 %v3591_v4  ;;  %v3659_v4 = vld [vmem:[#allocation5 + $0x8b4] ss:$24 sps:$4 sm:$0xff]  }
 0x14e   :  { %2180 = vmatpush1.bf16.msra.mxu0 %v3594_v5  ;;  %2099 = vmatprep.subr.bf16.mxu1 %v3599_v8  ;;  %v3657_v5 = vld [vmem:[#allocation5 + $0x8b0] ss:$24 sps:$4 sm:$0xff]   ;;  %v3662_v8 = vld [vmem:[#allocation5 + $0x8e4] ss:$24 sps:$4 sm:$0xff]  }
 0x14f   :  { %2181 = vmatprep.subr.bf16.mxu0 %v3602_v9  ;;  %v3660_v9 = vld [vmem:[#allocation5 + $0x8e0] ss:$24 sps:$4 sm:$0xff]  }
 0x151   :  { %2100 = vmatpush1.bf16.msra.mxu1 %v3597_v10  ;;  %v377_v10 = vlaneseq }
 0x152   :  { %2182 = vmatpush1.bf16.msra.mxu0 %v3600_v11  ;;  %2101 = vmatprep.subr.bf16.mxu1 %v3605_v12 }
 0x153   :  { %2183 = vmatprep.subr.bf16.mxu0 %v3608_v13  ;;  %v4001_v11 = vshrl.u32 %v377_v10, 7  ;;  %v4004_v13 = vld [vmem:[#allocation7] sm:$0x3f] }
 0x155   :  { %2102 = vmatpush1.bf16.msra.mxu1 %v3603_v15  ;;  %v379_v12 = vsub.s32 0, %v4001_v11  ;;  %v383_v15 = vsub.s32 1, %v4001_v11  ;;  %v395_v10 = vsub.s32 4, %v4001_v11 }
 0x156   :  { %2184 = vmatpush1.bf16.msra.mxu0 %v3606_v16  ;;  %2103 = vmatprep.subr.bf16.mxu1 %v3611_v17 }
 0x157   :  { %2185 = vmatprep.subr.bf16.mxu0 %v3614_v18  ;;  %v380_v16 = vrot.slane %v4004_v13, %v379_v12  ;;  %v384_v17 = vrot.slane %v4004_v13, %v383_v15  ;;  %v399_v12 = vsub.s32 5, %v4001_v11  ;;  %v396_v15 = vrot.slane %v4004_v13, %v395_v10 }
 0x159   :  { %2104 = vmatpush1.bf16.msra.mxu1 %v3609_v19 }
 0x15a   :  { %2186 = vmatpush1.bf16.msra.mxu0 %v3612_v20  ;;  %3121 = vmatprep.subr.bf16.mxu1 %v3663_v22 }
 0x15b   :  { %2196 = vmatprep.subr.bf16.mxu0 %v3617_v21 }
 0x15c   :  { %2106 = vmatmul.mubr.bf16.vlgmr.msra.gmra.mrb[4].mxu1 %v3985_v14 }
 0x15d   :  { %2188 = vmatmul.mubr.bf16.vlgmr.msra.gmra.mrb[4].mxu0 %v3971_v7  ;;  %3122 = vmatpush3.bf16.msra.mxu1 %v3664_v25  ;;  %v3624_v7 = vld [vmem:[#allocation5 + $0x6a0] ss:$24 sps:$4 sm:$0xff]  }
 0x15e   :  { %2197 = vmatpush1.bf16.msra.mxu0 %v3615_v23  ;;  %2228 = vmatprep.mubr.bf16.mxu0 %v3980_v34  ;;  %v3670_v34 = vld [vmem:[#allocation8 + $0x18] sm:$0xff]  }
 0x15f   :  { %2198 = vmatprep.subr.bf16.mxu0 %v3620_v24  ;;  %3123 = vmatprep.subr.bf16.mxu1 %v3665_v26 }
 0x161   :  { %3124 = vmatpush3.bf16.msra.mxu1 %v3666_v29 }
 0x162   :  { %2199 = vmatpush1.bf16.msra.mxu0 %v3618_v27  ;;  %3125 = vmatprep.subr.bf16.mxu1 %v3667_v30  ;;  %v3681_v30 = vld [vmem:[#allocation8 + $0xc8] sm:$0xff]  }
 0x163   :  { %2200 = vmatprep.subr.bf16.mxu0 %v3623_v28  ;;  %v3680_v28 = vld [vmem:[#allocation8 + $0x80] sm:$0xff]  }
 0x165   :  { %3126 = vmatpush3.bf16.msra.mxu1 %v3668_v47  ;;  %v3684_v47 = vld [vmem:[#allocation8 + $0x90] sm:$0xff]  }
 0x166   :  { %2201 = vmatpush1.bf16.msra.mxu0 %v3621_v6  ;;  %3127 = vmatprep.subr.bf16.mxu1 %v3669_v32  ;;  %v3682_v6 = vld [vmem:[#allocation8 + $0x88] sm:$0xff]   ;;  %v3685_v32 = vld [vmem:[#allocation8 + $0xd8] sm:$0xff]  }
 0x167   :  { %2202 = vmatprep.subr.bf16.mxu0 %v3626_v31  ;;  %v3683_v31 = vld [vmem:[#allocation8 + $0xd0] sm:$0xff]  }
 0x169   :  { %3128 = vmatpush3.bf16.msra.mxu1 %v3670_v34  ;;  %v3688_v34 = vld [vmem:[#allocation8 + $0xa0] sm:$0xff]  }
 0x16a   :  { %2203 = vmatpush1.bf16.msra.mxu0 %v3624_v7  ;;  %3129 = vmatprep.subr.bf16.mxu1 %v3671_v35  ;;  %v3686_v7 = vld [vmem:[#allocation8 + $0x98] sm:$0xff]   ;;  %v3689_v35 = vld [vmem:[#allocation8 + $0xe8] sm:$0xff]  }
 0x16b   :  { %2204 = vmatprep.subr.bf16.mxu0 %v3629_v33  ;;  %v3687_v33 = vld [vmem:[#allocation8 + $0xe0] sm:$0xff]  }
 0x16d   :  { %3130 = vmatpush3.bf16.msra.mxu1 %v3672_v38  ;;  %v3692_v38 = vld [vmem:[#allocation8 + $0xb0] sm:$0xff]  }
 0x16e   :  { %2205 = vmatpush1.bf16.msra.mxu0 %v3627_v36  ;;  %3131 = vmatprep.subr.bf16.mxu1 %v3673_v51  ;;  %v3690_v36 = vld [vmem:[#allocation8 + $0xa8] sm:$0xff]   ;;  %v3693_v51 = vld [vmem:[#allocation8 + $0xf8] sm:$0xff]  }
 0x16f   :  { %2206 = vmatprep.subr.bf16.mxu0 %v3632_v37  ;;  %v3998_v42 = vpop.f32.mrb[0].mxu1  ;;  %v3691_v37 = vld [vmem:[#allocation8 + $0xf0] sm:$0xff]  }
 0x170   :  { %v1904_v44 = vpop.f32.mrb[1].mxu1  ;;  %v1903_v18 = vadd.f32 %v3998_v42, %v380_v16  ;;  %v391_v42 = vsub.s32 3, %v4001_v11  ;;  %v400_v16 = vrot.slane %v4004_v13, %v399_v12 }
 0x171   :  { %v1906_v46 = vpop.f32.mrb[2].mxu1  ;;  %3132 = vmatpush3.bf16.msra.mxu1 %v3674_v41  ;;  %v1905_v19 = vadd.f32 %v1904_v44, %v384_v17  ;;  %v387_v41 = vsub.s32 2, %v4001_v11 }
 0x172   :  { %2207 = vmatpush1.bf16.msra.mxu0 %v3630_v39  ;;  %v1907_v49 = vpop.f32.mrb[3].mxu1  ;;  %3133 = vmatprep.subr.bf16.mxu1 %v3675_v43  ;;  %v3694_v39 = vld [vmem:[#allocation8 + $0xb8] sm:$0xff]   ;;  %v392_v44 = vrot.slane %v4004_v13, %v391_v42 }
 0x173   :  { %2208 = vmatprep.subr.bf16.mxu0 %v3635_v40  ;;  %v3695_v40 = vld [vmem:[#allocation8 + $0x140] sm:$0xff]   ;;  %v388_v43 = vrot.slane %v4004_v13, %v387_v41 }
 0x174   :  { %v3072_v13 = vld [vmem:[#allocation10] ss:$0 sm:$0xff] }
 0x175   :  { %3134 = vmatpush3.bf16.msra.mxu1 %v3676_v50 }
 0x176   :  { %2209 = vmatpush1.bf16.msra.mxu0 %v3633_v45  ;;  %3135 = vmatprep.subr.bf16.mxu1 %v3677_v52 }
 0x177   :  { %2210 = vmatprep.subr.bf16.mxu0 %v3638_v48 }
 0x179   :  { %3136 = vmatpush3.bf16.msra.mxu1 %v3678_v55 }
 0x17a   :  { %2211 = vmatpush1.bf16.msra.mxu0 %v3636_v53  ;;  %3143 = vmatprep.subr.bf16.mxu1 %v3679_v56  ;;  %v3696_v56 = vld [vmem:[#allocation8 + $0x100] sm:$0xff]  }
 0x17b   :  { %2212 = vmatprep.subr.bf16.mxu0 %v3641_v54 }
 0x17e   :  { %2213 = vmatpush1.bf16.msra.mxu0 %v3639_v57 }
 0x17f   :  { %2214 = vmatprep.subr.bf16.mxu0 %v3644_v58  ;;  %v3697_v58 = vld [vmem:[#allocation8 + $0x148] sm:$0xff]  }
 0x182   :  { %2215 = vmatpush1.bf16.msra.mxu0 %v3642_v59  ;;  %v3698_v59 = vld [vmem:[#allocation8 + $0x108] sm:$0xff]  }
 0x183   :  { %2216 = vmatprep.subr.bf16.mxu0 %v3647_v60  ;;  %v3699_v60 = vld [vmem:[#allocation8 + $0x150] sm:$0xff]  }
 0x186   :  { %2217 = vmatpush1.bf16.msra.mxu0 %v3645_v61  ;;  %v3700_v61 = vld [vmem:[#allocation8 + $0x110] sm:$0xff]  }
 0x187   :  { %2218 = vmatprep.subr.bf16.mxu0 %v3650_v62  ;;  %v3701_v62 = vld [vmem:[#allocation8 + $0x158] sm:$0xff]  }
 0x18a   :  { %2219 = vmatpush1.bf16.msra.mxu0 %v3648_v63  ;;  %v3702_v63 = vld [vmem:[#allocation8 + $0x118] sm:$0xff]  }
 0x18b   :  { %2220 = vmatprep.subr.bf16.mxu0 %v3653_v0  ;;  %v3703_v0 = vld [vmem:[#allocation8 + $0x160] sm:$0xff]  }
 0x18e   :  { %2221 = vmatpush1.bf16.msra.mxu0 %v3651_v1  ;;  %v3704_v1 = vld [vmem:[#allocation8 + $0x120] sm:$0xff]  }
 0x18f   :  { %2222 = vmatprep.subr.bf16.mxu0 %v3656_v2  ;;  %v3705_v2 = vld [vmem:[#allocation8 + $0x168] sm:$0xff]  }
 0x192   :  { %2223 = vmatpush1.bf16.msra.mxu0 %v3654_v3  ;;  %v3706_v3 = vld [vmem:[#allocation8 + $0x128] sm:$0xff]  }
 0x193   :  { %2224 = vmatprep.subr.bf16.mxu0 %v3659_v4  ;;  %v3707_v4 = vld [vmem:[#allocation8 + $0x170] sm:$0xff]  }
 0x196   :  { %2225 = vmatpush1.bf16.msra.mxu0 %v3657_v5  ;;  %v3708_v5 = vld [vmem:[#allocation8 + $0x130] sm:$0xff]  }
 0x197   :  { %2226 = vmatprep.subr.bf16.mxu0 %v3662_v8  ;;  %v3709_v8 = vld [vmem:[#allocation8 + $0x178] sm:$0xff]  }
 0x19a   :  { %2227 = vmatpush1.bf16.msra.mxu0 %v3660_v9  ;;  %v3710_v9 = vld [vmem:[#allocation8 + $0x138] sm:$0xff]  }
 0x19d   :  { %2229 = vmatmul.mubr.bf16.vlgmr.msra.gmra.mrb[4].mxu0 %v3985_v14 }
 0x1b0   :  { %v1984_v20 = vpop.f32.mrb[0].mxu0 }
 0x1b1   :  { %v3188_v21 = vadd.f32 %v1984_v20, %v1903_v18  ;;  %v1986_v22 = vpop.f32.mrb[1].mxu0 }
 0x1b2   :  { %v3190_v14 = vadd.f32 %v1986_v22, %v1905_v19  ;;  %v1988_v23 = vpop.f32.mrb[2].mxu0 }
 0x1b3   :  { %3711 = vtanh.f32 %v3188_v21  ;;  %v1989_v24 = vpop.f32.mrb[3].mxu0 }
 0x1b4   :  { %3713 = vtanh.f32 %v3190_v14 }
 0x1bd   :  { %v3712_v25 = vpop.eup %3711 }
 0x1be   :  { %v3714_v26 = vpop.eup %3713  ;;  %v2243_v29 = vpack.c.bf16 %v3712_v25, %v3712_v25 }
 0x1bf   :  { %v2244_v27 = vpack.c.bf16 %v3714_v26, %v3714_v26 }
 0x1c1   :  { %2672 = vmatprep.mubr.bf16.mxu1 %v2244_v27 }
 0x1c2   :  { %2673 = vmatmul.mubr.bf16.vlgmr.msra.gmra.mrb[8].mxu1 %v2243_v29 }
 0x1c3   :  { %3144 = vmatpush3.bf16.msra.mxu1 %v3680_v28 }
 0x1c4   :  { %3145 = vmatprep.subr.bf16.mxu1 %v3681_v30 }
 0x1c7   :  { %3146 = vmatpush3.bf16.msra.mxu1 %v3682_v6 }
 0x1c8   :  { %3147 = vmatprep.subr.bf16.mxu1 %v3683_v31 }
 0x1cb   :  { %3148 = vmatpush3.bf16.msra.mxu1 %v3684_v47 }
 0x1cc   :  { %3149 = vmatprep.subr.bf16.mxu1 %v3685_v32 }
 0x1cf   :  { %3150 = vmatpush3.bf16.msra.mxu1 %v3686_v7 }
 0x1d0   :  { %3151 = vmatprep.subr.bf16.mxu1 %v3687_v33 }
 0x1d3   :  { %3152 = vmatpush3.bf16.msra.mxu1 %v3688_v34 }
 0x1d4   :  { %3153 = vmatprep.subr.bf16.mxu1 %v3689_v35 }
 0x1d7   :  { %3154 = vmatpush3.bf16.msra.mxu1 %v3690_v36 }
 0x1d8   :  { %3155 = vmatprep.subr.bf16.mxu1 %v3691_v37 }
 0x1db   :  { %3156 = vmatpush3.bf16.msra.mxu1 %v3692_v38 }
 0x1dc   :  { %3157 = vmatprep.subr.bf16.mxu1 %v3693_v51 }
 0x1df   :  { %3158 = vmatpush3.bf16.msra.mxu1 %v3694_v39 }
 0x1e0   :  { %3165 = vmatprep.subr.bf16.mxu1 %v3695_v40 }
 0x22f   :  { %v2107_v45 = vpop.f32.mrb[4].mxu1 }
 0x230   :  { %v3191_v46 = vadd.f32 %v2107_v45, %v388_v43  ;;  %v2109_v48 = vpop.f32.mrb[5].mxu1 }
 0x231   :  { %v3192_v49 = vadd.f32 %v2109_v48, %v392_v44  ;;  %v2111_v50 = vpop.f32.mrb[6].mxu1 }
 0x232   :  { %3715 = vtanh.f32 %v3191_v46  ;;  %v2112_v52 = vpop.f32.mrb[7].mxu1 }
 0x233   :  { %3717 = vtanh.f32 %v3192_v49 }
 0x23c   :  { %v3716_v53 = vpop.eup %3715 }
 0x23d   :  { %v3718_v54 = vpop.eup %3717  ;;  %v2245_v57 = vpack.c.bf16 %v3716_v53, %v3716_v53 }
 0x23e   :  { %v2246_v55 = vpack.c.bf16 %v3718_v54, %v3718_v54 }
 0x240   :  { %2712 = vmatprep.mubr.bf16.mxu1 %v2246_v55 }
 0x241   :  { %2713 = vmatmul.mubr.bf16.vlgmr.msra.gmra.mrb[12].mxu1 %v2245_v57 }
 0x242   :  { %3166 = vmatpush3.bf16.msra.mxu1 %v3696_v56 }
 0x243   :  { %3167 = vmatprep.subr.bf16.mxu1 %v3697_v58 }
 0x246   :  { %3168 = vmatpush3.bf16.msra.mxu1 %v3698_v59 }
 0x247   :  { %3169 = vmatprep.subr.bf16.mxu1 %v3699_v60 }
 0x24a   :  { %3170 = vmatpush3.bf16.msra.mxu1 %v3700_v61 }
 0x24b   :  { %3171 = vmatprep.subr.bf16.mxu1 %v3701_v62 }
 0x24e   :  { %3172 = vmatpush3.bf16.msra.mxu1 %v3702_v63 }
 0x24f   :  { %3173 = vmatprep.subr.bf16.mxu1 %v3703_v0 }
 0x252   :  { %3174 = vmatpush3.bf16.msra.mxu1 %v3704_v1 }
 0x253   :  { %3175 = vmatprep.subr.bf16.mxu1 %v3705_v2 }
 0x256   :  { %3176 = vmatpush3.bf16.msra.mxu1 %v3706_v3 }
 0x257   :  { %3177 = vmatprep.subr.bf16.mxu1 %v3707_v4 }
 0x25a   :  { %3178 = vmatpush3.bf16.msra.mxu1 %v3708_v5 }
 0x25b   :  { %3179 = vmatprep.subr.bf16.mxu1 %v3709_v8 }
 0x25e   :  { %3180 = vmatpush3.bf16.msra.mxu1 %v3710_v9 }
 0x270   :  { %v2230_v17 = vpop.f32.mrb[4].mxu0 }
 0x271   :  { %v3193_v18 = vadd.f32 %v2230_v17, %v396_v15  ;;  %v2232_v19 = vpop.f32.mrb[5].mxu0 }
 0x272   :  { %v3194_v20 = vadd.f32 %v2232_v19, %v400_v16  ;;  %v2234_v21 = vpop.f32.mrb[6].mxu0 }
 0x273   :  { %3719 = vtanh.f32 %v3193_v18  ;;  %v2235_v22 = vpop.f32.mrb[7].mxu0 }
 0x274   :  { %3721 = vtanh.f32 %v3194_v20 }
 0x27d   :  { %v3720_v14 = vpop.eup %3719 }
 0x27e   :  { %v3722_v23 = vpop.eup %3721  ;;  %v2247_v25 = vpack.c.bf16 %v3720_v14, %v3720_v14 }
 0x27f   :  { %v2248_v24 = vpack.c.bf16 %v3722_v23, %v3722_v23 }
 0x281   :  { %2752 = vmatprep.mubr.bf16.mxu1 %v2248_v24 }
 0x282   :  { %2753 = vmatmul.mubr.bf16.vlgmr.msra.gmra.mrb[16].mxu1 %v2247_v25 }
 0x295   :  { %v3137_v26 = vpop.f32.mrb[8].mxu1 }
 0x296   :  { %v3138_v11 = vpop.f32.mrb[9].mxu1 }
 0x297   :  { %v3139_v27 = vadd.f32 %v3138_v11, %v3137_v26  ;;  %v3140_v28 = vpop.f32.mrb[10].mxu1 }
 0x298   :  { %v3141_v29 = vpop.f32.mrb[11].mxu1 }
 0x299   :  { %v2675_v31 = vadd.f32 %v3139_v27, %v3072_v13 }
 0x314   :  { %v3159_v30 = vpop.f32.mrb[12].mxu1 }
 0x315   :  { %v3160_v6 = vpop.f32.mrb[13].mxu1 }
 0x316   :  { %v3161_v47 = vadd.f32 %v3160_v6, %v3159_v30  ;;  %v3162_v32 = vpop.f32.mrb[14].mxu1 }
 0x317   :  { %v3163_v7 = vpop.f32.mrb[15].mxu1 }
 0x318   :  { %v2715_v33 = vadd.f32 %v3161_v47, %v2675_v31 }
 0x355   :  { %v3181_v34 = vpop.f32.mrb[16].mxu1 }
 0x356   :  { %v3182_v35 = vpop.f32.mrb[17].mxu1 }
 0x357   :  { %v3183_v36 = vadd.f32 %v3182_v35, %v3181_v34  ;;  %v3184_v37 = vpop.f32.mrb[18].mxu1 }
 0x358   :  { %v3185_v38 = vpop.f32.mrb[19].mxu1 }
 0x359   :  { %v2755_v51 = vadd.f32 %v3183_v36, %v2715_v33 }
 0x35b   :  { %2760 = vst [vmem:[#allocation11] sm:$0xff] %v2755_v51 }
 0x35c   :  { %3844 = shalt.err (!%p3841_p2)
}
 0x35d   :  { %s3845_s6 = scalar_lea.hbm %s4035_s5, 128 }
 0x35e   :  { %p3846_p3 = scmp.ne.s32.totalorder %s4035_s5, %s3845_s6  ;;  %p3849_p4 = scmp.lt.u32.totalorder %s3845_s6, %s4035_s5 }
 0x360   :  { %p3851_p5 = pnand %p3849_p4, %p3846_p3 }
 0x362   :  { %3854 = shalt.err (!%p3851_p5)
}
 0x363   :  { %2770 = dma.vmem_to_hbm [thread:$0]  %s2768_s28, 128, %s4035_s5, [#allocation4]  }
 0x364   :  { %3861 = dma.done.wait [#allocation4], 128  }
 0x365   :  { %3862 = vsyncadd [#allocation4], 4294967168 }
 0x366   :  { %2774 = vsyncpa [#allocation3], 1 }
 0x367   :  { %2775 = vsyncpa [#allocation6], 1 }
 0x368   :  { %2776 = vsyncpa [#allocation9], 1 }
 0x369   :  { %2777 = vsyncpa [#allocation4], 1 }

</bundles_post_ra>
